<compile_context>
chip_gen: v7x
topology: tpu7x:2x2x1
jax: 0.10.0
libtpu: 0.0.40
codegen_flags: <defaults>
</compile_context>

<pallas_src>
import functools
import math

import jax
import jax.numpy as jnp
from jax.experimental import pallas as pl
from jax.experimental.pallas import tpu as pltpu

EPS_LN = 1e-5
EPS_BN = 1e-5
F_IN = 600

_HI = jax.lax.Precision.HIGHEST


def _round_up(n, m):
    return ((n + m - 1) // m) * m


def _dot(a, b):
    # High-precision f32 dot for parameter folding / references (bf16 inputs
    # are unaffected); keeps the folding-exactness check independent of the
    # backend's default matmul precision.
    return jnp.dot(a, b, precision=_HI, preferred_element_type=jnp.float32)


# ---------------------------------------------------------------------------
# Pallas kernel: whole forward pass on one batch tile.
# ---------------------------------------------------------------------------
def robust_model_kernel(
    x_ref,
    e1w_ref, e1b_ref, e2w_ref, e2b_ref, e3w_ref, e3b_ref, e4w_ref, e4b_ref,
    aw_ref, ab_ref,
    h1w_ref, h1b_ref, h2w_ref, h2b_ref, h3w_ref, h3b_ref,
    out_ref,
):
    def lin_relu(h, w_ref, b_ref, out_dtype=jnp.bfloat16):
        # bf16 MXU matmul, f32 accumulation; bias + ReLU in f32, then cast the
        # activation down (its next use is another bf16 MXU matmul).
        z = jnp.dot(h.astype(w_ref.dtype), w_ref[...],
                    preferred_element_type=jnp.float32) + b_ref[...]
        return jnp.maximum(z, 0.0).astype(out_dtype)

    # In-kernel cast of the f32 input tile (no host-side pad/cast pass).
    x = x_ref[...].astype(jnp.bfloat16)

    # Encoder (input/encoder BatchNorms folded in): 600 -> 1024 -> 512 -> 256 -> 128
    h = lin_relu(x, e1w_ref, e1b_ref)
    h = lin_relu(h, e2w_ref, e2b_ref)
    h = lin_relu(h, e3w_ref, e3b_ref)
    h = lin_relu(h, e4w_ref, e4b_ref)

    # Seq-len-1 attention + residual folded into one 128x128 matmul:
    #   z = h + (h @ Wv @ Wo + b)  ==  h @ (I + Wv @ Wo) + b
    z = jnp.dot(h.astype(aw_ref.dtype), aw_ref[...],
                preferred_element_type=jnp.float32) + ab_ref[...]

    # attention_norm: LayerNorm(128); affine already folded into h1w/h1b.
    mean = jnp.mean(z, axis=-1, keepdims=True)
    var = jnp.mean((z - mean) ** 2, axis=-1, keepdims=True)
    feat = (z - mean) * jax.lax.rsqrt(var + EPS_LN)

    # Fused gap/lecran heads: [128->128] then block-diagonal [128->64].
    a1 = lin_relu(feat, h1w_ref, h1b_ref)              # cols 0:64 gap, 64:128 lecran
    a2 = lin_relu(a1, h2w_ref, h2b_ref, jnp.float32)   # cols 0:32 gap, 32:64  lecran

    # Final 32->1 heads as one block-diagonal [64, 2] matmul; single store.
    out_ref[...] = jnp.dot(a2, h3w_ref[...],
                           preferred_element_type=jnp.float32) + h3b_ref[...]


# ---------------------------------------------------------------------------
# Hardware-dependent knobs (probed once, cached).
# ---------------------------------------------------------------------------
@functools.lru_cache(maxsize=None)
def _weight_pipeline_mode():
    """pl.Buffered(1) for the constant-index weight blocks if this JAX/Mosaic
    build accepts buffer_count=1 (halves weight VMEM); else default (None)."""
    def _copy(x_ref, o_ref):
        o_ref[...] = x_ref[...]
    try:
        mode = pl.Buffered(1)
        with jax.ensure_compile_time_eval():
            xin = jnp.zeros((8, 128), jnp.float32)
            out = pl.pallas_call(
                _copy,
                out_shape=jax.ShapeDtypeStruct((8, 128), jnp.float32),
                grid=(2,),
                in_specs=[pl.BlockSpec((8, 128), lambda i: (0, 0),
                                       pipeline_mode=mode)],
                out_specs=pl.BlockSpec((8, 128), lambda i: (0, 0)),
            )(xin)
            jax.block_until_ready(out)
        return mode
    except Exception:
        return None


@functools.lru_cache(maxsize=None)
def _tile_budget():
    """(max batch tile, scoped-VMEM limit) per TPU generation."""
    try:
        vmem = pltpu.get_tpu_info().vmem_capacity_bytes
    except Exception:
        vmem = 64 << 20
    if vmem >= (96 << 20):          # v5e / v6e: 128 MiB physical VMEM
        return 2048, 80 << 20
    return 1024, 48 << 20           # v7x: 64 MiB physical per TensorCore


# ---------------------------------------------------------------------------
# Wrapper: batch grid with VMEM-resident weights.
# ---------------------------------------------------------------------------
def robust_forward(x, kernel_args, *, tb=None):
    B = x.shape[0]
    tb_cap, vmem_limit = _tile_budget()
    if tb is None:
        # >= 2 grid steps whenever possible so the "parallel" batch axis can
        # shard across both TensorCores on v7x; the cap bounds per-step VMEM.
        tb = min(tb_cap, _round_up(pl.cdiv(_round_up(B, 16), 2), 16))
    tb = max(16, min(_round_up(tb, 16), _round_up(B, 16)))
    Bp = _round_up(B, tb)

    xp = x.astype(jnp.float32)
    if Bp != B:
        xp = jnp.pad(xp, ((0, Bp - B), (0, 0)))

    w_mode = _weight_pipeline_mode()
    weight_specs = [pl.BlockSpec(a.shape, lambda i: (0, 0), pipeline_mode=w_mode)
                    for a in kernel_args]

    flops = 2 * Bp * (F_IN * 1024 + 1024 * 512 + 512 * 256 + 256 * 128
                      + 128 * 128 + 128 * 128 + 128 * 64 + 64 * 2)
    bytes_accessed = (xp.size * xp.dtype.itemsize + Bp * 2 * 4
                      + sum(int(a.size) * a.dtype.itemsize for a in kernel_args))

    out = pl.pallas_call(
        robust_model_kernel,
        out_shape=jax.ShapeDtypeStruct((Bp, 2), jnp.float32),
        grid=(Bp // tb,),
        in_specs=[pl.BlockSpec((tb, F_IN), lambda i: (i, 0))] + weight_specs,
        out_specs=pl.BlockSpec((tb, 2), lambda i: (i, 0)),
        compiler_params=pltpu.CompilerParams(
            dimension_semantics=("parallel",),
            vmem_limit_bytes=vmem_limit,
        ),
        cost_estimate=pl.CostEstimate(
            flops=int(flops), transcendentals=int(Bp),
            bytes_accessed=int(bytes_accessed)),
    )(xp, *kernel_args)
    return out[:B]


@functools.partial(jax.jit, static_argnames=("tb",))
def robust_forward_jit(x, kernel_args, tb=None):
    return robust_forward(x, kernel_args, tb=tb)


# ---------------------------------------------------------------------------
# Deterministic parameter construction (synthetic init, no checkpoint).
# ---------------------------------------------------------------------------
def _xavier(key, n_in, n_out):
    limit = math.sqrt(6.0 / (n_in + n_out))
    return jax.random.uniform(key, (n_in, n_out), jnp.float32, -limit, limit)


def init_raw_params(key):
    keys = iter(jax.random.split(key, 64))

    def linear(n_in, n_out):
        return _xavier(next(keys), n_in, n_out), jnp.zeros((1, n_out), jnp.float32)

    def bn_eval(n):
        # Eval-mode BN pre-folded to scale/shift:
        #   scale = gamma / sqrt(var + eps); shift = beta - mean * scale
        gamma = 1.0 + 0.1 * jax.random.normal(next(keys), (1, n), jnp.float32)
        beta = 0.1 * jax.random.normal(next(keys), (1, n), jnp.float32)
        mean = 0.1 * jax.random.normal(next(keys), (1, n), jnp.float32)
        var = jax.random.uniform(next(keys), (1, n), jnp.float32, 0.5, 1.5)
        scale = gamma / jnp.sqrt(var + EPS_BN)
        shift = beta - mean * scale
        return scale, shift

    raw = {}
    raw["in_scale"], raw["in_shift"] = bn_eval(F_IN)

    enc = []
    for n_in, n_out in [(F_IN, 1024), (1024, 512), (512, 256), (256, 128)]:
        w, b = linear(n_in, n_out)
        s, t = bn_eval(n_out)
        enc.append((w, b, s, t))
    raw["encoder"] = enc

    raw["vw"], raw["vb"] = linear(128, 128)   # v_proj slice of in_proj
    raw["ow"], raw["ob"] = linear(128, 128)   # out_proj
    raw["lng"] = 1.0 + 0.05 * jax.random.normal(next(keys), (1, 128), jnp.float32)
    raw["lnb"] = 0.05 * jax.random.normal(next(keys), (1, 128), jnp.float32)

    def head():
        w1, b1 = linear(128, 64)
        w2, b2 = linear(64, 32)
        w3 = _xavier(next(keys), 32, 1)                 # [32, 1]
        b3 = jnp.zeros((1, 1), jnp.float32)
        return (w1, b1, w2, b2, w3, b3)

    raw["gap"] = head()
    raw["lecran"] = head()
    return raw


def fold_params(raw):
    """Fold BNs into Linears, attention+residual into one matmul, LayerNorm
    affine into the fused head layer-1, and both heads into shared matmuls."""
    (w1, b1, s1, t1), (w2, b2, s2, t2), (w3, b3, s3, t3), (w4, b4, s4, t4) = raw["encoder"]
    in_scale, in_shift = raw["in_scale"], raw["in_shift"]

    # Input BN folded into e1 rows; encoder BN1 folded into e1 output columns.
    e1w = (in_scale.reshape(-1, 1) * w1) * s1                  # [600, 1024]
    e1b = (_dot(in_shift, w1) + b1) * s1 + t1

    def fold_bn(w, b, s, t):
        return w * s, b * s + t

    e2w, e2b = fold_bn(w2, b2, s2, t2)
    e3w, e3b = fold_bn(w3, b3, s3, t3)
    e4w, e4b = fold_bn(w4, b4, s4, t4)

    # z = h + ((h @ Wv + bv) @ Wo + bo)  ==  h @ (I + Wv@Wo) + (bv@Wo + bo)
    aw = jnp.eye(128, dtype=jnp.float32) + _dot(raw["vw"], raw["ow"])
    ab = _dot(raw["vb"], raw["ow"]) + raw["ob"]

    g1w, g1b, g2w, g2b, g3w, g3b = raw["gap"]
    l1w, l1b, l2w, l2b, l3w, l3b = raw["lecran"]

    # Fused head layer 1, with LayerNorm affine folded in
    # (feat*lng + lnb) @ W + b == feat @ (diag(lng)@W) + (lnb@W + b).
    h1w = jnp.concatenate([g1w, l1w], axis=1)                  # [128, 128]
    h1b = jnp.concatenate([g1b, l1b], axis=1)                  # [1, 128]
    h1b = _dot(raw["lnb"], h1w) + h1b
    h1w = raw["lng"].reshape(-1, 1) * h1w

    h2w = jnp.zeros((128, 64), jnp.float32)
    h2w = h2w.at[:64, :32].set(g2w).at[64:, 32:].set(l2w)      # block-diagonal
    h2b = jnp.concatenate([g2b, l2b], axis=1)                  # [1, 64]

    h3w = jnp.zeros((64, 2), jnp.float32)
    h3w = h3w.at[:32, 0:1].set(g3w).at[32:, 1:2].set(l3w)      # block-diag [64, 2]
    h3b = jnp.concatenate([g3b, l3b], axis=1)                  # [1, 2]

    return (e1w, e1b, e2w, e2b, e3w, e3b, e4w, e4b,
            aw, ab, h1w, h1b, h2w, h2b, h3w, h3b)


_BF16_IDX = {0, 2, 4, 6, 8, 10, 12}   # e1w, e2w, e3w, e4w, aw, h1w, h2w


def cast_for_kernel(folded):
    return tuple(a.astype(jnp.bfloat16) if i in _BF16_IDX else a
                 for i, a in enumerate(folded))


# ---------------------------------------------------------------------------
# Pure-JAX references for verification.
# ---------------------------------------------------------------------------
def reference_unfolded(x, raw):
    """Eval-mode PyTorch forward, f32, unfolded parameters."""
    h = x * raw["in_scale"] + raw["in_shift"]
    for (w, b, s, t) in raw["encoder"]:
        h = jnp.maximum((_dot(h, w) + b) * s + t, 0.0)
    attended = _dot(_dot(h, raw["vw"]) + raw["vb"], raw["ow"]) + raw["ob"]
    z = h + attended
    mean = jnp.mean(z, axis=-1, keepdims=True)
    var = jnp.mean((z - mean) ** 2, axis=-1, keepdims=True)
    feat = (z - mean) * jax.lax.rsqrt(var + EPS_LN) * raw["lng"] + raw["lnb"]
    outs = []
    for (w1, b1, w2, b2, w3, b3) in (raw["gap"], raw["lecran"]):
        a1 = jnp.maximum(_dot(feat, w1) + b1, 0.0)
        a2 = jnp.maximum(_dot(a1, w2) + b2, 0.0)
        outs.append(_dot(a2, w3) + b3)
    return jnp.concatenate(outs, axis=1)


def reference_folded(x, params):
    """Same math as the kernel (exact with f32 params; mirrors bf16 kernel args)."""
    (e1w, e1b, e2w, e2b, e3w, e3b, e4w, e4b,
     aw, ab, h1w, h1b, h2w, h2b, h3w, h3b) = params
    act_dt = e1w.dtype   # bf16 for kernel args, f32 for the exact-fold check

    def lin_relu(h, w, b, out_dt):
        z = _dot(h.astype(w.dtype), w) + b
        return jnp.maximum(z, 0.0).astype(out_dt)

    h = lin_relu(x.astype(act_dt), e1w, e1b, act_dt)
    h = lin_relu(h, e2w, e2b, act_dt)
    h = lin_relu(h, e3w, e3b, act_dt)
    h = lin_relu(h, e4w, e4b, act_dt)
    z = _dot(h.astype(aw.dtype), aw) + ab
    mean = jnp.mean(z, axis=-1, keepdims=True)
    var = jnp.mean((z - mean) ** 2, axis=-1, keepdims=True)
    feat = (z - mean) * jax.lax.rsqrt(var + EPS_LN)
    a1 = lin_relu(feat, h1w, h1b, act_dt)
    a2 = lin_relu(a1, h2w, h2b, jnp.float32)
    return _dot(a2, h3w.astype(jnp.float32)) + h3b


if __name__ == "__main__":
    B = 256
    key = jax.random.PRNGKey(0)
    kx, kp = jax.random.split(key)
    x = jax.random.normal(kx, (B, F_IN), jnp.float32)

    raw = init_raw_params(kp)
    folded_f32 = fold_params(raw)
    kernel_args = cast_for_kernel(folded_f32)

    # Decide Buffered(1) support eagerly (outside jit) so the fallback works.
    _weight_pipeline_mode()

    # Default tb heuristic -> tb=128, grid=(2,): exercises the pipelined grid
    # and the dual-TC "parallel" batch axis.
    out = robust_forward_jit(x, kernel_args)
    out = jax.block_until_ready(out)
    assert out.shape == (B, 2), out.shape

    # 1) Folding (BN + attention/residual + LayerNorm affine + heads) is exact in f32.
    ref_fold = reference_folded(x, folded_f32)
    ref_raw = reference_unfolded(x, raw)
    err_fold = float(jnp.max(jnp.abs(ref_fold - ref_raw)))
    assert jnp.allclose(ref_fold, ref_raw, atol=1e-3, rtol=1e-3), err_fold

    # 2) Kernel matches a bf16-matmul reference of the same folded params.
    ref_bf16 = reference_folded(x, kernel_args)
    err_kern = float(jnp.max(jnp.abs(out - ref_bf16)))
    assert jnp.allclose(out, ref_bf16, atol=1e-2, rtol=1e-2), err_kern

    print("KERNEL_OK")
</pallas_src>

<mosaic_0001>
module attributes {stable_mosaic.version = 11 : i64} {
  func.func @_copy(%arg0: i32, %arg1: memref<8x128xf32, #tpu.memory_space<vmem>>, %arg2: memref<8x128xf32, #tpu.memory_space<vmem>>) attributes {dimension_semantics = [#tpu.dimension_semantics<arbitrary>], iteration_bounds = array<i64: 2>, scalar_prefetch = 0 : i64, scratch_operands = 0 : i64, tpu.core_type = #tpu.core_type<tc>, window_params = [{pipeline_mode = #tpu.pipeline_mode<synchronous>, transform_indices = @transform_0, window_bounds = array<i64: 8, 128>}, {pipeline_mode = #tpu.pipeline_mode<synchronous>, transform_indices = @transform_1, window_bounds = array<i64: 8, 128>}]} {
    %c0 = arith.constant 0 : index
    %c0_0 = arith.constant 0 : index
    %0 = vector.load %arg1[%c0, %c0_0] : memref<8x128xf32, #tpu.memory_space<vmem>>, vector<8x128xf32>
    %c0_1 = arith.constant 0 : index
    %c0_2 = arith.constant 0 : index
    %1 = vector.load %arg2[%c0_1, %c0_2] : memref<8x128xf32, #tpu.memory_space<vmem>>, vector<8x128xf32>
    tpu.vector_store %arg2[%c0_1, %c0_2], %0 {strides = array<i32>} : memref<8x128xf32, #tpu.memory_space<vmem>>, vector<8x128xf32>,
    return
  }
  func.func @transform_0(%arg0: i32) -> (i32, i32) {
    %c0_i32 = arith.constant 0 : i32
    %c0_i32_0 = arith.constant 0 : i32
    %c0_i32_1 = arith.constant 0 : i32
    return %c0_i32, %c0_i32_0 : i32, i32
  }
  func.func @transform_1(%arg0: i32) -> (i32, i32) {
    %c0_i32 = arith.constant 0 : i32
    %c0_i32_0 = arith.constant 0 : i32
    %c0_i32_1 = arith.constant 0 : i32
    return %c0_i32, %c0_i32_0 : i32, i32
  }
}

module attributes {stable_mosaic.version = 11 : i64} {
  func.func @robust_model_kernel(%arg0: i32, %arg1: memref<128x600xf32, #tpu.memory_space<vmem>>, %arg2: memref<600x1024xbf16, #tpu.memory_space<vmem>>, %arg3: memref<1x1024xf32, #tpu.memory_space<vmem>>, %arg4: memref<1024x512xbf16, #tpu.memory_space<vmem>>, %arg5: memref<1x512xf32, #tpu.memory_space<vmem>>, %arg6: memref<512x256xbf16, #tpu.memory_space<vmem>>, %arg7: memref<1x256xf32, #tpu.memory_space<vmem>>, %arg8: memref<256x128xbf16, #tpu.memory_space<vmem>>, %arg9: memref<1x128xf32, #tpu.memory_space<vmem>>, %arg10: memref<128x128xbf16, #tpu.memory_space<vmem>>, %arg11: memref<1x128xf32, #tpu.memory_space<vmem>>, %arg12: memref<128x128xbf16, #tpu.memory_space<vmem>>, %arg13: memref<1x128xf32, #tpu.memory_space<vmem>>, %arg14: memref<128x64xbf16, #tpu.memory_space<vmem>>, %arg15: memref<1x64xf32, #tpu.memory_space<vmem>>, %arg16: memref<64x2xf32, #tpu.memory_space<vmem>>, %arg17: memref<1x2xf32, #tpu.memory_space<vmem>>, %arg18: memref<128x2xf32, #tpu.memory_space<vmem>>) attributes {dimension_semantics = [#tpu.dimension_semantics<parallel>], iteration_bounds = array<i64: 2>, scalar_prefetch = 0 : i64, scratch_operands = 0 : i64, tpu.core_type = #tpu.core_type<tc>, window_params = [{transform_indices = @transform_0, window_bounds = array<i64: 128, 600>}, {pipeline_mode = #tpu.pipeline_mode<synchronous>, transform_indices = @transform_1, window_bounds = array<i64: 600, 1024>}, {pipeline_mode = #tpu.pipeline_mode<synchronous>, transform_indices = @transform_2, window_bounds = array<i64: 1, 1024>}, {pipeline_mode = #tpu.pipeline_mode<synchronous>, transform_indices = @transform_3, window_bounds = array<i64: 1024, 512>}, {pipeline_mode = #tpu.pipeline_mode<synchronous>, transform_indices = @transform_4, window_bounds = array<i64: 1, 512>}, {pipeline_mode = #tpu.pipeline_mode<synchronous>, transform_indices = @transform_5, window_bounds = array<i64: 512, 256>}, {pipeline_mode = #tpu.pipeline_mode<synchronous>, transform_indices = @transform_6, window_bounds = array<i64: 1, 256>}, {pipeline_mode = #tpu.pipeline_mode<synchronous>, transform_indices = @transform_7, window_bounds = array<i64: 256, 128>}, {pipeline_mode = #tpu.pipeline_mode<synchronous>, transform_indices = @transform_8, window_bounds = array<i64: 1, 128>}, {pipeline_mode = #tpu.pipeline_mode<synchronous>, transform_indices = @transform_9, window_bounds = array<i64: 128, 128>}, {pipeline_mode = #tpu.pipeline_mode<synchronous>, transform_indices = @transform_10, window_bounds = array<i64: 1, 128>}, {pipeline_mode = #tpu.pipeline_mode<synchronous>, transform_indices = @transform_11, window_bounds = array<i64: 128, 128>}, {pipeline_mode = #tpu.pipeline_mode<synchronous>, transform_indices = @transform_12, window_bounds = array<i64: 1, 128>}, {pipeline_mode = #tpu.pipeline_mode<synchronous>, transform_indices = @transform_13, window_bounds = array<i64: 128, 64>}, {pipeline_mode = #tpu.pipeline_mode<synchronous>, transform_indices = @transform_14, window_bounds = array<i64: 1, 64>}, {pipeline_mode = #tpu.pipeline_mode<synchronous>, transform_indices = @transform_15, window_bounds = array<i64: 64, 2>}, {pipeline_mode = #tpu.pipeline_mode<synchronous>, transform_indices = @transform_16, window_bounds = array<i64: 1, 2>}, {transform_indices = @transform_17, window_bounds = array<i64: 128, 2>}]} {
    %c0 = arith.constant 0 : index
    %c0_0 = arith.constant 0 : index
    %0 = vector.load %arg1[%c0, %c0_0] : memref<128x600xf32, #tpu.memory_space<vmem>>, vector<128x600xf32>
    %1 = arith.truncf %0 : vector<128x600xf32> to vector<128x600xbf16>
    %c0_1 = arith.constant 0 : index
    %c0_2 = arith.constant 0 : index
    %2 = vector.load %arg2[%c0_1, %c0_2] : memref<600x1024xbf16, #tpu.memory_space<vmem>>, vector<600x1024xbf16>
    %cst = arith.constant dense<0.000000e+00> : vector<128x1024xf32>
    %3 = tpu.matmul %1, %2, %cst {dimension_numbers = #tpu.dot_dimension_numbers<[1], [0], [0], [1], [0, 0, 1, 1], [], []>} : vector<128x600xbf16>, vector<600x1024xbf16>, vector<128x1024xf32> -> vector<128x1024xf32>
    %c0_3 = arith.constant 0 : index
    %c0_4 = arith.constant 0 : index
    %4 = vector.load %arg3[%c0_3, %c0_4] : memref<1x1024xf32, #tpu.memory_space<vmem>>, vector<1x1024xf32>
    %5 = vector.broadcast %4 : vector<1x1024xf32> to vector<128x1024xf32>
    %6 = arith.addf %3, %5 : vector<128x1024xf32>
    %cst_5 = arith.constant 0.000000e+00 : f32
    %7 = vector.broadcast %cst_5 : f32 to vector<128x1024xf32>
    %8 = arith.maximumf %6, %7 : vector<128x1024xf32>
    %9 = arith.truncf %8 : vector<128x1024xf32> to vector<128x1024xbf16>
    %c0_6 = arith.constant 0 : index
    %c0_7 = arith.constant 0 : index
    %10 = vector.load %arg4[%c0_6, %c0_7] : memref<1024x512xbf16, #tpu.memory_space<vmem>>, vector<1024x512xbf16>
    %cst_8 = arith.constant dense<0.000000e+00> : vector<128x512xf32>
    %11 = tpu.matmul %9, %10, %cst_8 {dimension_numbers = #tpu.dot_dimension_numbers<[1], [0], [0], [1], [0, 0, 1, 1], [], []>} : vector<128x1024xbf16>, vector<1024x512xbf16>, vector<128x512xf32> -> vector<128x512xf32>
    %c0_9 = arith.constant 0 : index
    %c0_10 = arith.constant 0 : index
    %12 = vector.load %arg5[%c0_9, %c0_10] : memref<1x512xf32, #tpu.memory_space<vmem>>, vector<1x512xf32>
    %13 = vector.broadcast %12 : vector<1x512xf32> to vector<128x512xf32>
    %14 = arith.addf %11, %13 : vector<128x512xf32>
    %cst_11 = arith.constant 0.000000e+00 : f32
    %15 = vector.broadcast %cst_11 : f32 to vector<128x512xf32>
    %16 = arith.maximumf %14, %15 : vector<128x512xf32>
    %17 = arith.truncf %16 : vector<128x512xf32> to vector<128x512xbf16>
    %c0_12 = arith.constant 0 : index
    %c0_13 = arith.constant 0 : index
    %18 = vector.load %arg6[%c0_12, %c0_13] : memref<512x256xbf16, #tpu.memory_space<vmem>>, vector<512x256xbf16>
    %cst_14 = arith.constant dense<0.000000e+00> : vector<128x256xf32>
    %19 = tpu.matmul %17, %18, %cst_14 {dimension_numbers = #tpu.dot_dimension_numbers<[1], [0], [0], [1], [0, 0, 1, 1], [], []>} : vector<128x512xbf16>, vector<512x256xbf16>, vector<128x256xf32> -> vector<128x256xf32>
    %c0_15 = arith.constant 0 : index
    %c0_16 = arith.constant 0 : index
    %20 = vector.load %arg7[%c0_15, %c0_16] : memref<1x256xf32, #tpu.memory_space<vmem>>, vector<1x256xf32>
    %21 = vector.broadcast %20 : vector<1x256xf32> to vector<128x256xf32>
    %22 = arith.addf %19, %21 : vector<128x256xf32>
    %cst_17 = arith.constant 0.000000e+00 : f32
    %23 = vector.broadcast %cst_17 : f32 to vector<128x256xf32>
    %24 = arith.maximumf %22, %23 : vector<128x256xf32>
    %25 = arith.truncf %24 : vector<128x256xf32> to vector<128x256xbf16>
    %c0_18 = arith.constant 0 : index
    %c0_19 = arith.constant 0 : index
    %26 = vector.load %arg8[%c0_18, %c0_19] : memref<256x128xbf16, #tpu.memory_space<vmem>>, vector<256x128xbf16>
    %cst_20 = arith.constant dense<0.000000e+00> : vector<128x128xf32>
    %27 = tpu.matmul %25, %26, %cst_20 {dimension_numbers = #tpu.dot_dimension_numbers<[1], [0], [0], [1], [0, 0, 1, 1], [], []>} : vector<128x256xbf16>, vector<256x128xbf16>, vector<128x128xf32> -> vector<128x128xf32>
    %c0_21 = arith.constant 0 : index
    %c0_22 = arith.constant 0 : index
    %28 = vector.load %arg9[%c0_21, %c0_22] : memref<1x128xf32, #tpu.memory_space<vmem>>, vector<1x128xf32>
    %29 = vector.broadcast %28 : vector<1x128xf32> to vector<128x128xf32>
    %30 = arith.addf %27, %29 : vector<128x128xf32>
    %cst_23 = arith.constant 0.000000e+00 : f32
    %31 = vector.broadcast %cst_23 : f32 to vector<128x128xf32>
    %32 = arith.maximumf %30, %31 : vector<128x128xf32>
    %33 = arith.truncf %32 : vector<128x128xf32> to vector<128x128xbf16>
    %c0_24 = arith.constant 0 : index
    %c0_25 = arith.constant 0 : index
    %34 = vector.load %arg10[%c0_24, %c0_25] : memref<128x128xbf16, #tpu.memory_space<vmem>>, vector<128x128xbf16>
    %cst_26 = arith.constant dense<0.000000e+00> : vector<128x128xf32>
    %35 = tpu.matmul %33, %34, %cst_26 {dimension_numbers = #tpu.dot_dimension_numbers<[1], [0], [0], [1], [0, 0, 1, 1], [], []>} : vector<128x128xbf16>, vector<128x128xbf16>, vector<128x128xf32> -> vector<128x128xf32>
    %c0_27 = arith.constant 0 : index
    %c0_28 = arith.constant 0 : index
    %36 = vector.load %arg11[%c0_27, %c0_28] : memref<1x128xf32, #tpu.memory_space<vmem>>, vector<1x128xf32>
    %37 = vector.broadcast %36 : vector<1x128xf32> to vector<128x128xf32>
    %38 = arith.addf %35, %37 : vector<128x128xf32>
    %cst_29 = arith.constant dense<0.000000e+00> : vector<128xf32>
    %39 = vector.multi_reduction <add>, %38, %cst_29 [1] : vector<128x128xf32> to vector<128xf32>
    %40 = vector.shape_cast %39 : vector<128xf32> to vector<128x1xf32>
    %cst_30 = arith.constant 1.280000e+02 : f32
    %41 = vector.broadcast %cst_30 : f32 to vector<128x1xf32>
    %42 = arith.divf %40, %41 : vector<128x1xf32>
    %43 = vector.broadcast %42 : vector<128x1xf32> to vector<128x128xf32>
    %44 = arith.subf %38, %43 : vector<128x128xf32>
    %45 = arith.mulf %44, %44 : vector<128x128xf32>
    %cst_31 = arith.constant dense<0.000000e+00> : vector<128xf32>
    %46 = vector.multi_reduction <add>, %45, %cst_31 [1] : vector<128x128xf32> to vector<128xf32>
    %47 = vector.shape_cast %46 : vector<128xf32> to vector<128x1xf32>
    %cst_32 = arith.constant 1.280000e+02 : f32
    %48 = vector.broadcast %cst_32 : f32 to vector<128x1xf32>
    %49 = arith.divf %47, %48 : vector<128x1xf32>
    %50 = vector.broadcast %42 : vector<128x1xf32> to vector<128x128xf32>
    %51 = arith.subf %38, %50 : vector<128x128xf32>
    %cst_33 = arith.constant 9.99999974E-6 : f32
    %52 = vector.broadcast %cst_33 : f32 to vector<128x1xf32>
    %53 = arith.addf %49, %52 : vector<128x1xf32>
    %54 = math.rsqrt %53 : vector<128x1xf32>
    %55 = vector.broadcast %54 : vector<128x1xf32> to vector<128x128xf32>
    %56 = arith.mulf %51, %55 : vector<128x128xf32>
    %57 = arith.truncf %56 : vector<128x128xf32> to vector<128x128xbf16>
    %c0_34 = arith.constant 0 : index
    %c0_35 = arith.constant 0 : index
    %58 = vector.load %arg12[%c0_34, %c0_35] : memref<128x128xbf16, #tpu.memory_space<vmem>>, vector<128x128xbf16>
    %cst_36 = arith.constant dense<0.000000e+00> : vector<128x128xf32>
    %59 = tpu.matmul %57, %58, %cst_36 {dimension_numbers = #tpu.dot_dimension_numbers<[1], [0], [0], [1], [0, 0, 1, 1], [], []>} : vector<128x128xbf16>, vector<128x128xbf16>, vector<128x128xf32> -> vector<128x128xf32>
    %c0_37 = arith.constant 0 : index
    %c0_38 = arith.constant 0 : index
    %60 = vector.load %arg13[%c0_37, %c0_38] : memref<1x128xf32, #tpu.memory_space<vmem>>, vector<1x128xf32>
    %61 = vector.broadcast %60 : vector<1x128xf32> to vector<128x128xf32>
    %62 = arith.addf %59, %61 : vector<128x128xf32>
    %cst_39 = arith.constant 0.000000e+00 : f32
    %63 = vector.broadcast %cst_39 : f32 to vector<128x128xf32>
    %64 = arith.maximumf %62, %63 : vector<128x128xf32>
    %65 = arith.truncf %64 : vector<128x128xf32> to vector<128x128xbf16>
    %c0_40 = arith.constant 0 : index
    %c0_41 = arith.constant 0 : index
    %66 = vector.load %arg14[%c0_40, %c0_41] : memref<128x64xbf16, #tpu.memory_space<vmem>>, vector<128x64xbf16>
    %cst_42 = arith.constant dense<0.000000e+00> : vector<128x64xf32>
    %67 = tpu.matmul %65, %66, %cst_42 {dimension_numbers = #tpu.dot_dimension_numbers<[1], [0], [0], [1], [0, 0, 1, 1], [], []>} : vector<128x128xbf16>, vector<128x64xbf16>, vector<128x64xf32> -> vector<128x64xf32>
    %c0_43 = arith.constant 0 : index
    %c0_44 = arith.constant 0 : index
    %68 = vector.load %arg15[%c0_43, %c0_44] : memref<1x64xf32, #tpu.memory_space<vmem>>, vector<1x64xf32>
    %69 = vector.broadcast %68 : vector<1x64xf32> to vector<128x64xf32>
    %70 = arith.addf %67, %69 : vector<128x64xf32>
    %cst_45 = arith.constant 0.000000e+00 : f32
    %71 = vector.broadcast %cst_45 : f32 to vector<128x64xf32>
    %72 = arith.maximumf %70, %71 : vector<128x64xf32>
    %c0_46 = arith.constant 0 : index
    %c0_47 = arith.constant 0 : index
    %73 = vector.load %arg16[%c0_46, %c0_47] : memref<64x2xf32, #tpu.memory_space<vmem>>, vector<64x2xf32>
    %cst_48 = arith.constant dense<0.000000e+00> : vector<128x2xf32>
    %74 = tpu.matmul %72, %73, %cst_48 {dimension_numbers = #tpu.dot_dimension_numbers<[1], [0], [0], [1], [0, 0, 1, 1], [], []>} : vector<128x64xf32>, vector<64x2xf32>, vector<128x2xf32> -> vector<128x2xf32>
    %c0_49 = arith.constant 0 : index
    %c0_50 = arith.constant 0 : index
    %75 = vector.load %arg17[%c0_49, %c0_50] : memref<1x2xf32, #tpu.memory_space<vmem>>, vector<1x2xf32>
    %76 = vector.broadcast %75 : vector<1x2xf32> to vector<128x2xf32>
    %77 = arith.addf %74, %76 : vector<128x2xf32>
    %c0_51 = arith.constant 0 : index
    %c0_52 = arith.constant 0 : index
    %78 = vector.load %arg18[%c0_51, %c0_52] : memref<128x2xf32, #tpu.memory_space<vmem>>, vector<128x2xf32>
    tpu.vector_store %arg18[%c0_51, %c0_52], %77 {strides = array<i32>} : memref<128x2xf32, #tpu.memory_space<vmem>>, vector<128x2xf32>,
    return
  }
  func.func @transform_0(%arg0: i32) -> (i32, i32) {
    %c0_i32 = arith.constant 0 : i32
    %c0_i32_0 = arith.constant 0 : i32
    return %arg0, %c0_i32 : i32, i32
  }
  func.func @transform_1(%arg0: i32) -> (i32, i32) {
    %c0_i32 = arith.constant 0 : i32
    %c0_i32_0 = arith.constant 0 : i32
    %c0_i32_1 = arith.constant 0 : i32
    return %c0_i32, %c0_i32_0 : i32, i32
  }
  func.func @transform_2(%arg0: i32) -> (i32, i32) {
    %c0_i32 = arith.constant 0 : i32
    %c0_i32_0 = arith.constant 0 : i32
    %c0_i32_1 = arith.constant 0 : i32
    return %c0_i32, %c0_i32_0 : i32, i32
  }
  func.func @transform_3(%arg0: i32) -> (i32, i32) {
    %c0_i32 = arith.constant 0 : i32
    %c0_i32_0 = arith.constant 0 : i32
    %c0_i32_1 = arith.constant 0 : i32
    return %c0_i32, %c0_i32_0 : i32, i32
  }
  func.func @transform_4(%arg0: i32) -> (i32, i32) {
    %c0_i32 = arith.constant 0 : i32
    %c0_i32_0 = arith.constant 0 : i32
    %c0_i32_1 = arith.constant 0 : i32
    return %c0_i32, %c0_i32_0 : i32, i32
  }
  func.func @transform_5(%arg0: i32) -> (i32, i32) {
    %c0_i32 = arith.constant 0 : i32
    %c0_i32_0 = arith.constant 0 : i32
    %c0_i32_1 = arith.constant 0 : i32
    return %c0_i32, %c0_i32_0 : i32, i32
  }
  func.func @transform_6(%arg0: i32) -> (i32, i32) {
    %c0_i32 = arith.constant 0 : i32
    %c0_i32_0 = arith.constant 0 : i32
    %c0_i32_1 = arith.constant 0 : i32
    return %c0_i32, %c0_i32_0 : i32, i32
  }
  func.func @transform_7(%arg0: i32) -> (i32, i32) {
    %c0_i32 = arith.constant 0 : i32
    %c0_i32_0 = arith.constant 0 : i32
    %c0_i32_1 = arith.constant 0 : i32
    return %c0_i32, %c0_i32_0 : i32, i32
  }
  func.func @transform_8(%arg0: i32) -> (i32, i32) {
    %c0_i32 = arith.constant 0 : i32
    %c0_i32_0 = arith.constant 0 : i32
    %c0_i32_1 = arith.constant 0 : i32
    return %c0_i32, %c0_i32_0 : i32, i32
  }
  func.func @transform_9(%arg0: i32) -> (i32, i32) {
    %c0_i32 = arith.constant 0 : i32
    %c0_i32_0 = arith.constant 0 : i32
    %c0_i32_1 = arith.constant 0 : i32
    return %c0_i32, %c0_i32_0 : i32, i32
  }
  func.func @transform_10(%arg0: i32) -> (i32, i32) {
    %c0_i32 = arith.constant 0 : i32
    %c0_i32_0 = arith.constant 0 : i32
    %c0_i32_1 = arith.constant 0 : i32
    return %c0_i32, %c0_i32_0 : i32, i32
  }
  func.func @transform_11(%arg0: i32) -> (i32, i32) {
    %c0_i32 = arith.constant 0 : i32
    %c0_i32_0 = arith.constant 0 : i32
    %c0_i32_1 = arith.constant 0 : i32
    return %c0_i32, %c0_i32_0 : i32, i32
  }
  func.func @transform_12(%arg0: i32) -> (i32, i32) {
    %c0_i32 = arith.constant 0 : i32
    %c0_i32_0 = arith.constant 0 : i32
    %c0_i32_1 = arith.constant 0 : i32
    return %c0_i32, %c0_i32_0 : i32, i32
  }
  func.func @transform_13(%arg0: i32) -> (i32, i32) {
    %c0_i32 = arith.constant 0 : i32
    %c0_i32_0 = arith.constant 0 : i32
    %c0_i32_1 = arith.constant 0 : i32
    return %c0_i32, %c0_i32_0 : i32, i32
  }
  func.func @transform_14(%arg0: i32) -> (i32, i32) {
    %c0_i32 = arith.constant 0 : i32
    %c0_i32_0 = arith.constant 0 : i32
    %c0_i32_1 = arith.constant 0 : i32
    return %c0_i32, %c0_i32_0 : i32, i32
  }
  func.func @transform_15(%arg0: i32) -> (i32, i32) {
    %c0_i32 = arith.constant 0 : i32
    %c0_i32_0 = arith.constant 0 : i32
    %c0_i32_1 = arith.constant 0 : i32
    return %c0_i32, %c0_i32_0 : i32, i32
  }
  func.func @transform_16(%arg0: i32) -> (i32, i32) {
    %c0_i32 = arith.constant 0 : i32
    %c0_i32_0 = arith.constant 0 : i32
    %c0_i32_1 = arith.constant 0 : i32
    return %c0_i32, %c0_i32_0 : i32, i32
  }
  func.func @transform_17(%arg0: i32) -> (i32, i32) {
    %c0_i32 = arith.constant 0 : i32
    %c0_i32_0 = arith.constant 0 : i32
    return %arg0, %c0_i32 : i32, i32
  }
}

</mosaic_0001>

<bundles_post_ra>
// kernel: tpu_custom_call.1
= control target key start
LH: loop header
LB: loop body
LE: loop exit
PB: predicated region body
PF: predicated region fallthrough
CT: control target
= control target key end

     0   :  { %6 = vsyncpa [#allocation3], 0  ;;  %s340_s0 = inlined_call_operand.hbm [shape: f32[8,128], index: 0, kind: input, shape index: {}]   ;;  %s341_s1 = inlined_call_operand.hbm [shape: f32[8,128], index: 1, kind: output, shape index: {}]  }
   0x1   :  { %7 = vsyncpa [#allocation4], 0  ;;  %s261_s6 = smov 0  }
   0x2 LB: > { %s144_s7 = sadd.s32 4294967295, %s247_s6   ;;  %p145_p0 = scmp.ge.s32.totalorder %s247_s6, 1  ;;  %s247_s6 = sphi %s261_s6, %s13_s6  }
   0x3   : > { %p60_p1 = scmp.lt.s32.totalorder %s247_s6, 3  ;;  %p275_p3 = scmp.eq.s32.totalorder %s144_s7, 0 }
   0x4   : > { %s249_s10 = smov [#allocation2]   ;;  %s179_s15 = scalar_lea.hbm %s340_s0, 128 }
   0x5   : > { %p269_p2 = pnand %p145_p0, %p60_p1  ;;  %s73_s11 = sshll.u32 %s249_s10, 4  ;;  %s74_s11 = int_to_ptr.vmem [resolvable:$true] %s73_s11 }
   0x6   : > { %s346_s9 = scalar_select %p275_p3, 1, 0 }
   0x7   : > { %s345_s8 = scalar_select %p269_p2, 1, 0 }
   0x8   : > { %p161_p4 = pneg %p269_p2  ;;  %p180_p6 = scmp.ne.s32.totalorder %s340_s0, %s179_s15 }
   0x9   : > { %p186_p10 = scmp.lt.u32.totalorder %s179_s15, %s340_s0 }
   0xa   : > { %p283_p5 = pnand %p275_p3, %p161_p4 }
   0xc   : > { %p181_p7 = pneg %p283_p5 }
   0xe   : > { %p182_p8 = pnand %p181_p7, %p180_p6 }
  0x10   : > { %p183_p9 = pneg %p182_p8 }
  0x12   : > { %p188_p11 = pnand %p186_p10, %p183_p9 }
  0x14   : > { %191 = shalt.err (!%p188_p11)
}
  0x15   : > { %s192_s20 = scalar_lea.vmem %s74_s11, 128  ;;  %p200_p1 = scmp.lt.s32.totalorder %s74_s11, %s74_s11 }
  0x16   : > { %p193_p12 = scmp.ne.s32.totalorder %s74_s11, %s192_s20  ;;  %p201_p4 = scmp.lt.s32.totalorder %s192_s20, %s192_s20 }
  0x18   : > { %p195_p13 = pnand %p193_p12, %p181_p7  ;;  %p202_p3 = por %p201_p4, %p200_p1 }
  0x1a   : > { %p196_p0 = pneg %p195_p13 }
  0x1c   : > { %p203_p2 = pnand %p202_p3, %p196_p0 }
  0x1e   : > { %206 = shalt.err (!%p203_p2)
}
  0x1f   : > { %164 = dma.hbm_to_vmem [thread:$0]  (!%p283_p5), %s340_s0, 128, %s74_s11, [#allocation3]  }
  0x20   : > { %p348_p6 = scmp.ne.s32.totalorder %s345_s8, 0 }
  0x21   : > { %p349_p8 = scmp.ne.s32.totalorder (!%p348_p6), %s346_s9, 0 }
  0x22   : > { %86 = sbr.rel (%p348_p6) target bundleno = 67 (0x43), region = 24 }
  0x29   : > { %238 = dma.done.wait (%p349_p8), [#allocation3], 128  }
  0x2a   : > { %240 = vsyncadd (%p349_p8), [#allocation3], 4294967168  ;;  %s250_s23 = smov [#allocation5]   ;;  %p311_p2 = scmp.eq.s32.totalorder %s144_s7, 1  ;;  %v96_v0 = vld [vmem:[#allocation2] sm:$0xff] }
  0x2b   : > { %s105_s24 = sshll.u32 %s250_s23, 4  ;;  %97 = vst [vmem:[#allocation5] sm:$0xff] %v96_v0  ;;  %s106_s24 = int_to_ptr.vmem [resolvable:$true] %s105_s24 }
  0x2c   : > { %s207_s26 = scalar_lea.vmem %s106_s24, 128  ;;  %p214_p9 = scmp.lt.s32.totalorder %s106_s24, %s106_s24 }
  0x2d   : > { %p208_p3 = scmp.ne.s32.totalorder %s106_s24, %s207_s26  ;;  %p215_p10 = scmp.lt.s32.totalorder %s207_s26, %s207_s26 }
  0x2f   : > { %p209_p5 = pnand %p208_p3, %p311_p2  ;;  %p216_p11 = por %p215_p10, %p214_p9 }
  0x31   : > { %p210_p7 = pneg %p209_p5 }
  0x33   : > { %p217_p12 = pnand %p216_p11, %p210_p7 }
  0x35   : > { %220 = shalt.err (!%p217_p12)
}
  0x36   : > { %s221_s29 = scalar_lea.hbm %s341_s1, 128 }
  0x37   : > { %p222_p13 = scmp.ne.s32.totalorder %s341_s1, %s221_s29  ;;  %p227_p4 = scmp.lt.u32.totalorder %s221_s29, %s341_s1 }
  0x39   : > { %p223_p0 = pnand %p222_p13, %p311_p2 }
  0x3b   : > { %p224_p1 = pneg %p223_p0 }
  0x3d   : > { %p229_p6 = pnand %p227_p4, %p224_p1 }
  0x3f   : > { %232 = shalt.err (!%p229_p6)
}
  0x40   : > { %158 = dma.vmem_to_hbm [thread:$0]  (%p311_p2), %s106_s24, 128, %s341_s1, [#allocation4]  }
  0x41   : > { %242 = dma.done.wait (%p311_p2), [#allocation4], 128  }
  0x42   : > { %244 = vsyncadd (%p311_p2), [#allocation4], 4294967168 }
  0x43 PF: > { %s13_s6 = sadd.s32 1, %s247_s6  }
  0x44   : > { %p10_p8 = scmp.ge.s32.totalorder %s13_s6, 4  }
  0x46   :  { %12 = sbr.rel (!%p10_p8) target bundleno = 2 (0x2), region = 53 }
  0x4d   :  { %118 = vsyncpa [#allocation3], 1 }
  0x4e   :  { %120 = vsyncpa [#allocation3 + $0x1], 1 }
  0x4f   :  { %121 = vsyncpa [#allocation4], 1 }
  0x50   :  { %123 = vsyncpa [#allocation4 + $0x1], 1 }

// kernel: robust_forward_jit.1
= control target key start
LH: loop header
LB: loop body
LE: loop exit
PB: predicated region body
PF: predicated region fallthrough
CT: control target
= control target key end

     0   :  { %s13444_s0 = inlined_call_operand.vmem [shape: f32[256,600], index: 0, kind: input, shape index: {}]   ;;  %s13445_s1 = inlined_call_operand.vmem [shape: bf16[600,1024], index: 1, kind: input, shape index: {}]   ;;  %s13446_s2 = inlined_call_operand.vmem [shape: f32[1,1024], index: 2, kind: input, shape index: {}]   ;;  %s13447_s3 = inlined_call_operand.hbm [shape: bf16[1024,512], index: 3, kind: input, shape index: {}]   ;;  %s13448_s4 = inlined_call_operand.vmem [shape: f32[1,512], index: 4, kind: input, shape index: {}]   ;;  %s13449_s5 = inlined_call_operand.hbm [shape: bf16[512,256], index: 5, kind: input, shape index: {}]   ;;  %s13450_s6 = inlined_call_operand.vmem [shape: f32[1,256], index: 6, kind: input, shape index: {}]   ;;  %s13451_s7 = inlined_call_operand.vmem [shape: bf16[256,128], index: 7, kind: input, shape index: {}]   ;;  %s13452_s8 = inlined_call_operand.vmem [shape: f32[1,128], index: 8, kind: input, shape index: {}]   ;;  %s13453_s9 = inlined_call_operand.vmem [shape: bf16[128,128], index: 9, kind: input, shape index: {}]   ;;  %s13454_s10 = inlined_call_operand.vmem [shape: f32[1,128], index: 10, kind: input, shape index: {}]   ;;  %s13455_s11 = inlined_call_operand.vmem [shape: bf16[128,128], index: 11, kind: input, shape index: {}]   ;;  %s13456_s12 = inlined_call_operand.vmem [shape: f32[1,128], index: 12, kind: input, shape index: {}]   ;;  %s13457_s13 = inlined_call_operand.vmem [shape: bf16[128,64], index: 13, kind: input, shape index: {}]   ;;  %s13458_s14 = inlined_call_operand.vmem [shape: f32[1,64], index: 14, kind: input, shape index: {}]   ;;  %s13459_s15 = inlined_call_operand.vmem [shape: f32[64,2], index: 15, kind: input, shape index: {}]   ;;  %s13460_s16 = inlined_call_operand.vmem [shape: f32[1,2], index: 16, kind: input, shape index: {}]   ;;  %s13461_s17 = inlined_call_operand.vmem [shape: f32[256,2], index: 17, kind: output, shape index: {}]  }
   0x1   :  { %13467 = sst [smem:[#allocation8_spill]] %s13444_s0 }
   0x2   :  { %13468 = sst [smem:[#allocation9_spill]] %s13445_s1 }
   0x3   :  { %13469 = sst [smem:[#allocation10_spill]] %s13460_s16 }
   0x4   :  { %13470 = sst [smem:[#allocation11_spill]] %s13461_s17 }
   0x5   :  { %22 = vsyncpa [#allocation3], 0 }
   0x6   :  { %23 = vsyncpa [#allocation5], 0  ;;  %s11156_s24 = smov 0  }
   0x7 LB: > { %s11059_s25 = smov [#allocation2]   ;;  %s13466_s27 = sadd.s32 4294967295, %s11057_s24   ;;  %s11057_s24 = sphi %s11156_s24, %s29_s24  }
   0x8   : > { %s440_s26 = sshll.u32 %s11059_s25, 4  ;;  %p8665_p0 = scmp.ge.s32.totalorder %s11057_s24, 1  ;;  %s441_s26 = int_to_ptr.vmem [resolvable:$true] %s440_s26 }
   0x9   : > { %p422_p1 = scmp.lt.s32.totalorder %s11057_s24, 3  ;;  %p11170_p3 = scmp.eq.s32.totalorder %s13466_s27, 0 }
   0xa   : > { %s11060_s0 = smov [#allocation4]   ;;  %s10987_s20 = scalar_lea.hbm %s13447_s3, 32768 }
   0xb   : > { %p11164_p2 = pnand %p8665_p0, %p422_p1  ;;  %s456_s30 = sshll.u32 %s11060_s0, 4  ;;  %s11182_s30 = int_to_ptr.vmem [resolvable:$true] %s456_s30 }
   0xc   : > { %s13472_s29 = scalar_select %p11170_p3, 1, 0 }
   0xd   : > { %s13471_s28 = scalar_select %p11164_p2, 1, 0 }
   0xe   : > { %p10400_p4 = pneg %p11164_p2  ;;  %p10988_p6 = scmp.ne.s32.totalorder %s13447_s3, %s10987_s20 }
   0xf   : > { %p10994_p10 = scmp.lt.u32.totalorder %s10987_s20, %s13447_s3 }
  0x10   : > { %p11178_p5 = pnand %p11170_p3, %p10400_p4 }
  0x12   : > { %p10989_p7 = pneg %p11178_p5 }
  0x14   : > { %p10990_p8 = pnand %p10989_p7, %p10988_p6 }
  0x16   : > { %p10991_p9 = pneg %p10990_p8 }
  0x18   : > { %p10996_p11 = pnand %p10994_p10, %p10991_p9 }
  0x1a   : > { %10999 = shalt.err (!%p10996_p11)
}
  0x1b   : > { %s11000_s0 = scalar_lea.vmem %s441_s26, 32768  ;;  %p11008_p1 = scmp.lt.s32.totalorder %s441_s26, %s441_s26 }
  0x1c   : > { %p11001_p12 = scmp.ne.s32.totalorder %s441_s26, %s11000_s0  ;;  %p11009_p4 = scmp.lt.s32.totalorder %s11000_s0, %s11000_s0 }
  0x1e   : > { %p11003_p13 = pnand %p11001_p12, %p10989_p7  ;;  %p11010_p3 = por %p11009_p4, %p11008_p1 }
  0x20   : > { %p11004_p0 = pneg %p11003_p13 }
  0x22   : > { %p11011_p2 = pnand %p11010_p3, %p11004_p0 }
  0x24   : > { %11014 = shalt.err (!%p11011_p2)
}
  0x25   : > { %s11061_s19 = smov 256   ;;  %s11062_s1 = smov 16  }
  0x26   : > { %10403 = dma.hbm_to_vmem [thread:$0]  (!%p11178_p5), %s13447_s3, 32768, %s441_s26, [#allocation3], %s11061_s19, %s11061_s19, %s11062_s1  }
  0x27   : > { %s11015_s25 = scalar_lea.hbm %s13449_s5, 8192 }
  0x28   : > { %p11016_p6 = scmp.ne.s32.totalorder %s13449_s5, %s11015_s25  ;;  %p11022_p8 = scmp.lt.u32.totalorder %s11015_s25, %s13449_s5 }
  0x2a   : > { %p11018_p2 = pnand %p11016_p6, %p10989_p7 }
  0x2c   : > { %p11019_p3 = pneg %p11018_p2 }
  0x2e   : > { %p11024_p9 = pnand %p11022_p8, %p11019_p3 }
  0x30   : > { %11027 = shalt.err (!%p11024_p9)
}
  0x31   : > { %s11028_s26 = scalar_lea.vmem %s11182_s30, 8192  ;;  %p11036_p13 = scmp.lt.s32.totalorder %s11182_s30, %s11182_s30 }
  0x32   : > { %p11029_p10 = scmp.ne.s32.totalorder %s11182_s30, %s11028_s26  ;;  %p11037_p0 = scmp.lt.s32.totalorder %s11028_s26, %s11028_s26 }
  0x34   : > { %p11031_p11 = pnand %p11029_p10, %p10989_p7  ;;  %p11038_p1 = por %p11037_p0, %p11036_p13 }
  0x36   : > { %p11032_p12 = pneg %p11031_p11 }
  0x38   : > { %p11039_p4 = pnand %p11038_p1, %p11032_p12 }
  0x3a   : > { %11042 = shalt.err (!%p11039_p4)
}
  0x3b   : > { %s11063_s16 = smov 128   ;;  %s11064_s17 = smov 8  }
  0x3c   : > { %10406 = dma.hbm_to_vmem [thread:$0]  (!%p11178_p5), %s13449_s5, 8192, %s11182_s30, [#allocation5], %s11063_s16, %s11063_s16, %s11064_s17  }
  0x3d   : > { %p13474_p6 = scmp.ne.s32.totalorder %s13471_s28, 0 }
  0x3e   : > { %p13475_p7 = scmp.ne.s32.totalorder (!%p13474_p6), %s13472_s29, 0 }
  0x3f   : > { %515 = sbr.rel (%p13474_p6) target bundleno = 2731 (0xaab), region = 88 }
  0x46   : > { %11048 = dma.done.wait (%p13475_p7), [#allocation3], 32768  }
  0x47   : > { %11050 = vsyncadd (%p13475_p7), [#allocation3], 4294934528 }
  0x48   : > { %11052 = dma.done.wait (%p13475_p7), [#allocation5], 8192  }
  0x49   : > { %11054 = vsyncadd (%p13475_p7), [#allocation5], 4294959104  ;;  %s13476_s20 = sld [smem:[#allocation9_spill]]  ;;  %s13477_s0 = sadd.s32 4294967295, %s11057_s24   ;;  %vm2573_vm0 = vcmask 1043456   ;;  %vm2548_vm1 = vcmask 719872  }
  0x4a   : > { %s8672_s26 = sshll.u32 %s13477_s0, 4  ;;  %s13478_s19 = sld [smem:[#allocation8_spill]]  ;;  %vm8374_vm2 = vcmask 523264   ;;  %vm8568_vm3 = vcmask 15360  }
  0x4b   : > { %p573_p5 = scmp.lt.s32.totalorder %s8672_s26, 31  ;;  %s13479_s23 = sld [smem:[#allocation10_spill]] }
  0x4c   : > { %s13480_s0 = sld [smem:[#allocation11_spill]] }
  0x4d   : > { %s13482_s26 = smov (!%p573_p5, %s8672_s26), 31 }
  0x4e   : > { %s10391_s30 = smul.u32 40, %s13482_s26  ;;  %s8675_s28 = sshll.u32 %s13482_s26, 3 }
  0x4f   : > { %v706_v0 = vld [vmem:[%s13476_s20] sm:$0xff]  ;;  %v707_v2 = vld [vmem:[%s13476_s20 + $0x8] sm:$0xff] }
  0x50   : > { %v710_v1 = vld [vmem:[%s13476_s20 + $0x20] sm:$0xff]  ;;  %v711_v4 = vld [vmem:[%s13476_s20 + $0x28] sm:$0xff]  ;;  %s11327_s18 = scalar_lea.vmem %s13478_s19, %s10391_s30 }
  0x51   : > { %v8677_v3 = vcombine.high %v706_v0, %v710_v1  ;;  %v8676_v5 = vcombine.low %v706_v0, %v710_v1  ;;  %v714_v6 = vld [vmem:[%s13476_s20 + $0x40] sm:$0xff]  ;;  %v8679_v8 = vcombine.high %v707_v2, %v711_v4  ;;  %v8678_v9 = vcombine.low %v707_v2, %v711_v4  ;;  %v715_v11 = vld [vmem:[%s13476_s20 + $0x48] sm:$0xff]  ;;  %v592_v54 = vld [vmem:[%s11327_s18 + $0x30] sm:$0xff] }
  0x52   : > { %v718_v7 = vld [vmem:[%s13476_s20 + $0x60] sm:$0xff]  ;;  %v719_v12 = vld [vmem:[%s13476_s20 + $0x68] sm:$0xff]  ;;  %s13407_s16 = scalar_lea.vmem %s13480_s0, %s8675_s28 }
  0x53   : > { %v8685_v10 = vcombine.high %v714_v6, %v718_v7  ;;  %v722_v13 = vld [vmem:[%s13476_s20 + $0x80] sm:$0xff]  ;;  %2598 = vmatprep.subr.bf16.mxu0 %v8677_v3  ;;  %v8687_v14 = vcombine.high %v715_v11, %v719_v12  ;;  %v723_v16 = vld [vmem:[%s13476_s20 + $0x88] sm:$0xff]  ;;  %2937 = vmatprep.subr.bf16.mxu1 %v8679_v8  ;;  %v8684_v18 = vcombine.low %v714_v6, %v718_v7 }
  0x54   : > { %v726_v15 = vld [vmem:[%s13476_s20 + $0xa0] sm:$0xff]  ;;  %v727_v17 = vld [vmem:[%s13476_s20 + $0xa8] sm:$0xff]  ;;  %2599 = vmatpush1.bf16.msra.mxu0 %v8676_v5  ;;  %2938 = vmatpush1.bf16.msra.mxu1 %v8678_v9  ;;  %v8686_v19 = vcombine.low %v715_v11, %v719_v12 }
  0x55   : > { %2600 = vmatprep.subr.bf16.mxu0 %v8685_v10  ;;  %v8693_v20 = vcombine.high %v722_v13, %v726_v15  ;;  %2939 = vmatprep.subr.bf16.mxu1 %v8687_v14  ;;  %v8695_v21 = vcombine.high %v723_v16, %v727_v17  ;;  %v730_v22 = vld [vmem:[%s13476_s20 + $0xc0] sm:$0xff]  ;;  %v731_v24 = vld [vmem:[%s13476_s20 + $0xc8] sm:$0xff]  ;;  %v8692_v26 = vcombine.low %v722_v13, %v726_v15 }
  0x56   : > { %v734_v23 = vld [vmem:[%s13476_s20 + $0xe0] sm:$0xff]  ;;  %v735_v25 = vld [vmem:[%s13476_s20 + $0xe8] sm:$0xff]  ;;  %v8694_v27 = vcombine.low %v723_v16, %v727_v17 }
  0x57   : > { %v8701_v28 = vcombine.high %v730_v22, %v734_v23  ;;  %v8703_v29 = vcombine.high %v731_v24, %v735_v25  ;;  %v738_v30 = vld [vmem:[%s13476_s20 + $0x100] sm:$0xff]  ;;  %v739_v32 = vld [vmem:[%s13476_s20 + $0x108] sm:$0xff]  ;;  %v8700_v34 = vcombine.low %v730_v22, %v734_v23  ;;  %v8702_v35 = vcombine.low %v731_v24, %v735_v25 }
  0x58   : > { %2601 = vmatpush1.bf16.msra.mxu0 %v8684_v18  ;;  %2940 = vmatpush1.bf16.msra.mxu1 %v8686_v19  ;;  %v742_v31 = vld [vmem:[%s13476_s20 + $0x120] sm:$0xff]  ;;  %v743_v33 = vld [vmem:[%s13476_s20 + $0x128] sm:$0xff] }
  0x59   : > { %2602 = vmatprep.subr.bf16.mxu0 %v8693_v20  ;;  %2941 = vmatprep.subr.bf16.mxu1 %v8695_v21  ;;  %v8709_v36 = vcombine.high %v738_v30, %v742_v31  ;;  %v8711_v37 = vcombine.high %v739_v32, %v743_v33  ;;  %v746_v38 = vld [vmem:[%s13476_s20 + $0x140] sm:$0xff]  ;;  %v747_v40 = vld [vmem:[%s13476_s20 + $0x148] sm:$0xff]  ;;  %v8708_v42 = vcombine.low %v738_v30, %v742_v31 }
  0x5a   : > { %v750_v39 = vld [vmem:[%s13476_s20 + $0x160] sm:$0xff]  ;;  %v751_v41 = vld [vmem:[%s13476_s20 + $0x168] sm:$0xff]  ;;  %v8710_v43 = vcombine.low %v739_v32, %v743_v33 }
  0x5b   : > { %v8717_v44 = vcombine.high %v746_v38, %v750_v39  ;;  %v8719_v45 = vcombine.high %v747_v40, %v751_v41  ;;  %v754_v46 = vld [vmem:[%s13476_s20 + $0x180] sm:$0xff]  ;;  %v755_v48 = vld [vmem:[%s13476_s20 + $0x188] sm:$0xff]  ;;  %v8716_v50 = vcombine.low %v746_v38, %v750_v39  ;;  %v8718_v51 = vcombine.low %v747_v40, %v751_v41 }
  0x5c   : > { %2603 = vmatpush1.bf16.msra.mxu0 %v8692_v26  ;;  %2942 = vmatpush1.bf16.msra.mxu1 %v8694_v27  ;;  %v758_v47 = vld [vmem:[%s13476_s20 + $0x1a0] sm:$0xff]  ;;  %v759_v49 = vld [vmem:[%s13476_s20 + $0x1a8] sm:$0xff] }
  0x5d   : > { %2604 = vmatprep.subr.bf16.mxu0 %v8701_v28  ;;  %2943 = vmatprep.subr.bf16.mxu1 %v8703_v29  ;;  %v8725_v52 = vcombine.high %v754_v46, %v758_v47  ;;  %v587_v53 = vld [vmem:[%s11327_s18 + $0x8] sm:$0xff]  ;;  %v8727_v55 = vcombine.high %v755_v48, %v759_v49  ;;  %v762_v56 = vld [vmem:[%s13476_s20 + $0x1c0] sm:$0xff]  ;;  %v8724_v61 = vcombine.low %v754_v46, %v758_v47 }
  0x5e   : > { %v766_v57 = vld [vmem:[%s13476_s20 + $0x1e0] sm:$0xff]  ;;  %v11343_v58 = vpack.c.bf16 %v592_v54, %v587_v53  ;;  %v763_v59 = vld [vmem:[%s13476_s20 + $0x1c8] sm:$0xff]  ;;  %v8726_v62 = vcombine.low %v755_v48, %v759_v49 }
  0x5f   : > { %v767_v60 = vld [vmem:[%s13476_s20 + $0x1e8] sm:$0xff]  ;;  %v8733_v63 = vcombine.high %v762_v56, %v766_v57  ;;  %v770_v1 = vld [vmem:[%s13476_s20 + $0x200] sm:$0xff]  ;;  %v8732_v5 = vcombine.low %v762_v56, %v766_v57 }
  0x60   : > { %2605 = vmatpush1.bf16.msra.mxu0 %v8700_v34  ;;  %2944 = vmatpush1.bf16.msra.mxu1 %v8702_v35  ;;  %v8735_v0 = vcombine.high %v763_v59, %v767_v60  ;;  %v774_v2 = vld [vmem:[%s13476_s20 + $0x220] sm:$0xff]  ;;  %v771_v3 = vld [vmem:[%s13476_s20 + $0x208] sm:$0xff]  ;;  %v8734_v6 = vcombine.low %v763_v59, %v767_v60 }
  0x61   : > { %2606 = vmatprep.subr.bf16.mxu0 %v8709_v36  ;;  %2945 = vmatprep.subr.bf16.mxu1 %v8711_v37  ;;  %v775_v4 = vld [vmem:[%s13476_s20 + $0x228] sm:$0xff]  ;;  %v8741_v7 = vcombine.high %v770_v1, %v774_v2  ;;  %v778_v9 = vld [vmem:[%s13476_s20 + $0x240] sm:$0xff]  ;;  %v8740_v13 = vcombine.low %v770_v1, %v774_v2 }
  0x62   : > { %2630 = vmatprep.mubr.bf16.mxu0 %v11343_v58  ;;  %2969 = vmatprep.mubr.bf16.mxu1 %v11343_v58  ;;  %v8743_v8 = vcombine.high %v771_v3, %v775_v4  ;;  %v782_v10 = vld [vmem:[%s13476_s20 + $0x260] sm:$0xff]  ;;  %v779_v11 = vld [vmem:[%s13476_s20 + $0x248] sm:$0xff]  ;;  %v8742_v14 = vcombine.low %v771_v3, %v775_v4 }
  0x63   : > { %v783_v12 = vld [vmem:[%s13476_s20 + $0x268] sm:$0xff]  ;;  %v8749_v15 = vcombine.high %v778_v9, %v782_v10  ;;  %v786_v17 = vld [vmem:[%s13476_s20 + $0x280] sm:$0xff]  ;;  %v8748_v21 = vcombine.low %v778_v9, %v782_v10 }
  0x64   : > { %2607 = vmatpush1.bf16.msra.mxu0 %v8708_v42  ;;  %2946 = vmatpush1.bf16.msra.mxu1 %v8710_v43  ;;  %v8751_v16 = vcombine.high %v779_v11, %v783_v12  ;;  %v790_v18 = vld [vmem:[%s13476_s20 + $0x2a0] sm:$0xff]  ;;  %v787_v19 = vld [vmem:[%s13476_s20 + $0x288] sm:$0xff]  ;;  %v8750_v22 = vcombine.low %v779_v11, %v783_v12 }
  0x65   : > { %2608 = vmatprep.subr.bf16.mxu0 %v8717_v44  ;;  %2947 = vmatprep.subr.bf16.mxu1 %v8719_v45  ;;  %v791_v20 = vld [vmem:[%s13476_s20 + $0x2a8] sm:$0xff]  ;;  %v8757_v23 = vcombine.high %v786_v17, %v790_v18  ;;  %v794_v25 = vld [vmem:[%s13476_s20 + $0x2c0] sm:$0xff]  ;;  %v8756_v29 = vcombine.low %v786_v17, %v790_v18  ;;  %v597_v17 = vld [vmem:[%s11327_s18 + $0x58] sm:$0xff] }
  0x66   : > { %v8759_v24 = vcombine.high %v787_v19, %v791_v20  ;;  %v798_v26 = vld [vmem:[%s13476_s20 + $0x2e0] sm:$0xff]  ;;  %v795_v27 = vld [vmem:[%s13476_s20 + $0x2c8] sm:$0xff]  ;;  %v8758_v30 = vcombine.low %v787_v19, %v791_v20 }
  0x67   : > { %v799_v28 = vld [vmem:[%s13476_s20 + $0x2e8] sm:$0xff]  ;;  %v8765_v31 = vcombine.high %v794_v25, %v798_v26  ;;  %v802_v33 = vld [vmem:[%s13476_s20 + $0x300] sm:$0xff]  ;;  %v8764_v37 = vcombine.low %v794_v25, %v798_v26 }
  0x68   : > { %2609 = vmatpush1.bf16.msra.mxu0 %v8716_v50  ;;  %2948 = vmatpush1.bf16.msra.mxu1 %v8718_v51  ;;  %v8767_v32 = vcombine.high %v795_v27, %v799_v28  ;;  %v806_v34 = vld [vmem:[%s13476_s20 + $0x320] sm:$0xff]  ;;  %v803_v35 = vld [vmem:[%s13476_s20 + $0x308] sm:$0xff]  ;;  %v8766_v38 = vcombine.low %v795_v27, %v799_v28 }
  0x69   : > { %2610 = vmatprep.subr.bf16.mxu0 %v8725_v52  ;;  %2949 = vmatprep.subr.bf16.mxu1 %v8727_v55  ;;  %v807_v36 = vld [vmem:[%s13476_s20 + $0x328] sm:$0xff]  ;;  %v8773_v39 = vcombine.high %v802_v33, %v806_v34  ;;  %v810_v41 = vld [vmem:[%s13476_s20 + $0x340] sm:$0xff]  ;;  %v8772_v45 = vcombine.low %v802_v33, %v806_v34 }
  0x6a   : > { %v8775_v40 = vcombine.high %v803_v35, %v807_v36  ;;  %v814_v42 = vld [vmem:[%s13476_s20 + $0x360] sm:$0xff]  ;;  %v811_v43 = vld [vmem:[%s13476_s20 + $0x348] sm:$0xff]  ;;  %v8774_v46 = vcombine.low %v803_v35, %v807_v36 }
  0x6b   : > { %v815_v44 = vld [vmem:[%s13476_s20 + $0x368] sm:$0xff]  ;;  %v8781_v47 = vcombine.high %v810_v41, %v814_v42  ;;  %v818_v49 = vld [vmem:[%s13476_s20 + $0x380] sm:$0xff]  ;;  %v8780_v53 = vcombine.low %v810_v41, %v814_v42 }
  0x6c   : > { %2611 = vmatpush1.bf16.msra.mxu0 %v8724_v61  ;;  %2950 = vmatpush1.bf16.msra.mxu1 %v8726_v62  ;;  %v8783_v48 = vcombine.high %v811_v43, %v815_v44  ;;  %v822_v50 = vld [vmem:[%s13476_s20 + $0x3a0] sm:$0xff]  ;;  %v819_v51 = vld [vmem:[%s13476_s20 + $0x388] sm:$0xff]  ;;  %v8782_v54 = vcombine.low %v811_v43, %v815_v44 }
  0x6d   : > { %2612 = vmatprep.subr.bf16.mxu0 %v8733_v63  ;;  %2951 = vmatprep.subr.bf16.mxu1 %v8735_v0  ;;  %v823_v52 = vld [vmem:[%s13476_s20 + $0x3a8] sm:$0xff]  ;;  %v8789_v55 = vcombine.high %v818_v49, %v822_v50  ;;  %v826_v57 = vld [vmem:[%s13476_s20 + $0x3c0] sm:$0xff]  ;;  %v8788_v62 = vcombine.low %v818_v49, %v822_v50 }
  0x6e   : > { %v8791_v56 = vcombine.high %v819_v51, %v823_v52  ;;  %v830_v59 = vld [vmem:[%s13476_s20 + $0x3e0] sm:$0xff]  ;;  %v827_v60 = vld [vmem:[%s13476_s20 + $0x3c8] sm:$0xff]  ;;  %v8790_v63 = vcombine.low %v819_v51, %v823_v52 }
  0x6f   : > { %v831_v61 = vld [vmem:[%s13476_s20 + $0x3e8] sm:$0xff]  ;;  %v8797_v0 = vcombine.high %v826_v57, %v830_v59  ;;  %v834_v2 = vld [vmem:[%s13476_s20 + $0x400] sm:$0xff] }
  0x70   : > { %2613 = vmatpush1.bf16.msra.mxu0 %v8732_v5  ;;  %2952 = vmatpush1.bf16.msra.mxu1 %v8734_v6  ;;  %v8799_v1 = vcombine.high %v827_v60, %v831_v61  ;;  %v838_v3 = vld [vmem:[%s13476_s20 + $0x420] sm:$0xff]  ;;  %v835_v4 = vld [vmem:[%s13476_s20 + $0x408] sm:$0xff]  ;;  %v8796_v6 = vcombine.low %v826_v57, %v830_v59  ;;  %v8798_v9 = vcombine.low %v827_v60, %v831_v61  ;;  %v617_v60 = vld [vmem:[%s11327_s18 + $0xf8] sm:$0xff] }
  0x71   : > { %2614 = vmatprep.subr.bf16.mxu0 %v8741_v7  ;;  %2953 = vmatprep.subr.bf16.mxu1 %v8743_v8  ;;  %v839_v5 = vld [vmem:[%s13476_s20 + $0x428] sm:$0xff]  ;;  %v586_v7 = vld [vmem:[%s11327_s18] sm:$0xff]  ;;  %v8805_v10 = vcombine.high %v834_v2, %v838_v3  ;;  %v8804_v19 = vcombine.low %v834_v2, %v838_v3 }
  0x72   : > { %v591_v8 = vld [vmem:[%s11327_s18 + $0x28] sm:$0xff]  ;;  %v8807_v11 = vcombine.high %v835_v4, %v839_v5  ;;  %v842_v12 = vld [vmem:[%s13476_s20 + $0x440] sm:$0xff]  ;;  %v8806_v20 = vcombine.low %v835_v4, %v839_v5 }
  0x73   : > { %v602_v18 = vld [vmem:[%s11327_s18 + $0x80] sm:$0xff]  ;;  %v851_v26 = vld [vmem:[%s13476_s20 + $0x488] sm:$0xff] }
  0x74   : > { %2615 = vmatpush1.bf16.msra.mxu0 %v8740_v13  ;;  %2954 = vmatpush1.bf16.msra.mxu1 %v8742_v14  ;;  %v846_v13 = vld [vmem:[%s13476_s20 + $0x460] sm:$0xff]  ;;  %v843_v14 = vld [vmem:[%s13476_s20 + $0x448] sm:$0xff] }
  0x75   : > { %2616 = vmatprep.subr.bf16.mxu0 %v8749_v15  ;;  %2955 = vmatprep.subr.bf16.mxu1 %v8751_v16  ;;  %v11472_v15 = vpack.c.bf16 %v591_v8, %v586_v7  ;;  %v847_v16 = vld [vmem:[%s13476_s20 + $0x468] sm:$0xff]  ;;  %v854_v25 = vld [vmem:[%s13476_s20 + $0x4a0] sm:$0xff]  ;;  %v8812_v28 = vcombine.low %v842_v12, %v846_v13  ;;  %v621_v7 = vld [vmem:[%s11327_s18 + $0x118] sm:$0xff] }
  0x76   : > { %v855_v27 = vld [vmem:[%s13476_s20 + $0x4a8] sm:$0xff]  ;;  %v858_v34 = vld [vmem:[%s13476_s20 + $0x4c0] sm:$0xff] }
  0x77   : > { %v8823_v33 = vcombine.high %v851_v26, %v855_v27  ;;  %v862_v35 = vld [vmem:[%s13476_s20 + $0x4e0] sm:$0xff]  ;;  %v859_v36 = vld [vmem:[%s13476_s20 + $0x4c8] sm:$0xff]  ;;  %v8822_v42 = vcombine.low %v851_v26, %v855_v27 }
  0x78   : > { %2617 = vmatpush1.bf16.msra.mxu0 %v8748_v21  ;;  %2956 = vmatpush1.bf16.msra.mxu1 %v8750_v22  ;;  %v8813_v21 = vcombine.high %v842_v12, %v846_v13  ;;  %v8815_v22 = vcombine.high %v843_v14, %v847_v16  ;;  %v8829_v43 = vcombine.high %v858_v34, %v862_v35  ;;  %v611_v49 = vld [vmem:[%s11327_s18 + $0xc8] sm:$0xff]  ;;  %v882_v3 = vld [vmem:[%s13476_s20 + $0x580] sm:$0xff] }
  0x79   : > { %2618 = vmatprep.subr.bf16.mxu0 %v8757_v23  ;;  %2957 = vmatprep.subr.bf16.mxu1 %v8759_v24  ;;  %v11479_v23 = vpack.c.bf16 %v602_v18, %v597_v17  ;;  %v850_v24 = vld [vmem:[%s13476_s20 + $0x480] sm:$0xff]  ;;  %v867_v50 = vld [vmem:[%s13476_s20 + $0x508] sm:$0xff]  ;;  %v8828_v52 = vcombine.low %v858_v34, %v862_v35 }
  0x7a   : > { %v8820_v41 = vcombine.low %v850_v24, %v854_v25  ;;  %v871_v51 = vld [vmem:[%s13476_s20 + $0x528] sm:$0xff]  ;;  %v886_v8 = vld [vmem:[%s13476_s20 + $0x5a0] sm:$0xff] }
  0x7b   : > { %v875_v57 = vld [vmem:[%s13476_s20 + $0x548] sm:$0xff]  ;;  %v8839_v61 = vcombine.high %v867_v50, %v871_v51  ;;  %v890_v12 = vld [vmem:[%s13476_s20 + $0x5c0] sm:$0xff] }
  0x7c   : > { %2619 = vmatpush1.bf16.msra.mxu0 %v8756_v29  ;;  %2958 = vmatpush1.bf16.msra.mxu1 %v8758_v30  ;;  %v596_v29 = vld [vmem:[%s11327_s18 + $0x50] sm:$0xff]  ;;  %v601_v30 = vld [vmem:[%s11327_s18 + $0x78] sm:$0xff]  ;;  %v879_v59 = vld [vmem:[%s13476_s20 + $0x568] sm:$0xff] }
  0x7d   : > { %2620 = vmatprep.subr.bf16.mxu0 %v8765_v31  ;;  %2959 = vmatprep.subr.bf16.mxu1 %v8767_v32  ;;  %v8814_v31 = vcombine.low %v843_v14, %v847_v16  ;;  %v8821_v32 = vcombine.high %v850_v24, %v854_v25  ;;  %v8847_v4 = vcombine.high %v875_v57, %v879_v59  ;;  %v894_v13 = vld [vmem:[%s13476_s20 + $0x5e0] sm:$0xff]  ;;  %v891_v17 = vld [vmem:[%s13476_s20 + $0x5c8] sm:$0xff] }
  0x7e   : > { %v8846_v14 = vcombine.low %v875_v57, %v879_v59  ;;  %v8853_v16 = vcombine.high %v882_v3, %v886_v8  ;;  %v895_v18 = vld [vmem:[%s13476_s20 + $0x5e8] sm:$0xff]  ;;  %v8852_v24 = vcombine.low %v882_v3, %v886_v8  ;;  %v8861_v26 = vcombine.high %v890_v12, %v894_v13  ;;  %v898_v27 = vld [vmem:[%s13476_s20 + $0x600] sm:$0xff] }
  0x7f   : > { %v903_v34 = vld [vmem:[%s13476_s20 + $0x628] sm:$0xff]  ;;  %v8860_v35 = vcombine.low %v890_v12, %v894_v13  ;;  %v930_v12 = vld [vmem:[%s13476_s20 + $0x700] sm:$0xff] }
  0x80   : > { %2621 = vmatpush1.bf16.msra.mxu0 %v8764_v37  ;;  %2960 = vmatpush1.bf16.msra.mxu1 %v8766_v38  ;;  %v11508_v37 = vpack.c.bf16 %v601_v30, %v596_v29  ;;  %v863_v38 = vld [vmem:[%s13476_s20 + $0x4e8] sm:$0xff]  ;;  %v626_v30 = vld [vmem:[%s11327_s18 + $0x140] sm:$0xff] }
  0x81   : > { %2622 = vmatprep.subr.bf16.mxu0 %v8773_v39  ;;  %2961 = vmatprep.subr.bf16.mxu1 %v8775_v40  ;;  %v607_v39 = vld [vmem:[%s11327_s18 + $0xa8] sm:$0xff]  ;;  %v612_v40 = vld [vmem:[%s11327_s18 + $0xd0] sm:$0xff]  ;;  %v8831_v44 = vcombine.high %v859_v36, %v863_v38 }
  0x82   : > { %v915_v57 = vld [vmem:[%s13476_s20 + $0x688] sm:$0xff] }
  0x83   : > { %v919_v59 = vld [vmem:[%s13476_s20 + $0x6a8] sm:$0xff] }
  0x84   : > { %2623 = vmatpush1.bf16.msra.mxu0 %v8772_v45  ;;  %2962 = vmatpush1.bf16.msra.mxu1 %v8774_v46  ;;  %v11515_v45 = vpack.c.bf16 %v612_v40, %v607_v39  ;;  %v606_v46 = vld [vmem:[%s11327_s18 + $0xa0] sm:$0xff]  ;;  %v8862_v39 = vcombine.low %v891_v17, %v895_v18  ;;  %v927_v3 = vld [vmem:[%s13476_s20 + $0x6e8] sm:$0xff] }
  0x85   : > { %2624 = vmatprep.subr.bf16.mxu0 %v8781_v47  ;;  %2963 = vmatprep.subr.bf16.mxu1 %v8783_v48  ;;  %v866_v47 = vld [vmem:[%s13476_s20 + $0x500] sm:$0xff] }
  0x86   : > { %v870_v48 = vld [vmem:[%s13476_s20 + $0x520] sm:$0xff] }
  0x88   : > { %2625 = vmatpush1.bf16.msra.mxu0 %v8780_v53  ;;  %2964 = vmatpush1.bf16.msra.mxu1 %v8782_v54  ;;  %v874_v53 = vld [vmem:[%s13476_s20 + $0x540] sm:$0xff] }
  0x89   : > { %2626 = vmatprep.subr.bf16.mxu0 %v8789_v55  ;;  %2965 = vmatprep.subr.bf16.mxu1 %v8791_v56  ;;  %v878_v54 = vld [vmem:[%s13476_s20 + $0x560] sm:$0xff]  ;;  %v8830_v55 = vcombine.low %v859_v36, %v863_v38  ;;  %v8837_v56 = vcombine.high %v866_v47, %v870_v48 }
  0x8a   : > { %v8845_v2 = vcombine.high %v874_v53, %v878_v54  ;;  %v906_v36 = vld [vmem:[%s13476_s20 + $0x640] sm:$0xff] }
  0x8b   : > { %v910_v38 = vld [vmem:[%s13476_s20 + $0x660] sm:$0xff] }
  0x8c   : > { %2627 = vmatpush1.bf16.msra.mxu0 %v8788_v62  ;;  %2966 = vmatpush1.bf16.msra.mxu1 %v8790_v63  ;;  %v622_v62 = vld [vmem:[%s11327_s18 + $0x120] sm:$0xff]  ;;  %v11549_v63 = vpack.c.bf16 %v611_v49, %v606_v46 }
  0x8d   : > { %2628 = vmatprep.subr.bf16.mxu0 %v8797_v0  ;;  %2967 = vmatprep.subr.bf16.mxu1 %v8799_v1  ;;  %v8836_v0 = vcombine.low %v866_v47, %v870_v48  ;;  %v8838_v1 = vcombine.low %v867_v50, %v871_v51  ;;  %v11554_v5 = vpack.c.bf16 %v622_v62, %v617_v60  ;;  %v642_v46 = vld [vmem:[%s11327_s18 + $0x1c0] sm:$0xff] }
  0x8e   : > { %v8877_v50 = vcombine.high %v906_v36, %v910_v38  ;;  %v914_v51 = vld [vmem:[%s13476_s20 + $0x680] sm:$0xff]  ;;  %v8876_v60 = vcombine.low %v906_v36, %v910_v38 }
  0x8f   : > { %v926_v62 = vld [vmem:[%s13476_s20 + $0x6e0] sm:$0xff] }
  0x90   : > { %2629 = vmatpush1.bf16.msra.mxu0 %v8796_v6  ;;  %2968 = vmatpush1.bf16.msra.mxu1 %v8798_v9  ;;  %v616_v6 = vld [vmem:[%s11327_s18 + $0xf0] sm:$0xff]  ;;  %v883_v9 = vld [vmem:[%s13476_s20 + $0x588] sm:$0xff] }
  0x91   : > { %2711 = vmatprep.subr.bf16.mxu0 %v8805_v10  ;;  %3050 = vmatprep.subr.bf16.mxu1 %v8807_v11  ;;  %v887_v10 = vld [vmem:[%s13476_s20 + $0x5a8] sm:$0xff]  ;;  %v8844_v11 = vcombine.low %v874_v53, %v878_v54  ;;  %v636_v54 = vld [vmem:[%s11327_s18 + $0x190] sm:$0xff] }
  0x92   : > { %v8854_v25 = vcombine.low %v883_v9, %v887_v10 }
  0x93   : > { %2631 = vmatmul.mubr.bf16.vlgmr.msra.gmra.mrb[0].mxu0 %v11472_v15  ;;  %2970 = vmatmul.mubr.bf16.vlgmr.msra.gmra.mrb[0].mxu1 %v11472_v15 }
  0x94   : > { %2712 = vmatpush1.bf16.msra.mxu0 %v8804_v19  ;;  %3051 = vmatpush1.bf16.msra.mxu1 %v8806_v20  ;;  %v627_v19 = vld [vmem:[%s11327_s18 + $0x148] sm:$0xff]  ;;  %v8855_v20 = vcombine.high %v883_v9, %v887_v10  ;;  %v8886_v10 = vcombine.low %v915_v57, %v919_v59 }
  0x95   : > { %2713 = vmatprep.subr.bf16.mxu0 %v8813_v21  ;;  %3052 = vmatprep.subr.bf16.mxu1 %v8815_v22  ;;  %v632_v21 = vld [vmem:[%s11327_s18 + $0x170] sm:$0xff]  ;;  %v11585_v22 = vpack.c.bf16 %v621_v7, %v616_v6  ;;  %v8887_v6 = vcombine.high %v915_v57, %v919_v59  ;;  %v589_v57 = vld [vmem:[%s11327_s18 + $0x18] sm:$0xff] }
  0x96   : > { %2640 = vmatprep.mubr.bf16.mxu0 %v11479_v23  ;;  %2979 = vmatprep.mubr.bf16.mxu1 %v11479_v23  ;;  %v11590_v29 = vpack.c.bf16 %v632_v21, %v627_v19  ;;  %v652_v7 = vld [vmem:[%s11327_s18 + $0x210] sm:$0xff]  ;;  %v931_v19 = vld [vmem:[%s13476_s20 + $0x708] sm:$0xff] }
  0x98   : > { %2714 = vmatpush1.bf16.msra.mxu0 %v8812_v28  ;;  %3053 = vmatpush1.bf16.msra.mxu1 %v8814_v31  ;;  %v8863_v28 = vcombine.high %v891_v17, %v895_v18  ;;  %v631_v31 = vld [vmem:[%s11327_s18 + $0x168] sm:$0xff]  ;;  %v934_v18 = vld [vmem:[%s13476_s20 + $0x720] sm:$0xff] }
  0x99   : > { %2715 = vmatprep.subr.bf16.mxu0 %v8821_v32  ;;  %3054 = vmatprep.subr.bf16.mxu1 %v8823_v33  ;;  %v902_v32 = vld [vmem:[%s13476_s20 + $0x620] sm:$0xff]  ;;  %v899_v33 = vld [vmem:[%s13476_s20 + $0x608] sm:$0xff]  ;;  %v11621_v47 = vpack.c.bf16 %v631_v31, %v626_v30  ;;  %v657_v31 = vld [vmem:[%s11327_s18 + $0x238] sm:$0xff] }
  0x9a   : > { %v8869_v40 = vcombine.high %v898_v27, %v902_v32  ;;  %v8868_v48 = vcombine.low %v898_v27, %v902_v32  ;;  %v8870_v49 = vcombine.low %v899_v33, %v903_v34  ;;  %v651_v17 = vld [vmem:[%s11327_s18 + $0x208] sm:$0xff]  ;;  %v8901_v27 = vcombine.high %v930_v12, %v934_v18 }
  0x9b   : > { %2641 = vmatmul.mubr.bf16.gmra.mrb[4].mxu0 %v11508_v37  ;;  %2980 = vmatmul.mubr.bf16.gmra.mrb[4].mxu1 %v11508_v37  ;;  %v943_v30 = vld [vmem:[%s13476_s20 + $0x768] sm:$0xff] }
  0x9c   : > { %2716 = vmatpush1.bf16.msra.mxu0 %v8820_v41  ;;  %3055 = vmatpush1.bf16.msra.mxu1 %v8822_v42  ;;  %v907_v41 = vld [vmem:[%s13476_s20 + $0x648] sm:$0xff] }
  0x9d   : > { %2717 = vmatprep.subr.bf16.mxu0 %v8829_v43  ;;  %3056 = vmatprep.subr.bf16.mxu1 %v8831_v44  ;;  %v911_v42 = vld [vmem:[%s13476_s20 + $0x668] sm:$0xff]  ;;  %v637_v43 = vld [vmem:[%s11327_s18 + $0x198] sm:$0xff]  ;;  %v8871_v44 = vcombine.high %v899_v33, %v903_v34  ;;  %v662_v33 = vld [vmem:[%s11327_s18 + $0x260] sm:$0xff] }
  0x9e   : > { %2650 = vmatprep.mubr.bf16.mxu0 %v11515_v45  ;;  %2989 = vmatprep.mubr.bf16.mxu1 %v11515_v45  ;;  %v11626_v53 = vpack.c.bf16 %v642_v46, %v637_v43  ;;  %v661_v43 = vld [vmem:[%s11327_s18 + $0x258] sm:$0xff]  ;;  %v947_v46 = vld [vmem:[%s13476_s20 + $0x788] sm:$0xff] }
  0xa0   : > { %2718 = vmatpush1.bf16.msra.mxu0 %v8828_v52  ;;  %3057 = vmatpush1.bf16.msra.mxu1 %v8830_v55  ;;  %v8879_v52 = vcombine.high %v907_v41, %v911_v42  ;;  %v641_v55 = vld [vmem:[%s11327_s18 + $0x1b8] sm:$0xff] }
  0xa1   : > { %2719 = vmatprep.subr.bf16.mxu0 %v8837_v56  ;;  %3058 = vmatprep.subr.bf16.mxu1 %v8839_v61  ;;  %v918_v56 = vld [vmem:[%s13476_s20 + $0x6a0] sm:$0xff]  ;;  %v11657_v8 = vpack.c.bf16 %v641_v55, %v636_v54  ;;  %v955_v55 = vld [vmem:[%s13476_s20 + $0x7c8] sm:$0xff] }
  0xa2   : > { %v922_v61 = vld [vmem:[%s13476_s20 + $0x6c0] sm:$0xff]  ;;  %v8884_v9 = vcombine.low %v914_v51, %v918_v56 }
  0xa3   : > { %2651 = vmatmul.mubr.bf16.gmra.mrb[8].mxu0 %v11549_v63  ;;  %2990 = vmatmul.mubr.bf16.gmra.mrb[8].mxu1 %v11549_v63  ;;  %v8892_v21 = vcombine.low %v922_v61, %v926_v62 }
  0xa4   : > { %2720 = vmatpush1.bf16.msra.mxu0 %v8836_v0  ;;  %3059 = vmatpush1.bf16.msra.mxu1 %v8838_v1  ;;  %v8878_v0 = vcombine.low %v907_v41, %v911_v42  ;;  %v8885_v1 = vcombine.high %v914_v51, %v918_v56  ;;  %v11698_v41 = vpack.c.bf16 %v662_v33, %v657_v31  ;;  %v656_v42 = vld [vmem:[%s11327_s18 + $0x230] sm:$0xff]  ;;  %v958_v51 = vld [vmem:[%s13476_s20 + $0x7e0] sm:$0xff]  ;;  %v959_v56 = vld [vmem:[%s13476_s20 + $0x7e8] sm:$0xff] }
  0xa5   : > { %2721 = vmatprep.subr.bf16.mxu0 %v8845_v2  ;;  %3060 = vmatprep.subr.bf16.mxu1 %v8847_v4  ;;  %v923_v2 = vld [vmem:[%s13476_s20 + $0x6c8] sm:$0xff]  ;;  %v982_v31 = vld [vmem:[%s13476_s20 + $0x8a0] sm:$0xff] }
  0xa6   : > { %2660 = vmatprep.mubr.bf16.mxu0 %v11554_v5  ;;  %2999 = vmatprep.mubr.bf16.mxu1 %v11554_v5  ;;  %v647_v4 = vld [vmem:[%s11327_s18 + $0x1e8] sm:$0xff]  ;;  %v8895_v13 = vcombine.high %v923_v2, %v927_v3 }
  0xa7   : > { %v603_v33 = vld [vmem:[%s11327_s18 + $0x88] sm:$0xff] }
  0xa8   : > { %2722 = vmatpush1.bf16.msra.mxu0 %v8844_v11  ;;  %3061 = vmatpush1.bf16.msra.mxu1 %v8846_v14  ;;  %v8893_v11 = vcombine.high %v922_v61, %v926_v62  ;;  %v11662_v14 = vpack.c.bf16 %v652_v7, %v647_v4  ;;  %v11729_v61 = vpack.c.bf16 %v661_v43, %v656_v42  ;;  %v593_v7 = vld [vmem:[%s11327_s18 + $0x38] sm:$0xff] }
  0xa9   : > { %2723 = vmatprep.subr.bf16.mxu0 %v8853_v16  ;;  %3062 = vmatprep.subr.bf16.mxu1 %v8855_v20  ;;  %v646_v16 = vld [vmem:[%s11327_s18 + $0x1e0] sm:$0xff]  ;;  %v935_v20 = vld [vmem:[%s13476_s20 + $0x728] sm:$0xff] }
  0xaa   : > { %v8903_v32 = vcombine.high %v931_v19, %v935_v20  ;;  %v11693_v34 = vpack.c.bf16 %v651_v17, %v646_v16  ;;  %v8902_v36 = vcombine.low %v931_v19, %v935_v20  ;;  %v8926_v16 = vcombine.low %v955_v55, %v959_v56  ;;  %v970_v19 = vld [vmem:[%s13476_s20 + $0x840] sm:$0xff] }
  0xab   : > { %2661 = vmatmul.mubr.bf16.gmra.mrb[12].mxu0 %v11585_v22  ;;  %3000 = vmatmul.mubr.bf16.gmra.mrb[12].mxu1 %v11585_v22  ;;  %v974_v20 = vld [vmem:[%s13476_s20 + $0x860] sm:$0xff] }
  0xac   : > { %2724 = vmatpush1.bf16.msra.mxu0 %v8852_v24  ;;  %3063 = vmatpush1.bf16.msra.mxu1 %v8854_v25  ;;  %v938_v24 = vld [vmem:[%s13476_s20 + $0x740] sm:$0xff]  ;;  %v8940_v43 = vcombine.low %v970_v19, %v974_v20 }
  0xad   : > { %2725 = vmatprep.subr.bf16.mxu0 %v8861_v26  ;;  %3064 = vmatprep.subr.bf16.mxu1 %v8863_v28  ;;  %v942_v25 = vld [vmem:[%s13476_s20 + $0x760] sm:$0xff]  ;;  %v8894_v26 = vcombine.low %v923_v2, %v927_v3  ;;  %v939_v28 = vld [vmem:[%s13476_s20 + $0x748] sm:$0xff]  ;;  %v8927_v3 = vcombine.high %v955_v55, %v959_v56 }
  0xae   : > { %2670 = vmatprep.mubr.bf16.mxu0 %v11590_v29  ;;  %3009 = vmatprep.mubr.bf16.mxu1 %v11590_v29  ;;  %v8909_v38 = vcombine.high %v938_v24, %v942_v25  ;;  %v962_v2 = vld [vmem:[%s13476_s20 + $0x800] sm:$0xff] }
  0xb0   : > { %2726 = vmatpush1.bf16.msra.mxu0 %v8860_v35  ;;  %3065 = vmatpush1.bf16.msra.mxu1 %v8862_v39  ;;  %v8900_v35 = vcombine.low %v930_v12, %v934_v18  ;;  %v946_v39 = vld [vmem:[%s13476_s20 + $0x780] sm:$0xff]  ;;  %v604_v18 = vld [vmem:[%s11327_s18 + $0x90] sm:$0xff] }
  0xb1   : > { %2727 = vmatprep.subr.bf16.mxu0 %v8869_v40  ;;  %3066 = vmatprep.subr.bf16.mxu1 %v8871_v44  ;;  %v8911_v40 = vcombine.high %v939_v28, %v943_v30  ;;  %v950_v44 = vld [vmem:[%s13476_s20 + $0x7a0] sm:$0xff] }
  0xb2   : > { %v8917_v54 = vcombine.high %v946_v39, %v950_v44  ;;  %v8916_v62 = vcombine.low %v946_v39, %v950_v44  ;;  %v983_v39 = vld [vmem:[%s13476_s20 + $0x8a8] sm:$0xff]  ;;  %v614_v44 = vld [vmem:[%s11327_s18 + $0xe0] sm:$0xff] }
  0xb3   : > { %2671 = vmatmul.mubr.bf16.gmra.mrb[16].mxu0 %v11621_v47  ;;  %3010 = vmatmul.mubr.bf16.gmra.mrb[16].mxu1 %v11621_v47 }
  0xb4   : > { %2728 = vmatpush1.bf16.msra.mxu0 %v8868_v48  ;;  %3067 = vmatpush1.bf16.msra.mxu1 %v8870_v49  ;;  %v951_v48 = vld [vmem:[%s13476_s20 + $0x7a8] sm:$0xff]  ;;  %v8908_v49 = vcombine.low %v938_v24, %v942_v25 }
  0xb5   : > { %2729 = vmatprep.subr.bf16.mxu0 %v8877_v50  ;;  %3068 = vmatprep.subr.bf16.mxu1 %v8879_v52  ;;  %v954_v50 = vld [vmem:[%s13476_s20 + $0x7c0] sm:$0xff]  ;;  %v8910_v52 = vcombine.low %v939_v28, %v943_v30  ;;  %v8919_v59 = vcombine.high %v947_v46, %v951_v48  ;;  %v971_v24 = vld [vmem:[%s13476_s20 + $0x848] sm:$0xff] }
  0xb6   : > { %2680 = vmatprep.mubr.bf16.mxu0 %v11626_v53  ;;  %3019 = vmatprep.mubr.bf16.mxu1 %v11626_v53  ;;  %v8924_v12 = vcombine.low %v954_v50, %v958_v51  ;;  %v975_v25 = vld [vmem:[%s13476_s20 + $0x868] sm:$0xff]  ;;  %v978_v30 = vld [vmem:[%s13476_s20 + $0x880] sm:$0xff] }
  0xb7   : > { %v8943_v42 = vcombine.high %v971_v24, %v975_v25 }
  0xb8   : > { %2730 = vmatpush1.bf16.msra.mxu0 %v8876_v60  ;;  %3069 = vmatpush1.bf16.msra.mxu1 %v8878_v0  ;;  %v594_v60 = vld [vmem:[%s11327_s18 + $0x40] sm:$0xff]  ;;  %v8918_v0 = vcombine.low %v947_v46, %v951_v48  ;;  %v8949_v46 = vcombine.high %v978_v30, %v982_v31 }
  0xb9   : > { %2731 = vmatprep.subr.bf16.mxu0 %v8885_v1  ;;  %3070 = vmatprep.subr.bf16.mxu1 %v8887_v6  ;;  %v8925_v1 = vcombine.high %v954_v50, %v958_v51  ;;  %v11734_v4 = vpack.c.bf16 %v594_v60, %v589_v57  ;;  %v588_v6 = vld [vmem:[%s11327_s18 + $0x10] sm:$0xff]  ;;  %v986_v48 = vld [vmem:[%s13476_s20 + $0x8c0] sm:$0xff]  ;;  %v8942_v50 = vcombine.low %v971_v24, %v975_v25  ;;  %v987_v51 = vld [vmem:[%s13476_s20 + $0x8c8] sm:$0xff] }
  0xba   : > { %v8948_v57 = vcombine.low %v978_v30, %v982_v31  ;;  %v998_v60 = vld [vmem:[%s13476_s20 + $0x920] sm:$0xff]  ;;  %v11838_v24 = vld [vmem:[%s13476_s20 + $0x10] sm:$0xff]  ;;  %v623_v30 = vld [vmem:[%s11327_s18 + $0x128] sm:$0xff] }
  0xbb   : > { %2681 = vmatmul.mubr.bf16.gmra.mrb[20].mxu0 %v11657_v8  ;;  %3020 = vmatmul.mubr.bf16.gmra.mrb[20].mxu1 %v11657_v8  ;;  %v11843_v25 = vld [vmem:[%s13476_s20 + $0x30] sm:$0xff] }
  0xbc   : > { %2732 = vmatpush1.bf16.msra.mxu0 %v8884_v9  ;;  %3071 = vmatpush1.bf16.msra.mxu1 %v8886_v10  ;;  %v966_v9 = vld [vmem:[%s13476_s20 + $0x820] sm:$0xff]  ;;  %v963_v10 = vld [vmem:[%s13476_s20 + $0x808] sm:$0xff] }
  0xbd   : > { %2733 = vmatprep.subr.bf16.mxu0 %v8893_v11  ;;  %3072 = vmatprep.subr.bf16.mxu1 %v8895_v13  ;;  %v967_v11 = vld [vmem:[%s13476_s20 + $0x828] sm:$0xff]  ;;  %v8933_v17 = vcombine.high %v962_v2, %v966_v9 }
  0xbe   : > { %2690 = vmatprep.mubr.bf16.mxu0 %v11662_v14  ;;  %3029 = vmatprep.mubr.bf16.mxu1 %v11662_v14  ;;  %v599_v13 = vld [vmem:[%s11327_s18 + $0x68] sm:$0xff] }
  0xbf   : > { %v11767_v28 = vpack.c.bf16 %v604_v18, %v599_v13 }
  0xc0   : > { %2734 = vmatpush1.bf16.msra.mxu0 %v8892_v21  ;;  %3073 = vmatpush1.bf16.msra.mxu1 %v8894_v26  ;;  %v8935_v21 = vcombine.high %v963_v10, %v967_v11  ;;  %v11765_v26 = vpack.c.bf16 %v593_v7, %v588_v6  ;;  %v999_v6 = vld [vmem:[%s13476_s20 + $0x928] sm:$0xff] }
  0xc1   : > { %2735 = vmatprep.subr.bf16.mxu0 %v8901_v27  ;;  %3074 = vmatprep.subr.bf16.mxu1 %v8903_v32  ;;  %v8932_v27 = vcombine.low %v962_v2, %v966_v9  ;;  %v598_v32 = vld [vmem:[%s11327_s18 + $0x60] sm:$0xff]  ;;  %v619_v9 = vld [vmem:[%s11327_s18 + $0x108] sm:$0xff] }
  0xc3   : > { %2691 = vmatmul.mubr.bf16.gmra.mrb[24].mxu0 %v11693_v34  ;;  %3030 = vmatmul.mubr.bf16.gmra.mrb[24].mxu1 %v11693_v34 }
  0xc4   : > { %2736 = vmatpush1.bf16.msra.mxu0 %v8900_v35  ;;  %3075 = vmatpush1.bf16.msra.mxu1 %v8902_v36  ;;  %v8941_v35 = vcombine.high %v970_v19, %v974_v20  ;;  %v8934_v36 = vcombine.low %v963_v10, %v967_v11  ;;  %v624_v10 = vld [vmem:[%s11327_s18 + $0x130] sm:$0xff] }
  0xc5   : > { %2737 = vmatprep.subr.bf16.mxu0 %v8909_v38  ;;  %3076 = vmatprep.subr.bf16.mxu1 %v8911_v40  ;;  %v979_v38 = vld [vmem:[%s13476_s20 + $0x888] sm:$0xff]  ;;  %v609_v40 = vld [vmem:[%s11327_s18 + $0xb8] sm:$0xff]  ;;  %v11833_v20 = vpack.c.bf16 %v624_v10, %v619_v9 }
  0xc6   : > { %2700 = vmatprep.mubr.bf16.mxu0 %v11698_v41  ;;  %3039 = vmatprep.mubr.bf16.mxu1 %v11698_v41  ;;  %v8951_v55 = vcombine.high %v979_v38, %v983_v39  ;;  %v11803_v56 = vpack.c.bf16 %v614_v44, %v609_v40  ;;  %v8950_v2 = vcombine.low %v979_v38, %v983_v39  ;;  %v629_v40 = vld [vmem:[%s11327_s18 + $0x158] sm:$0xff]  ;;  %v659_v10 = vld [vmem:[%s11327_s18 + $0x248] sm:$0xff] }
  0xc7   : > { %v8681_v44 = vcombine.high %v11838_v24, %v11843_v25  ;;  %v653_v9 = vld [vmem:[%s11327_s18 + $0x218] sm:$0xff] }
  0xc8   : > { %2738 = vmatpush1.bf16.msra.mxu0 %v8908_v49  ;;  %3077 = vmatpush1.bf16.msra.mxu1 %v8910_v52  ;;  %v990_v49 = vld [vmem:[%s13476_s20 + $0x8e0] sm:$0xff]  ;;  %v991_v52 = vld [vmem:[%s13476_s20 + $0x8e8] sm:$0xff] }
  0xc9   : > { %2739 = vmatprep.subr.bf16.mxu0 %v8917_v54  ;;  %3078 = vmatprep.subr.bf16.mxu1 %v8919_v59  ;;  %v11801_v54 = vpack.c.bf16 %v603_v33, %v598_v32  ;;  %v994_v59 = vld [vmem:[%s13476_s20 + $0x900] sm:$0xff]  ;;  %v8959_v7 = vcombine.high %v987_v51, %v991_v52  ;;  %v8956_v11 = vcombine.low %v986_v48, %v990_v49 }
  0xca   : > { %v8965_v13 = vcombine.high %v994_v59, %v998_v60 }
  0xcb   : > { %2701 = vmatmul.mubr.bf16.gmra.mrb[28].mxu0 %v11729_v61  ;;  %3040 = vmatmul.mubr.bf16.gmra.mrb[28].mxu1 %v11729_v61 }
  0xcc   : > { %2740 = vmatpush1.bf16.msra.mxu0 %v8916_v62  ;;  %3079 = vmatpush1.bf16.msra.mxu1 %v8918_v0  ;;  %v608_v62 = vld [vmem:[%s11327_s18 + $0xb0] sm:$0xff]  ;;  %v613_v0 = vld [vmem:[%s11327_s18 + $0xd8] sm:$0xff] }
  0xcd   : > { %2741 = vmatprep.subr.bf16.mxu0 %v8925_v1  ;;  %3080 = vmatprep.subr.bf16.mxu1 %v8927_v3  ;;  %v8957_v1 = vcombine.high %v986_v48, %v990_v49  ;;  %v995_v3 = vld [vmem:[%s13476_s20 + $0x908] sm:$0xff]  ;;  %v11831_v18 = vpack.c.bf16 %v613_v0, %v608_v62  ;;  %v638_v62 = vld [vmem:[%s11327_s18 + $0x1a0] sm:$0xff] }
  0xce   : > { %2743 = vmatprep.mubr.bf16.mxu0 %v11734_v4  ;;  %3082 = vmatprep.mubr.bf16.mxu1 %v11734_v4  ;;  %v8967_v19 = vcombine.high %v995_v3, %v999_v6  ;;  %v8966_v33 = vcombine.low %v995_v3, %v999_v6  ;;  %v643_v0 = vld [vmem:[%s11327_s18 + $0x1c8] sm:$0xff] }
  0xcf   : > { %v11895_v3 = vpack.c.bf16 %v643_v0, %v638_v62  ;;  %v733_v0 = vld [vmem:[%s13476_s20 + $0xd8] sm:$0xff] }
  0xd0   : > { %2742 = vmatpush1.bf16.msra.mxu0 %v8924_v12  ;;  %3081 = vmatpush1.bf16.msra.mxu1 %v8926_v16  ;;  %v1002_v12 = vld [vmem:[%s13476_s20 + $0x940] sm:$0xff]  ;;  %v8958_v16 = vcombine.low %v987_v51, %v991_v52  ;;  %v628_v51 = vld [vmem:[%s11327_s18 + $0x150] sm:$0xff]  ;;  %v633_v52 = vld [vmem:[%s11327_s18 + $0x178] sm:$0xff] }
  0xd1   : > { %2824 = vmatprep.subr.bf16.mxu0 %v8933_v17  ;;  %3163 = vmatprep.subr.bf16.mxu1 %v8935_v21  ;;  %v1003_v17 = vld [vmem:[%s13476_s20 + $0x948] sm:$0xff]  ;;  %v8964_v21 = vcombine.low %v994_v59, %v998_v60  ;;  %v8973_v31 = vcombine.high %v1002_v12, %v1002_v12  ;;  %v8972_v32 = vcombine.low %v1002_v12, %v1002_v12 }
  0xd2   : > { %v8975_v38 = vcombine.high %v1003_v17, %v1003_v17  ;;  %v8974_v39 = vcombine.low %v1003_v17, %v1003_v17  ;;  %v11883_v59 = vpack.c.bf16 %v633_v52, %v628_v51  ;;  %v663_v17 = vld [vmem:[%s11327_s18 + $0x268] sm:$0xff]  ;;  %v600_v51 = vld [vmem:[%s11327_s18 + $0x70] sm:$0xff]  ;;  %v605_v52 = vld [vmem:[%s11327_s18 + $0x98] sm:$0xff] }
  0xd3   : > { %2744 = vmatmul.mubr.bf16.vlgmr.msra.gmra.mrb[0].mxu0 %v11765_v26  ;;  %3083 = vmatmul.mubr.bf16.vlgmr.msra.gmra.mrb[0].mxu1 %v11765_v26 }
  0xd4   : > { %2825 = vmatpush1.bf16.msra.mxu0 %v8932_v27  ;;  %2753 = vmatprep.mubr.bf16.mxu0 %v11767_v28  ;;  %v618_v27 = vld [vmem:[%s11327_s18 + $0x100] sm:$0xff]  ;;  %v2581_v48 = vsel %vm2573_vm0, %v8974_v39, 0 }
  0xd5   : > { %3092 = vmatprep.mubr.bf16.mxu1 %v11767_v28  ;;  %2826 = vmatprep.subr.bf16.mxu0 %v8941_v35  ;;  %v11850_v35 = vld [vmem:[%s13476_s20 + $0x18] sm:$0xff] }
  0xd6   : > { %3164 = vmatpush1.bf16.msra.mxu1 %v8934_v36  ;;  %v11855_v36 = vld [vmem:[%s13476_s20 + $0x38] sm:$0xff] }
  0xd7   : > { %3165 = vmatprep.subr.bf16.mxu1 %v8943_v42  ;;  %v634_v42 = vld [vmem:[%s11327_s18 + $0x180] sm:$0xff]  ;;  %v8683_v49 = vcombine.high %v11850_v35, %v11855_v36 }
  0xd8   : > { %2827 = vmatpush1.bf16.msra.mxu0 %v8940_v43  ;;  %v2575_v43 = vsel %vm2573_vm0, %v8972_v32, 0  ;;  %v720_v32 = vld [vmem:[%s13476_s20 + $0x70] sm:$0xff] }
  0xd9   : > { %2828 = vmatprep.subr.bf16.mxu0 %v8949_v46  ;;  %v11867_v46 = vpack.c.bf16 %v623_v30, %v618_v27  ;;  %v595_v27 = vld [vmem:[%s11327_s18 + $0x48] sm:$0xff]  ;;  %v11065_v30 = vmov 0  }
  0xda   : > { %3166 = vmatpush1.bf16.msra.mxu1 %v8942_v50  ;;  %v11873_v50 = vpack.c.bf16 %v634_v42, %v629_v40  ;;  %v8680_v40 = vcombine.low %v11838_v24, %v11843_v25  ;;  %v724_v42 = vld [vmem:[%s13476_s20 + $0x90] sm:$0xff]  ;;  %v725_v24 = vld [vmem:[%s13476_s20 + $0x98] sm:$0xff] }
  0xdb   : > { %2754 = vmatmul.mubr.bf16.gmra.mrb[4].mxu0 %v11801_v54  ;;  %3167 = vmatprep.subr.bf16.mxu1 %v8951_v55  ;;  %v639_v55 = vld [vmem:[%s11327_s18 + $0x1a8] sm:$0xff]  ;;  %v729_v25 = vld [vmem:[%s13476_s20 + $0xb8] sm:$0xff] }
  0xdc   : > { %3093 = vmatmul.mubr.bf16.gmra.mrb[4].mxu1 %v11801_v54  ;;  %2763 = vmatprep.mubr.bf16.mxu0 %v11803_v56 }
  0xdd   : > { %3102 = vmatprep.mubr.bf16.mxu1 %v11803_v56  ;;  %2829 = vmatpush1.bf16.msra.mxu0 %v8948_v57  ;;  %v644_v57 = vld [vmem:[%s11327_s18 + $0x1d0] sm:$0xff] }
  0xde   : > { %2830 = vmatprep.subr.bf16.mxu0 %v8957_v1  ;;  %3168 = vmatpush1.bf16.msra.mxu1 %v8950_v2  ;;  %v11885_v60 = vpack.c.bf16 %v644_v57, %v639_v55  ;;  %v649_v1 = vld [vmem:[%s11327_s18 + $0x1f8] sm:$0xff]  ;;  %v654_v2 = vld [vmem:[%s11327_s18 + $0x220] sm:$0xff]  ;;  %v736_v55 = vld [vmem:[%s13476_s20 + $0xf0] sm:$0xff] }
  0xdf   : > { %3169 = vmatprep.subr.bf16.mxu1 %v8959_v7  ;;  %v11897_v6 = vpack.c.bf16 %v654_v2, %v649_v1  ;;  %v648_v7 = vld [vmem:[%s11327_s18 + $0x1f0] sm:$0xff]  ;;  %v737_v1 = vld [vmem:[%s13476_s20 + $0xf8] sm:$0xff]  ;;  %v8699_v2 = vcombine.high %v725_v24, %v729_v25 }
  0xe0   : > { %v11907_v12 = vpack.c.bf16 %v653_v9, %v648_v7  ;;  %v11975_v7 = vpack.c.bf16 %v605_v52, %v600_v51 }
  0xe1   : > { %2831 = vmatpush1.bf16.msra.mxu0 %v8956_v11  ;;  %v664_v11 = vld [vmem:[%s11327_s18 + $0x270] sm:$0xff] }
  0xe2   : > { %2832 = vmatprep.subr.bf16.mxu0 %v8965_v13  ;;  %3170 = vmatpush1.bf16.msra.mxu1 %v8958_v16  ;;  %v11909_v13 = vpack.c.bf16 %v664_v11, %v659_v10  ;;  %v658_v16 = vld [vmem:[%s11327_s18 + $0x240] sm:$0xff]  ;;  %v740_v10 = vld [vmem:[%s13476_s20 + $0x110] sm:$0xff] }
  0xe3   : > { %2764 = vmatmul.mubr.bf16.gmra.mrb[8].mxu0 %v11831_v18  ;;  %3171 = vmatprep.subr.bf16.mxu1 %v8967_v19  ;;  %v11917_v19 = vpack.c.bf16 %v663_v17, %v658_v16  ;;  %v744_v11 = vld [vmem:[%s13476_s20 + $0x130] sm:$0xff]  ;;  %v8698_v16 = vcombine.low %v725_v24, %v729_v25 }
  0xe4   : > { %3103 = vmatmul.mubr.bf16.gmra.mrb[8].mxu1 %v11831_v18  ;;  %2773 = vmatprep.mubr.bf16.mxu0 %v11833_v20  ;;  %v8712_v24 = vcombine.low %v740_v10, %v744_v11  ;;  %v756_v25 = vld [vmem:[%s13476_s20 + $0x190] sm:$0xff] }
  0xe5   : > { %3112 = vmatprep.mubr.bf16.mxu1 %v11833_v20  ;;  %2833 = vmatpush1.bf16.msra.mxu0 %v8964_v21  ;;  %v590_v21 = vld [vmem:[%s11327_s18 + $0x20] sm:$0xff] }
  0xe6   : > { %8980 = vmatprep.subr.msk.bf16.mxu0 %vm2573_vm0, %v8973_v31  ;;  %3172 = vmatpush1.bf16.msra.mxu1 %v8966_v33  ;;  %v716_v31 = vld [vmem:[%s13476_s20 + $0x50] sm:$0xff]  ;;  %v717_v33 = vld [vmem:[%s13476_s20 + $0x58] sm:$0xff]  ;;  %v11937_v39 = vpack.c.bf16 %v595_v27, %v590_v21 }
  0xe7   : > { %8989 = vmatprep.subr.msk.bf16.mxu1 %vm2573_vm0, %v8975_v38  ;;  %v721_v38 = vld [vmem:[%s13476_s20 + $0x78] sm:$0xff] }
  0xe8   : > { %v8690_v57 = vcombine.low %v717_v33, %v721_v38  ;;  %v741_v21 = vld [vmem:[%s13476_s20 + $0x118] sm:$0xff] }
  0xe9   : > { %2835 = vmatpush1.bf16.msra.mxu0 %v2575_v43  ;;  %v728_v43 = vld [vmem:[%s13476_s20 + $0xb0] sm:$0xff]  ;;  %v745_v27 = vld [vmem:[%s13476_s20 + $0x138] sm:$0xff] }
  0xea   : > { %3174 = vmatpush1.bf16.msra.mxu1 %v2581_v48  ;;  %3276 = vmatprep.subr.bf16.mxu0 %v8681_v44  ;;  %v8682_v44 = vcombine.low %v11850_v35, %v11855_v36  ;;  %v8689_v48 = vcombine.high %v716_v31, %v720_v32  ;;  %v8688_v35 = vcombine.low %v716_v31, %v720_v32  ;;  %v732_v36 = vld [vmem:[%s13476_s20 + $0xd0] sm:$0xff]  ;;  %v610_v32 = vld [vmem:[%s11327_s18 + $0xc0] sm:$0xff] }
  0xeb   : > { %2774 = vmatmul.mubr.bf16.gmra.mrb[12].mxu0 %v11867_v46  ;;  %3615 = vmatprep.subr.bf16.mxu1 %v8683_v49  ;;  %v8691_v49 = vcombine.high %v717_v33, %v721_v38  ;;  %v8697_v62 = vcombine.high %v724_v42, %v728_v43  ;;  %v8696_v9 = vcombine.low %v724_v42, %v728_v43  ;;  %v615_v33 = vld [vmem:[%s11327_s18 + $0xe8] sm:$0xff]  ;;  %v752_v42 = vld [vmem:[%s13476_s20 + $0x170] sm:$0xff] }
  0xec   : > { %3113 = vmatmul.mubr.bf16.gmra.mrb[12].mxu1 %v11867_v46  ;;  %2783 = vmatprep.mubr.bf16.mxu0 %v11873_v50  ;;  %v8705_v17 = vcombine.high %v732_v36, %v736_v55  ;;  %v8707_v31 = vcombine.high %v733_v0, %v737_v1  ;;  %v8704_v38 = vcombine.low %v732_v36, %v736_v55 }
  0xed   : > { %3122 = vmatprep.mubr.bf16.mxu1 %v11873_v50  ;;  %v8706_v43 = vcombine.low %v733_v0, %v737_v1  ;;  %v8715_v51 = vcombine.high %v741_v21, %v745_v27  ;;  %v12009_v52 = vpack.c.bf16 %v615_v33, %v610_v32  ;;  %v8714_v36 = vcombine.low %v741_v21, %v745_v27  ;;  %v620_v1 = vld [vmem:[%s11327_s18 + $0x110] sm:$0xff]  ;;  %v765_v21 = vld [vmem:[%s13476_s20 + $0x1d8] sm:$0xff] }
  0xee   : > { %v769_v27 = vld [vmem:[%s13476_s20 + $0x1f8] sm:$0xff] }
  0xf3   : > { %2784 = vmatmul.mubr.bf16.gmra.mrb[16].mxu0 %v11883_v59 }
  0xf4   : > { %3123 = vmatmul.mubr.bf16.gmra.mrb[16].mxu1 %v11883_v59  ;;  %2793 = vmatprep.mubr.bf16.mxu0 %v11885_v60 }
  0xf5   : > { %3132 = vmatprep.mubr.bf16.mxu1 %v11885_v60 }
  0xfb   : > { %2794 = vmatmul.mubr.bf16.gmra.mrb[20].mxu0 %v11895_v3 }
  0xfc   : > { %3133 = vmatmul.mubr.bf16.gmra.mrb[20].mxu1 %v11895_v3  ;;  %2803 = vmatprep.mubr.bf16.mxu0 %v11897_v6 }
  0xfd   : > { %3142 = vmatprep.mubr.bf16.mxu1 %v11897_v6 }
 0x103   : > { %2804 = vmatmul.mubr.bf16.gmra.mrb[24].mxu0 %v11907_v12 }
 0x104   : > { %3143 = vmatmul.mubr.bf16.gmra.mrb[24].mxu1 %v11907_v12  ;;  %2813 = vmatprep.mubr.bf16.mxu0 %v11909_v13 }
 0x105   : > { %3152 = vmatprep.mubr.bf16.mxu1 %v11909_v13 }
 0x10b   : > { %2814 = vmatmul.mubr.bf16.gmra.mrb[28].mxu0 %v11917_v19 }
 0x10c   : > { %3153 = vmatmul.mubr.bf16.gmra.mrb[28].mxu1 %v11917_v19  ;;  %2856 = vmatprep.mubr.bf16.mxu0 %v11065_v30 }
 0x10d   : > { %3195 = vmatprep.mubr.bf16.mxu1 %v11065_v30 }
 0x113   : > { %8981 = vmatmul.mubr.msk.bf16.vlgmr.msra.gmra.mrb[0].mxu0 %vm2548_vm1, %v11937_v39 }
 0x114   : > { %8990 = vmatmul.mubr.msk.bf16.vlgmr.msra.gmra.mrb[0].mxu1 %vm2548_vm1, %v11937_v39  ;;  %3277 = vmatpush1.bf16.msra.mxu0 %v8680_v40  ;;  %v748_v40 = vld [vmem:[%s13476_s20 + $0x150] sm:$0xff] }
 0x115   : > { %3616 = vmatpush1.bf16.msra.mxu1 %v8682_v44  ;;  %3278 = vmatprep.subr.bf16.mxu0 %v8689_v48  ;;  %v8713_v44 = vcombine.high %v740_v10, %v744_v11  ;;  %v749_v48 = vld [vmem:[%s13476_s20 + $0x158] sm:$0xff]  ;;  %v8721_v55 = vcombine.high %v748_v40, %v752_v42  ;;  %v764_v10 = vld [vmem:[%s13476_s20 + $0x1d0] sm:$0xff] }
 0x116   : > { %3617 = vmatprep.subr.bf16.mxu1 %v8691_v49  ;;  %2866 = vmatprep.mubr.bf16.mxu0 %v11065_v30  ;;  %v753_v49 = vld [vmem:[%s13476_s20 + $0x178] sm:$0xff]  ;;  %v768_v11 = vld [vmem:[%s13476_s20 + $0x1f0] sm:$0xff] }
 0x117   : > { %3205 = vmatprep.mubr.bf16.mxu1 %v11065_v30  ;;  %v8723_v0 = vcombine.high %v749_v48, %v753_v49 }
 0x118   : > { %3279 = vmatpush1.bf16.msra.mxu0 %v8688_v35  ;;  %v760_v35 = vld [vmem:[%s13476_s20 + $0x1b0] sm:$0xff] }
 0x119   : > { %3618 = vmatpush1.bf16.msra.mxu1 %v8690_v57  ;;  %3280 = vmatprep.subr.bf16.mxu0 %v8697_v62  ;;  %v757_v57 = vld [vmem:[%s13476_s20 + $0x198] sm:$0xff]  ;;  %v8728_v33 = vcombine.low %v756_v25, %v760_v35 }
 0x11a   : > { %3619 = vmatprep.subr.bf16.mxu1 %v8699_v2  ;;  %v761_v62 = vld [vmem:[%s13476_s20 + $0x1b8] sm:$0xff] }
 0x11b   : > { %8982 = vmatmul.mubr.msk.bf16.gmra.mrb[4].mxu0 %vm2548_vm1, %v11975_v7  ;;  %v625_v2 = vld [vmem:[%s11327_s18 + $0x138] sm:$0xff] }
 0x11c   : > { %8991 = vmatmul.mubr.msk.bf16.gmra.mrb[4].mxu1 %vm2548_vm1, %v11975_v7  ;;  %3281 = vmatpush1.bf16.msra.mxu0 %v8696_v9  ;;  %v8720_v9 = vcombine.low %v748_v40, %v752_v42  ;;  %v12043_v32 = vpack.c.bf16 %v625_v2, %v620_v1  ;;  %v776_v40 = vld [vmem:[%s13476_s20 + $0x230] sm:$0xff]  ;;  %v8730_v42 = vcombine.low %v757_v57, %v761_v62 }
 0x11d   : > { %3620 = vmatpush1.bf16.msra.mxu1 %v8698_v16  ;;  %3282 = vmatprep.subr.bf16.mxu0 %v8705_v17  ;;  %v8722_v16 = vcombine.low %v749_v48, %v753_v49  ;;  %v8729_v17 = vcombine.high %v756_v25, %v760_v35  ;;  %v777_v48 = vld [vmem:[%s13476_s20 + $0x238] sm:$0xff]  ;;  %v8739_v49 = vcombine.high %v765_v21, %v769_v27  ;;  %v780_v35 = vld [vmem:[%s13476_s20 + $0x250] sm:$0xff] }
 0x11e   : > { %3621 = vmatprep.subr.bf16.mxu1 %v8707_v31  ;;  %2876 = vmatprep.mubr.bf16.mxu0 %v11065_v30  ;;  %v8731_v31 = vcombine.high %v757_v57, %v761_v62  ;;  %v8736_v25 = vcombine.low %v764_v10, %v768_v11  ;;  %v781_v62 = vld [vmem:[%s13476_s20 + $0x258] sm:$0xff] }
 0x11f   : > { %3215 = vmatprep.mubr.bf16.mxu1 %v11065_v30 }
 0x120   : > { %3283 = vmatpush1.bf16.msra.mxu0 %v8704_v38  ;;  %v772_v38 = vld [vmem:[%s13476_s20 + $0x210] sm:$0xff] }
 0x121   : > { %3622 = vmatpush1.bf16.msra.mxu1 %v8706_v43  ;;  %3284 = vmatprep.subr.bf16.mxu0 %v8713_v44  ;;  %v8737_v43 = vcombine.high %v764_v10, %v768_v11  ;;  %v773_v44 = vld [vmem:[%s13476_s20 + $0x218] sm:$0xff]  ;;  %v8745_v57 = vcombine.high %v772_v38, %v776_v40  ;;  %v788_v10 = vld [vmem:[%s13476_s20 + $0x290] sm:$0xff] }
 0x122   : > { %3623 = vmatprep.subr.bf16.mxu1 %v8715_v51  ;;  %v630_v51 = vld [vmem:[%s11327_s18 + $0x160] sm:$0xff]  ;;  %v8747_v1 = vcombine.high %v773_v44, %v777_v48  ;;  %v792_v11 = vld [vmem:[%s13476_s20 + $0x2b0] sm:$0xff] }
 0x123   : > { %8983 = vmatmul.mubr.msk.bf16.gmra.mrb[8].mxu0 %vm2548_vm1, %v12009_v52 }
 0x124   : > { %8992 = vmatmul.mubr.msk.bf16.gmra.mrb[8].mxu1 %vm2548_vm1, %v12009_v52  ;;  %3285 = vmatpush1.bf16.msra.mxu0 %v8712_v24  ;;  %v635_v24 = vld [vmem:[%s11327_s18 + $0x188] sm:$0xff] }
 0x125   : > { %3624 = vmatpush1.bf16.msra.mxu1 %v8714_v36  ;;  %3286 = vmatprep.subr.bf16.mxu0 %v8721_v55  ;;  %v784_v36 = vld [vmem:[%s13476_s20 + $0x270] sm:$0xff]  ;;  %v8738_v55 = vcombine.low %v765_v21, %v769_v27  ;;  %v12077_v2 = vpack.c.bf16 %v635_v24, %v630_v51  ;;  %v801_v51 = vld [vmem:[%s13476_s20 + $0x2f8] sm:$0xff] }
 0x126   : > { %3625 = vmatprep.subr.bf16.mxu1 %v8723_v0  ;;  %2886 = vmatprep.mubr.bf16.mxu0 %v11065_v30  ;;  %v785_v0 = vld [vmem:[%s13476_s20 + $0x278] sm:$0xff]  ;;  %v640_v27 = vld [vmem:[%s11327_s18 + $0x1b0] sm:$0xff] }
 0x127   : > { %3225 = vmatprep.mubr.bf16.mxu1 %v11065_v30  ;;  %v8755_v21 = vcombine.high %v781_v62, %v785_v0 }
 0x128   : > { %3287 = vmatpush1.bf16.msra.mxu0 %v8720_v9  ;;  %v8744_v9 = vcombine.low %v772_v38, %v776_v40  ;;  %v793_v38 = vld [vmem:[%s13476_s20 + $0x2b8] sm:$0xff]  ;;  %v8752_v40 = vcombine.low %v780_v35, %v784_v36 }
 0x129   : > { %3626 = vmatpush1.bf16.msra.mxu1 %v8722_v16  ;;  %3288 = vmatprep.subr.bf16.mxu0 %v8729_v17  ;;  %v8746_v16 = vcombine.low %v773_v44, %v777_v48  ;;  %v8753_v17 = vcombine.high %v780_v35, %v784_v36  ;;  %v8754_v44 = vcombine.low %v781_v62, %v785_v0  ;;  %v804_v36 = vld [vmem:[%s13476_s20 + $0x310] sm:$0xff]  ;;  %v805_v0 = vld [vmem:[%s13476_s20 + $0x318] sm:$0xff] }
 0x12a   : > { %3627 = vmatprep.subr.bf16.mxu1 %v8731_v31  ;;  %v645_v31 = vld [vmem:[%s11327_s18 + $0x1d8] sm:$0xff]  ;;  %v8761_v48 = vcombine.high %v788_v10, %v792_v11  ;;  %v8760_v35 = vcombine.low %v788_v10, %v792_v11  ;;  %v650_v10 = vld [vmem:[%s11327_s18 + $0x200] sm:$0xff] }
 0x12b   : > { %8984 = vmatmul.mubr.msk.bf16.gmra.mrb[12].mxu0 %vm2548_vm1, %v12043_v32 }
 0x12c   : > { %8993 = vmatmul.mubr.msk.bf16.gmra.mrb[12].mxu1 %vm2548_vm1, %v12043_v32  ;;  %3289 = vmatpush1.bf16.msra.mxu0 %v8728_v33  ;;  %v789_v33 = vld [vmem:[%s13476_s20 + $0x298] sm:$0xff] }
 0x12d   : > { %3628 = vmatpush1.bf16.msra.mxu1 %v8730_v42  ;;  %3290 = vmatprep.subr.bf16.mxu0 %v8737_v43  ;;  %v796_v42 = vld [vmem:[%s13476_s20 + $0x2d0] sm:$0xff]  ;;  %v8763_v24 = vcombine.high %v789_v33, %v793_v38 }
 0x12e   : > { %3629 = vmatprep.subr.bf16.mxu1 %v8739_v49  ;;  %2896 = vmatprep.mubr.bf16.mxu0 %v11065_v30  ;;  %v800_v43 = vld [vmem:[%s13476_s20 + $0x2f0] sm:$0xff]  ;;  %v797_v49 = vld [vmem:[%s13476_s20 + $0x2d8] sm:$0xff] }
 0x12f   : > { %3235 = vmatprep.mubr.bf16.mxu1 %v11065_v30  ;;  %v8769_v62 = vcombine.high %v796_v42, %v800_v43  ;;  %v8768_v11 = vcombine.low %v796_v42, %v800_v43 }
 0x130   : > { %3291 = vmatpush1.bf16.msra.mxu0 %v8736_v25  ;;  %v12111_v25 = vpack.c.bf16 %v645_v31, %v640_v27  ;;  %v8770_v27 = vcombine.low %v797_v49, %v801_v51 }
 0x131   : > { %3630 = vmatpush1.bf16.msra.mxu1 %v8738_v55  ;;  %3292 = vmatprep.subr.bf16.mxu0 %v8745_v57  ;;  %v808_v55 = vld [vmem:[%s13476_s20 + $0x330] sm:$0xff]  ;;  %v8762_v57 = vcombine.low %v789_v33, %v793_v38  ;;  %v813_v33 = vld [vmem:[%s13476_s20 + $0x358] sm:$0xff] }
 0x132   : > { %3631 = vmatprep.subr.bf16.mxu1 %v8747_v1  ;;  %v809_v1 = vld [vmem:[%s13476_s20 + $0x338] sm:$0xff]  ;;  %v8777_v31 = vcombine.high %v804_v36, %v808_v55  ;;  %v8776_v43 = vcombine.low %v804_v36, %v808_v55  ;;  %v660_v55 = vld [vmem:[%s11327_s18 + $0x250] sm:$0xff] }
 0x133   : > { %8985 = vmatmul.mubr.msk.bf16.gmra.mrb[16].mxu0 %vm2548_vm1, %v12077_v2  ;;  %v817_v38 = vld [vmem:[%s13476_s20 + $0x378] sm:$0xff] }
 0x134   : > { %8994 = vmatmul.mubr.msk.bf16.gmra.mrb[16].mxu1 %vm2548_vm1, %v12077_v2  ;;  %3293 = vmatpush1.bf16.msra.mxu0 %v8744_v9  ;;  %v8771_v9 = vcombine.high %v797_v49, %v801_v51  ;;  %v8778_v49 = vcombine.low %v805_v0, %v809_v1  ;;  %v8787_v36 = vcombine.high %v813_v33, %v817_v38 }
 0x135   : > { %3632 = vmatpush1.bf16.msra.mxu1 %v8746_v16  ;;  %3294 = vmatprep.subr.bf16.mxu0 %v8753_v17  ;;  %v655_v16 = vld [vmem:[%s11327_s18 + $0x228] sm:$0xff]  ;;  %v812_v17 = vld [vmem:[%s13476_s20 + $0x350] sm:$0xff] }
 0x136   : > { %3633 = vmatprep.subr.bf16.mxu1 %v8755_v21  ;;  %2906 = vmatprep.mubr.bf16.mxu0 %v11065_v30  ;;  %v816_v21 = vld [vmem:[%s13476_s20 + $0x370] sm:$0xff]  ;;  %v12145_v42 = vpack.c.bf16 %v655_v16, %v650_v10  ;;  %v833_v16 = vld [vmem:[%s13476_s20 + $0x3f8] sm:$0xff] }
 0x137   : > { %3245 = vmatprep.mubr.bf16.mxu1 %v11065_v30  ;;  %v8785_v51 = vcombine.high %v812_v17, %v816_v21 }
 0x138   : > { %3295 = vmatpush1.bf16.msra.mxu0 %v8752_v40  ;;  %v8779_v40 = vcombine.high %v805_v0, %v809_v1  ;;  %v828_v0 = vld [vmem:[%s13476_s20 + $0x3d0] sm:$0xff] }
 0x139   : > { %3634 = vmatpush1.bf16.msra.mxu1 %v8754_v44  ;;  %3296 = vmatprep.subr.bf16.mxu0 %v8761_v48  ;;  %v820_v44 = vld [vmem:[%s13476_s20 + $0x390] sm:$0xff] }
 0x13a   : > { %3635 = vmatprep.subr.bf16.mxu1 %v8763_v24  ;;  %v824_v48 = vld [vmem:[%s13476_s20 + $0x3b0] sm:$0xff]  ;;  %v821_v24 = vld [vmem:[%s13476_s20 + $0x398] sm:$0xff] }
 0x13b   : > { %8986 = vmatmul.mubr.msk.bf16.gmra.mrb[20].mxu0 %vm2548_vm1, %v12111_v25  ;;  %v832_v1 = vld [vmem:[%s13476_s20 + $0x3f0] sm:$0xff]  ;;  %v8793_v10 = vcombine.high %v820_v44, %v824_v48 }
 0x13c   : > { %8995 = vmatmul.mubr.msk.bf16.gmra.mrb[20].mxu1 %vm2548_vm1, %v12111_v25  ;;  %3297 = vmatpush1.bf16.msra.mxu0 %v8760_v35  ;;  %v825_v35 = vld [vmem:[%s13476_s20 + $0x3b8] sm:$0xff] }
 0x13d   : > { %3636 = vmatpush1.bf16.msra.mxu1 %v8762_v57  ;;  %3298 = vmatprep.subr.bf16.mxu0 %v8769_v62  ;;  %v8784_v57 = vcombine.low %v812_v17, %v816_v21  ;;  %v665_v62 = vld [vmem:[%s11327_s18 + $0x278] sm:$0xff]  ;;  %v8795_v17 = vcombine.high %v821_v24, %v825_v35 }
 0x13e   : > { %3637 = vmatprep.subr.bf16.mxu1 %v8771_v9  ;;  %2916 = vmatprep.mubr.bf16.mxu0 %v11065_v30  ;;  %v8786_v9 = vcombine.low %v813_v33, %v817_v38  ;;  %v12179_v21 = vpack.c.bf16 %v665_v62, %v660_v55  ;;  %v840_v33 = vld [vmem:[%s13476_s20 + $0x430] sm:$0xff]  ;;  %v8794_v38 = vcombine.low %v821_v24, %v825_v35  ;;  %v845_v55 = vld [vmem:[%s13476_s20 + $0x458] sm:$0xff] }
 0x13f   : > { %3255 = vmatprep.mubr.bf16.mxu1 %v11065_v30  ;;  %v848_v24 = vld [vmem:[%s13476_s20 + $0x470] sm:$0xff]  ;;  %v849_v62 = vld [vmem:[%s13476_s20 + $0x478] sm:$0xff] }
 0x140   : > { %3299 = vmatpush1.bf16.msra.mxu0 %v8768_v11  ;;  %v829_v11 = vld [vmem:[%s13476_s20 + $0x3d8] sm:$0xff] }
 0x141   : > { %3638 = vmatpush1.bf16.msra.mxu1 %v8770_v27  ;;  %3300 = vmatprep.subr.bf16.mxu0 %v8777_v31  ;;  %v8792_v27 = vcombine.low %v820_v44, %v824_v48  ;;  %v836_v31 = vld [vmem:[%s13476_s20 + $0x410] sm:$0xff]  ;;  %v841_v44 = vld [vmem:[%s13476_s20 + $0x438] sm:$0xff]  ;;  %v8803_v48 = vcombine.high %v829_v11, %v833_v16  ;;  %v8802_v35 = vcombine.low %v829_v11, %v833_v16 }
 0x142   : > { %3639 = vmatprep.subr.bf16.mxu1 %v8779_v40  ;;  %v8801_v40 = vcombine.high %v828_v0, %v832_v1  ;;  %v852_v11 = vld [vmem:[%s13476_s20 + $0x490] sm:$0xff]  ;;  %v853_v16 = vld [vmem:[%s13476_s20 + $0x498] sm:$0xff] }
 0x143   : > { %8987 = vmatmul.mubr.msk.bf16.gmra.mrb[24].mxu0 %vm2548_vm1, %v12145_v42 }
 0x144   : > { %8996 = vmatmul.mubr.msk.bf16.gmra.mrb[24].mxu1 %vm2548_vm1, %v12145_v42  ;;  %3301 = vmatpush1.bf16.msra.mxu0 %v8776_v43  ;;  %v837_v43 = vld [vmem:[%s13476_s20 + $0x418] sm:$0xff] }
 0x145   : > { %3640 = vmatpush1.bf16.msra.mxu1 %v8778_v49  ;;  %3302 = vmatprep.subr.bf16.mxu0 %v8785_v51  ;;  %v8800_v49 = vcombine.low %v828_v0, %v832_v1  ;;  %v844_v51 = vld [vmem:[%s13476_s20 + $0x450] sm:$0xff]  ;;  %v8808_v0 = vcombine.low %v836_v31, %v840_v33  ;;  %v8810_v1 = vcombine.low %v837_v43, %v841_v44 }
 0x146   : > { %3641 = vmatprep.subr.bf16.mxu1 %v8787_v36  ;;  %2926 = vmatprep.mubr.bf16.mxu0 %v11065_v30  ;;  %v8809_v36 = vcombine.high %v836_v31, %v840_v33  ;;  %v8818_v31 = vcombine.low %v845_v55, %v849_v62 }
 0x147   : > { %3265 = vmatprep.mubr.bf16.mxu1 %v11065_v30 }
 0x148   : > { %3303 = vmatpush1.bf16.msra.mxu0 %v8784_v57  ;;  %v8811_v57 = vcombine.high %v837_v43, %v841_v44  ;;  %v864_v43 = vld [vmem:[%s13476_s20 + $0x4f0] sm:$0xff]  ;;  %v865_v44 = vld [vmem:[%s13476_s20 + $0x4f8] sm:$0xff] }
 0x149   : > { %3642 = vmatpush1.bf16.msra.mxu1 %v8786_v9  ;;  %3304 = vmatprep.subr.bf16.mxu0 %v8793_v10  ;;  %v8817_v9 = vcombine.high %v844_v51, %v848_v24  ;;  %v8819_v10 = vcombine.high %v845_v55, %v849_v62  ;;  %v873_v55 = vld [vmem:[%s13476_s20 + $0x538] sm:$0xff] }
 0x14a   : > { %3643 = vmatprep.subr.bf16.mxu1 %v8795_v17  ;;  %v857_v17 = vld [vmem:[%s13476_s20 + $0x4b8] sm:$0xff] }
 0x14b   : > { %8988 = vmatmul.mubr.msk.bf16.gmra.mrb[28].mxu0 %vm2548_vm1, %v12179_v21 }
 0x14c   : > { %8997 = vmatmul.mubr.msk.bf16.gmra.mrb[28].mxu1 %vm2548_vm1, %v12179_v21  ;;  %3305 = vmatpush1.bf16.msra.mxu0 %v8792_v27  ;;  %v8816_v27 = vcombine.low %v844_v51, %v848_v24 }
 0x14d   : > { %3644 = vmatpush1.bf16.msra.mxu1 %v8794_v38  ;;  %3306 = vmatprep.subr.bf16.mxu0 %v8801_v40  ;;  %v860_v38 = vld [vmem:[%s13476_s20 + $0x4d0] sm:$0xff]  ;;  %v8827_v40 = vcombine.high %v853_v16, %v857_v17 }
 0x14e   : > { %3645 = vmatprep.subr.bf16.mxu1 %v8803_v48  ;;  %3308 = vmatprep.mubr.bf16.mxu0 %v11343_v58  ;;  %v8833_v51 = vcombine.high %v860_v38, %v864_v43 }
 0x14f   : > { %3647 = vmatprep.mubr.bf16.mxu1 %v11343_v58  ;;  %v856_v58 = vld [vmem:[%s13476_s20 + $0x4b0] sm:$0xff] }
 0x150   : > { %3307 = vmatpush1.bf16.msra.mxu0 %v8800_v49  ;;  %v8825_v33 = vcombine.high %v852_v11, %v856_v58  ;;  %v8824_v48 = vcombine.low %v852_v11, %v856_v58  ;;  %v8826_v49 = vcombine.low %v853_v16, %v857_v17  ;;  %v881_v11 = vld [vmem:[%s13476_s20 + $0x578] sm:$0xff] }
 0x151   : > { %3646 = vmatpush1.bf16.msra.mxu1 %v8802_v35  ;;  %3389 = vmatprep.subr.bf16.mxu0 %v8809_v36  ;;  %v872_v35 = vld [vmem:[%s13476_s20 + $0x530] sm:$0xff]  ;;  %v869_v36 = vld [vmem:[%s13476_s20 + $0x518] sm:$0xff] }
 0x152   : > { %3728 = vmatprep.subr.bf16.mxu1 %v8811_v57  ;;  %v8832_v57 = vcombine.low %v860_v38, %v864_v43  ;;  %v8842_v16 = vcombine.low %v869_v36, %v873_v55  ;;  %v889_v38 = vld [vmem:[%s13476_s20 + $0x5b8] sm:$0xff] }
 0x153   : > { %3309 = vmatmul.mubr.bf16.vlgmr.msra.gmra.mrb[32].mxu0 %v11472_v15 }
 0x154   : > { %3648 = vmatmul.mubr.bf16.vlgmr.msra.gmra.mrb[32].mxu1 %v11472_v15  ;;  %3390 = vmatpush1.bf16.msra.mxu0 %v8808_v0  ;;  %v861_v15 = vld [vmem:[%s13476_s20 + $0x4d8] sm:$0xff] }
 0x155   : > { %3729 = vmatpush1.bf16.msra.mxu1 %v8810_v1  ;;  %3391 = vmatprep.subr.bf16.mxu0 %v8817_v9  ;;  %v8835_v24 = vcombine.high %v861_v15, %v865_v44  ;;  %v8834_v62 = vcombine.low %v861_v15, %v865_v44  ;;  %v8843_v1 = vcombine.high %v869_v36, %v873_v55  ;;  %v876_v9 = vld [vmem:[%s13476_s20 + $0x550] sm:$0xff] }
 0x156   : > { %3730 = vmatprep.subr.bf16.mxu1 %v8819_v10  ;;  %3318 = vmatprep.mubr.bf16.mxu0 %v11479_v23  ;;  %v880_v10 = vld [vmem:[%s13476_s20 + $0x570] sm:$0xff] }
 0x157   : > { %3657 = vmatprep.mubr.bf16.mxu1 %v11479_v23  ;;  %v868_v23 = vld [vmem:[%s13476_s20 + $0x510] sm:$0xff]  ;;  %v8849_v17 = vcombine.high %v876_v9, %v880_v10 }
 0x158   : > { %3392 = vmatpush1.bf16.msra.mxu0 %v8816_v27  ;;  %v8841_v0 = vcombine.high %v868_v23, %v872_v35  ;;  %v8840_v58 = vcombine.low %v868_v23, %v872_v35  ;;  %v904_v55 = vld [vmem:[%s13476_s20 + $0x630] sm:$0xff] }
 0x159   : > { %3731 = vmatpush1.bf16.msra.mxu1 %v8818_v31  ;;  %3393 = vmatprep.subr.bf16.mxu0 %v8825_v33  ;;  %v888_v31 = vld [vmem:[%s13476_s20 + $0x5b0] sm:$0xff]  ;;  %v885_v33 = vld [vmem:[%s13476_s20 + $0x598] sm:$0xff] }
 0x15a   : > { %3732 = vmatprep.subr.bf16.mxu1 %v8827_v40  ;;  %v8848_v40 = vcombine.low %v876_v9, %v880_v10  ;;  %v8859_v44 = vcombine.high %v885_v33, %v889_v38  ;;  %v8858_v23 = vcombine.low %v885_v33, %v889_v38  ;;  %v917_v33 = vld [vmem:[%s13476_s20 + $0x698] sm:$0xff] }
 0x15b   : > { %3319 = vmatmul.mubr.bf16.gmra.mrb[36].mxu0 %v11508_v37  ;;  %v921_v38 = vld [vmem:[%s13476_s20 + $0x6b8] sm:$0xff] }
 0x15c   : > { %3658 = vmatmul.mubr.bf16.gmra.mrb[36].mxu1 %v11508_v37  ;;  %3394 = vmatpush1.bf16.msra.mxu0 %v8824_v48  ;;  %v877_v37 = vld [vmem:[%s13476_s20 + $0x558] sm:$0xff]  ;;  %v892_v48 = vld [vmem:[%s13476_s20 + $0x5d0] sm:$0xff] }
 0x15d   : > { %3733 = vmatpush1.bf16.msra.mxu1 %v8826_v49  ;;  %3395 = vmatprep.subr.bf16.mxu0 %v8833_v51  ;;  %v8851_v27 = vcombine.high %v877_v37, %v881_v11  ;;  %v8850_v43 = vcombine.low %v877_v37, %v881_v11  ;;  %v896_v49 = vld [vmem:[%s13476_s20 + $0x5f0] sm:$0xff]  ;;  %v897_v51 = vld [vmem:[%s13476_s20 + $0x5f8] sm:$0xff] }
 0x15e   : > { %3734 = vmatprep.subr.bf16.mxu1 %v8835_v24  ;;  %3328 = vmatprep.mubr.bf16.mxu0 %v11515_v45  ;;  %v8865_v35 = vcombine.high %v892_v48, %v896_v49  ;;  %v908_v37 = vld [vmem:[%s13476_s20 + $0x650] sm:$0xff] }
 0x15f   : > { %3667 = vmatprep.mubr.bf16.mxu1 %v11515_v45  ;;  %v884_v45 = vld [vmem:[%s13476_s20 + $0x590] sm:$0xff] }
 0x160   : > { %3396 = vmatpush1.bf16.msra.mxu0 %v8832_v57  ;;  %v8857_v15 = vcombine.high %v884_v45, %v888_v31  ;;  %v8856_v24 = vcombine.low %v884_v45, %v888_v31  ;;  %v901_v57 = vld [vmem:[%s13476_s20 + $0x618] sm:$0xff]  ;;  %v912_v11 = vld [vmem:[%s13476_s20 + $0x670] sm:$0xff] }
 0x161   : > { %3735 = vmatpush1.bf16.msra.mxu1 %v8834_v62  ;;  %3397 = vmatprep.subr.bf16.mxu0 %v8841_v0  ;;  %v905_v62 = vld [vmem:[%s13476_s20 + $0x638] sm:$0xff]  ;;  %v8864_v0 = vcombine.low %v892_v48, %v896_v49  ;;  %v920_v31 = vld [vmem:[%s13476_s20 + $0x6b0] sm:$0xff] }
 0x162   : > { %3736 = vmatprep.subr.bf16.mxu1 %v8843_v1  ;;  %v8875_v10 = vcombine.high %v901_v57, %v905_v62  ;;  %v924_v48 = vld [vmem:[%s13476_s20 + $0x6d0] sm:$0xff] }
 0x163   : > { %3329 = vmatmul.mubr.bf16.gmra.mrb[40].mxu0 %v11549_v63  ;;  %v928_v49 = vld [vmem:[%s13476_s20 + $0x6f0] sm:$0xff] }
 0x164   : > { %3668 = vmatmul.mubr.bf16.gmra.mrb[40].mxu1 %v11549_v63  ;;  %3398 = vmatpush1.bf16.msra.mxu0 %v8840_v58  ;;  %v893_v63 = vld [vmem:[%s13476_s20 + $0x5d8] sm:$0xff] }
 0x165   : > { %3737 = vmatpush1.bf16.msra.mxu1 %v8842_v16  ;;  %3399 = vmatprep.subr.bf16.mxu0 %v8849_v17  ;;  %v8867_v36 = vcombine.high %v893_v63, %v897_v51  ;;  %v8866_v1 = vcombine.low %v893_v63, %v897_v51  ;;  %v913_v58 = vld [vmem:[%s13476_s20 + $0x678] sm:$0xff]  ;;  %v8874_v17 = vcombine.low %v901_v57, %v905_v62 }
 0x166   : > { %3738 = vmatprep.subr.bf16.mxu1 %v8851_v27  ;;  %3338 = vmatprep.mubr.bf16.mxu0 %v11554_v5  ;;  %v8881_v27 = vcombine.high %v908_v37, %v912_v11  ;;  %v929_v63 = vld [vmem:[%s13476_s20 + $0x6f8] sm:$0xff]  ;;  %v8896_v57 = vcombine.low %v924_v48, %v928_v49 }
 0x167   : > { %3677 = vmatprep.mubr.bf16.mxu1 %v11554_v5  ;;  %v900_v5 = vld [vmem:[%s13476_s20 + $0x610] sm:$0xff] }
 0x168   : > { %3400 = vmatpush1.bf16.msra.mxu0 %v8848_v40  ;;  %v8873_v9 = vcombine.high %v900_v5, %v904_v55  ;;  %v8872_v16 = vcombine.low %v900_v5, %v904_v55  ;;  %v8880_v40 = vcombine.low %v908_v37, %v912_v11  ;;  %v933_v5 = vld [vmem:[%s13476_s20 + $0x718] sm:$0xff] }
 0x169   : > { %3739 = vmatpush1.bf16.msra.mxu1 %v8850_v43  ;;  %3401 = vmatprep.subr.bf16.mxu0 %v8857_v15  ;;  %v937_v55 = vld [vmem:[%s13476_s20 + $0x738] sm:$0xff] }
 0x16a   : > { %3740 = vmatprep.subr.bf16.mxu1 %v8859_v44  ;;  %v8891_v44 = vcombine.high %v917_v33, %v921_v38  ;;  %v945_v37 = vld [vmem:[%s13476_s20 + $0x778] sm:$0xff] }
 0x16b   : > { %3339 = vmatmul.mubr.bf16.gmra.mrb[44].mxu0 %v11585_v22 }
 0x16c   : > { %3678 = vmatmul.mubr.bf16.gmra.mrb[44].mxu1 %v11585_v22  ;;  %3402 = vmatpush1.bf16.msra.mxu0 %v8856_v24  ;;  %v909_v22 = vld [vmem:[%s13476_s20 + $0x658] sm:$0xff]  ;;  %v8890_v24 = vcombine.low %v917_v33, %v921_v38 }
 0x16d   : > { %3741 = vmatpush1.bf16.msra.mxu1 %v8858_v23  ;;  %3403 = vmatprep.subr.bf16.mxu0 %v8865_v35  ;;  %v8883_v45 = vcombine.high %v909_v22, %v913_v58  ;;  %v8882_v43 = vcombine.low %v909_v22, %v913_v58  ;;  %v8897_v23 = vcombine.high %v924_v48, %v928_v49 }
 0x16e   : > { %3742 = vmatprep.subr.bf16.mxu1 %v8867_v36  ;;  %3348 = vmatprep.mubr.bf16.mxu0 %v11590_v29  ;;  %v936_v36 = vld [vmem:[%s13476_s20 + $0x730] sm:$0xff]  ;;  %v8906_v22 = vcombine.low %v933_v5, %v937_v55 }
 0x16f   : > { %3687 = vmatprep.mubr.bf16.mxu1 %v11590_v29  ;;  %v916_v29 = vld [vmem:[%s13476_s20 + $0x690] sm:$0xff] }
 0x170   : > { %3404 = vmatpush1.bf16.msra.mxu0 %v8864_v0  ;;  %v8889_v15 = vcombine.high %v916_v29, %v920_v31  ;;  %v8888_v51 = vcombine.low %v916_v29, %v920_v31 }
 0x171   : > { %3743 = vmatpush1.bf16.msra.mxu1 %v8866_v1  ;;  %3405 = vmatprep.subr.bf16.mxu0 %v8873_v9  ;;  %v8907_v1 = vcombine.high %v933_v5, %v937_v55  ;;  %v940_v9 = vld [vmem:[%s13476_s20 + $0x750] sm:$0xff] }
 0x172   : > { %3744 = vmatprep.subr.bf16.mxu1 %v8875_v10  ;;  %v944_v10 = vld [vmem:[%s13476_s20 + $0x770] sm:$0xff] }
 0x173   : > { %3349 = vmatmul.mubr.bf16.gmra.mrb[48].mxu0 %v11621_v47  ;;  %v8913_v58 = vcombine.high %v940_v9, %v944_v10  ;;  %v8912_v29 = vcombine.low %v940_v9, %v944_v10  ;;  %v972_v5 = vld [vmem:[%s13476_s20 + $0x850] sm:$0xff] }
 0x174   : > { %3688 = vmatmul.mubr.bf16.gmra.mrb[48].mxu1 %v11621_v47  ;;  %3406 = vmatpush1.bf16.msra.mxu0 %v8872_v16  ;;  %v925_v47 = vld [vmem:[%s13476_s20 + $0x6d8] sm:$0xff] }
 0x175   : > { %3745 = vmatpush1.bf16.msra.mxu1 %v8874_v17  ;;  %3407 = vmatprep.subr.bf16.mxu0 %v8881_v27  ;;  %v8899_v35 = vcombine.high %v925_v47, %v929_v63  ;;  %v8898_v62 = vcombine.low %v925_v47, %v929_v63  ;;  %v952_v17 = vld [vmem:[%s13476_s20 + $0x7b0] sm:$0xff]  ;;  %v949_v27 = vld [vmem:[%s13476_s20 + $0x798] sm:$0xff] }
 0x176   : > { %3746 = vmatprep.subr.bf16.mxu1 %v8883_v45  ;;  %3358 = vmatprep.mubr.bf16.mxu0 %v11626_v53  ;;  %v953_v45 = vld [vmem:[%s13476_s20 + $0x7b8] sm:$0xff]  ;;  %v968_v63 = vld [vmem:[%s13476_s20 + $0x830] sm:$0xff] }
 0x177   : > { %3697 = vmatprep.mubr.bf16.mxu1 %v11626_v53  ;;  %v932_v53 = vld [vmem:[%s13476_s20 + $0x710] sm:$0xff]  ;;  %v8923_v38 = vcombine.high %v949_v27, %v953_v45  ;;  %v8922_v48 = vcombine.low %v949_v27, %v953_v45 }
 0x178   : > { %3408 = vmatpush1.bf16.msra.mxu0 %v8880_v40  ;;  %v8905_v0 = vcombine.high %v932_v53, %v936_v36  ;;  %v8904_v11 = vcombine.low %v932_v53, %v936_v36  ;;  %v956_v40 = vld [vmem:[%s13476_s20 + $0x7d0] sm:$0xff] }
 0x179   : > { %3747 = vmatpush1.bf16.msra.mxu1 %v8882_v43  ;;  %3409 = vmatprep.subr.bf16.mxu0 %v8889_v15  ;;  %v960_v43 = vld [vmem:[%s13476_s20 + $0x7f0] sm:$0xff]  ;;  %v961_v15 = vld [vmem:[%s13476_s20 + $0x7f8] sm:$0xff] }
 0x17a   : > { %3748 = vmatprep.subr.bf16.mxu1 %v8891_v44  ;;  %v8929_v49 = vcombine.high %v956_v40, %v960_v43 }
 0x17b   : > { %3359 = vmatmul.mubr.bf16.gmra.mrb[52].mxu0 %v11657_v8 }
 0x17c   : > { %3698 = vmatmul.mubr.bf16.gmra.mrb[52].mxu1 %v11657_v8  ;;  %3410 = vmatpush1.bf16.msra.mxu0 %v8888_v51  ;;  %v941_v8 = vld [vmem:[%s13476_s20 + $0x758] sm:$0xff] }
 0x17d   : > { %3749 = vmatpush1.bf16.msra.mxu1 %v8890_v24  ;;  %3411 = vmatprep.subr.bf16.mxu0 %v8897_v23  ;;  %v8915_v16 = vcombine.high %v941_v8, %v945_v37  ;;  %v8914_v31 = vcombine.low %v941_v8, %v945_v37  ;;  %v965_v51 = vld [vmem:[%s13476_s20 + $0x818] sm:$0xff]  ;;  %v8928_v23 = vcombine.low %v956_v40, %v960_v43 }
 0x17e   : > { %3750 = vmatprep.subr.bf16.mxu1 %v8899_v35  ;;  %3368 = vmatprep.mubr.bf16.mxu0 %v11662_v14  ;;  %v969_v24 = vld [vmem:[%s13476_s20 + $0x838] sm:$0xff] }
 0x17f   : > { %3707 = vmatprep.mubr.bf16.mxu1 %v11662_v14  ;;  %v948_v14 = vld [vmem:[%s13476_s20 + $0x790] sm:$0xff]  ;;  %v8939_v36 = vcombine.high %v965_v51, %v969_v24  ;;  %v8938_v9 = vcombine.low %v965_v51, %v969_v24  ;;  %v981_v37 = vld [vmem:[%s13476_s20 + $0x898] sm:$0xff] }
 0x180   : > { %3412 = vmatpush1.bf16.msra.mxu0 %v8896_v57  ;;  %v8921_v33 = vcombine.high %v948_v14, %v952_v17  ;;  %v8920_v44 = vcombine.low %v948_v14, %v952_v17  ;;  %v973_v57 = vld [vmem:[%s13476_s20 + $0x858] sm:$0xff] }
 0x181   : > { %3751 = vmatpush1.bf16.msra.mxu1 %v8898_v62  ;;  %3413 = vmatprep.subr.bf16.mxu0 %v8905_v0  ;;  %v977_v62 = vld [vmem:[%s13476_s20 + $0x878] sm:$0xff]  ;;  %v980_v0 = vld [vmem:[%s13476_s20 + $0x890] sm:$0xff] }
 0x182   : > { %3752 = vmatprep.subr.bf16.mxu1 %v8907_v1  ;;  %v984_v1 = vld [vmem:[%s13476_s20 + $0x8b0] sm:$0xff]  ;;  %v8947_v10 = vcombine.high %v973_v57, %v977_v62  ;;  %v989_v17 = vld [vmem:[%s13476_s20 + $0x8d8] sm:$0xff] }
 0x183   : > { %3369 = vmatmul.mubr.bf16.gmra.mrb[56].mxu0 %v11693_v34  ;;  %v8952_v27 = vcombine.low %v980_v0, %v984_v1  ;;  %v997_v40 = vld [vmem:[%s13476_s20 + $0x918] sm:$0xff] }
 0x184   : > { %3708 = vmatmul.mubr.bf16.gmra.mrb[56].mxu1 %v11693_v34  ;;  %3414 = vmatpush1.bf16.msra.mxu0 %v8904_v11  ;;  %v957_v34 = vld [vmem:[%s13476_s20 + $0x7d8] sm:$0xff] }
 0x185   : > { %3753 = vmatpush1.bf16.msra.mxu1 %v8906_v22  ;;  %3415 = vmatprep.subr.bf16.mxu0 %v8913_v58  ;;  %v8931_v47 = vcombine.high %v957_v34, %v961_v15  ;;  %v8930_v35 = vcombine.low %v957_v34, %v961_v15  ;;  %v985_v11 = vld [vmem:[%s13476_s20 + $0x8b8] sm:$0xff]  ;;  %v8953_v22 = vcombine.high %v980_v0, %v984_v1  ;;  %v10458_v1 = vld [vmem:[#allocation2 + $0x80] ss:$16 sps:$4 sm:$0xff]  }
 0x186   : > { %3754 = vmatprep.subr.bf16.mxu1 %v8915_v16  ;;  %3378 = vmatprep.mubr.bf16.mxu0 %v11698_v41  ;;  %v8946_v58 = vcombine.low %v973_v57, %v977_v62  ;;  %v992_v16 = vld [vmem:[%s13476_s20 + $0x8f0] sm:$0xff]  ;;  %v8955_v14 = vcombine.high %v981_v37, %v985_v11  ;;  %v1001_v43 = vld [vmem:[%s13476_s20 + $0x938] sm:$0xff] }
 0x187   : > { %3717 = vmatprep.mubr.bf16.mxu1 %v11698_v41  ;;  %v964_v41 = vld [vmem:[%s13476_s20 + $0x810] sm:$0xff]  ;;  %v10455_v57 = vld [vmem:[#allocation2 + $0x68] ss:$16 sps:$4 sm:$0xff]  }
 0x188   : > { %3416 = vmatpush1.bf16.msra.mxu0 %v8912_v29  ;;  %v8937_v53 = vcombine.high %v964_v41, %v968_v63  ;;  %v8936_v55 = vcombine.low %v964_v41, %v968_v63  ;;  %v8954_v29 = vcombine.low %v981_v37, %v985_v11  ;;  %v8970_v63 = vcombine.low %v997_v40, %v1001_v43  ;;  %v10460_v62 = vld [vmem:[#allocation2 + $0x84] ss:$16 sps:$4 sm:$0xff]  }
 0x189   : > { %3755 = vmatpush1.bf16.msra.mxu1 %v8914_v31  ;;  %3417 = vmatprep.subr.bf16.mxu0 %v8921_v33  ;;  %v996_v31 = vld [vmem:[%s13476_s20 + $0x910] sm:$0xff] }
 0x18a   : > { %3756 = vmatprep.subr.bf16.mxu1 %v8923_v38  ;;  %v1000_v33 = vld [vmem:[%s13476_s20 + $0x930] sm:$0xff] }
 0x18b   : > { %3379 = vmatmul.mubr.bf16.gmra.mrb[60].mxu0 %v11729_v61  ;;  %v8969_v15 = vcombine.high %v996_v31, %v1000_v33  ;;  %v10466_v11 = vld [vmem:[#allocation2 + $0xa4] ss:$16 sps:$4 sm:$0xff]  }
 0x18c   : > { %3718 = vmatmul.mubr.bf16.gmra.mrb[60].mxu1 %v11729_v61  ;;  %3418 = vmatpush1.bf16.msra.mxu0 %v8920_v44  ;;  %v976_v61 = vld [vmem:[%s13476_s20 + $0x870] sm:$0xff] }
 0x18d   : > { %3757 = vmatpush1.bf16.msra.mxu1 %v8922_v48  ;;  %3419 = vmatprep.subr.bf16.mxu0 %v8929_v49  ;;  %v8944_v8 = vcombine.low %v972_v5, %v976_v61  ;;  %v8971_v48 = vcombine.high %v997_v40, %v1001_v43  ;;  %v1005_v49 = vld [vmem:[%s13476_s20 + $0x958] sm:$0xff] }
 0x18e   : > { %3758 = vmatprep.subr.bf16.mxu1 %v8931_v47  ;;  %3421 = vmatprep.mubr.bf16.mxu0 %v11734_v4  ;;  %v8968_v47 = vcombine.low %v996_v31, %v1000_v33  ;;  %v8979_v51 = vcombine.high %v1005_v49, %v1005_v49  ;;  %v8978_v24 = vcombine.low %v1005_v49, %v1005_v49 }
 0x18f   : > { %3760 = vmatprep.mubr.bf16.mxu1 %v11734_v4  ;;  %v8945_v4 = vcombine.high %v972_v5, %v976_v61  ;;  %v10454_v5 = vld [vmem:[#allocation2 + $0x64] ss:$16 sps:$4 sm:$0xff]  }
 0x190   : > { %3420 = vmatpush1.bf16.msra.mxu0 %v8928_v23 }
 0x191   : > { %3759 = vmatpush1.bf16.msra.mxu1 %v8930_v35  ;;  %3502 = vmatprep.subr.bf16.mxu0 %v8937_v53  ;;  %v10436_v35 = vld [vmem:[#allocation2 + $0x4] ss:$16 sps:$4 sm:$0xff]   ;;  %v2593_v53 = vsel %vm2573_vm0, %v8978_v24, 0  ;;  %v10481_v24 = vld [vmem:[#allocation2 + $0xec] ss:$16 sps:$4 sm:$0xff]  }
 0x192   : > { %3841 = vmatprep.subr.bf16.mxu1 %v8939_v36  ;;  %v10439_v36 = vld [vmem:[#allocation2 + $0xc] ss:$16 sps:$4 sm:$0xff]  }
 0x193   : > { %3422 = vmatmul.mubr.bf16.vlgmr.msra.gmra.mrb[32].mxu0 %v11765_v26 }
 0x194   : > { %3761 = vmatmul.mubr.bf16.vlgmr.msra.gmra.mrb[32].mxu1 %v11765_v26  ;;  %3503 = vmatpush1.bf16.msra.mxu0 %v8936_v55  ;;  %v988_v26 = vld [vmem:[%s13476_s20 + $0x8d0] sm:$0xff] }
 0x195   : > { %3431 = vmatprep.mubr.bf16.mxu0 %v11767_v28  ;;  %3770 = vmatprep.mubr.bf16.mxu1 %v11767_v28  ;;  %v993_v28 = vld [vmem:[%s13476_s20 + $0x8f8] sm:$0xff]  ;;  %v8961_v45 = vcombine.high %v988_v26, %v992_v16  ;;  %v8960_v34 = vcombine.low %v988_v26, %v992_v16  ;;  %v10452_v55 = vld [vmem:[#allocation2 + $0x60] ss:$16 sps:$4 sm:$0xff]  }
 0x196   : > { %3504 = vmatprep.subr.bf16.mxu0 %v8945_v4  ;;  %3842 = vmatpush1.bf16.msra.mxu1 %v8938_v9  ;;  %v8963_v38 = vcombine.high %v989_v17, %v993_v28  ;;  %v8962_v44 = vcombine.low %v989_v17, %v993_v28  ;;  %v10463_v4 = vld [vmem:[#allocation2 + $0x8c] ss:$16 sps:$4 sm:$0xff]   ;;  %v10467_v28 = vld [vmem:[#allocation2 + $0xa8] ss:$16 sps:$4 sm:$0xff]  }
 0x197   : > { %3843 = vmatprep.subr.bf16.mxu1 %v8947_v10 }
 0x198   : > { %3505 = vmatpush1.bf16.msra.mxu0 %v8944_v8  ;;  %v10461_v8 = vld [vmem:[#allocation2 + $0x88] ss:$16 sps:$4 sm:$0xff]  }
 0x199   : > { %3506 = vmatprep.subr.bf16.mxu0 %v8953_v22  ;;  %v10469_v22 = vld [vmem:[#allocation2 + $0xac] ss:$16 sps:$4 sm:$0xff]  }
 0x19a   : > { %3844 = vmatpush1.bf16.msra.mxu1 %v8946_v58 }
 0x19b   : > { %3432 = vmatmul.mubr.bf16.gmra.mrb[36].mxu0 %v11801_v54  ;;  %3845 = vmatprep.subr.bf16.mxu1 %v8955_v14  ;;  %v10464_v14 = vld [vmem:[#allocation2 + $0xa0] ss:$16 sps:$4 sm:$0xff]  }
 0x19c   : > { %3771 = vmatmul.mubr.bf16.gmra.mrb[36].mxu1 %v11801_v54  ;;  %3441 = vmatprep.mubr.bf16.mxu0 %v11803_v56  ;;  %v1004_v54 = vld [vmem:[%s13476_s20 + $0x950] sm:$0xff] }
 0x19d   : > { %3780 = vmatprep.mubr.bf16.mxu1 %v11803_v56  ;;  %3507 = vmatpush1.bf16.msra.mxu0 %v8952_v27  ;;  %v8977_v56 = vcombine.high %v1004_v54, %v1004_v54  ;;  %v8976_v41 = vcombine.low %v1004_v54, %v1004_v54  ;;  %v10472_v27 = vld [vmem:[#allocation2 + $0xc4] ss:$16 sps:$4 sm:$0xff]  }
 0x19e   : > { %3508 = vmatprep.subr.bf16.mxu0 %v8961_v45  ;;  %3846 = vmatpush1.bf16.msra.mxu1 %v8954_v29 }
 0x19f   : > { %3847 = vmatprep.subr.bf16.mxu1 %v8963_v38  ;;  %v2587_v23 = vsel %vm2573_vm0, %v8976_v41, 0 }
 0x1a1   : > { %3509 = vmatpush1.bf16.msra.mxu0 %v8960_v34 }
 0x1a2   : > { %3510 = vmatprep.subr.bf16.mxu0 %v8969_v15  ;;  %3848 = vmatpush1.bf16.msra.mxu1 %v8962_v44  ;;  %v10470_v15 = vld [vmem:[#allocation2 + $0xc0] ss:$16 sps:$4 sm:$0xff]  }
 0x1a3   : > { %3442 = vmatmul.mubr.bf16.gmra.mrb[40].mxu0 %v11831_v18  ;;  %3849 = vmatprep.subr.bf16.mxu1 %v8971_v48 }
 0x1a4   : > { %3781 = vmatmul.mubr.bf16.gmra.mrb[40].mxu1 %v11831_v18  ;;  %3451 = vmatprep.mubr.bf16.mxu0 %v11833_v20  ;;  %v10434_v18 = vld [vmem:[#allocation2] ss:$16 sps:$4 sm:$0xff]  }
 0x1a5   : > { %3790 = vmatprep.mubr.bf16.mxu1 %v11833_v20  ;;  %3511 = vmatpush1.bf16.msra.mxu0 %v8968_v47  ;;  %v10437_v20 = vld [vmem:[#allocation2 + $0x8] ss:$16 sps:$4 sm:$0xff]  }
 0x1a6   : > { %8998 = vmatprep.subr.msk.bf16.mxu0 %vm2573_vm0, %v8977_v56  ;;  %3850 = vmatpush1.bf16.msra.mxu1 %v8970_v63  ;;  %v10473_v47 = vld [vmem:[#allocation2 + $0xc8] ss:$16 sps:$4 sm:$0xff]   ;;  %v10478_v56 = vld [vmem:[#allocation2 + $0xe4] ss:$16 sps:$4 sm:$0xff]  }
 0x1a7   : > { %9007 = vmatprep.subr.msk.bf16.mxu1 %vm2573_vm0, %v8979_v51 }
 0x1a9   : > { %3513 = vmatpush1.bf16.msra.mxu0 %v2587_v23 }
 0x1aa   : > { %3852 = vmatpush1.bf16.msra.mxu1 %v2593_v53  ;;  %5704 = vmatprep.subr.bf16.mxu0 %v10436_v35 }
 0x1ab   : > { %3452 = vmatmul.mubr.bf16.gmra.mrb[44].mxu0 %v11867_v46  ;;  %6156 = vmatprep.subr.bf16.mxu1 %v10439_v36 }
 0x1ac   : > { %3791 = vmatmul.mubr.bf16.gmra.mrb[44].mxu1 %v11867_v46  ;;  %3461 = vmatprep.mubr.bf16.mxu0 %v11873_v50  ;;  %v10442_v46 = vld [vmem:[#allocation2 + $0x24] ss:$16 sps:$4 sm:$0xff]  }
 0x1ad   : > { %3800 = vmatprep.mubr.bf16.mxu1 %v11873_v50  ;;  %v10445_v50 = vld [vmem:[#allocation2 + $0x2c] ss:$16 sps:$4 sm:$0xff]  }
 0x1b3   : > { %3462 = vmatmul.mubr.bf16.gmra.mrb[48].mxu0 %v11883_v59 }
 0x1b4   : > { %3801 = vmatmul.mubr.bf16.gmra.mrb[48].mxu1 %v11883_v59  ;;  %3471 = vmatprep.mubr.bf16.mxu0 %v11885_v60  ;;  %v10440_v59 = vld [vmem:[#allocation2 + $0x20] ss:$16 sps:$4 sm:$0xff]  }
 0x1b5   : > { %3810 = vmatprep.mubr.bf16.mxu1 %v11885_v60  ;;  %v10443_v60 = vld [vmem:[#allocation2 + $0x28] ss:$16 sps:$4 sm:$0xff]  }
 0x1bb   : > { %3472 = vmatmul.mubr.bf16.gmra.mrb[52].mxu0 %v11895_v3 }
 0x1bc   : > { %3811 = vmatmul.mubr.bf16.gmra.mrb[52].mxu1 %v11895_v3  ;;  %3481 = vmatprep.mubr.bf16.mxu0 %v11897_v6  ;;  %v10448_v3 = vld [vmem:[#allocation2 + $0x44] ss:$16 sps:$4 sm:$0xff]  }
 0x1bd   : > { %3820 = vmatprep.mubr.bf16.mxu1 %v11897_v6  ;;  %v10451_v6 = vld [vmem:[#allocation2 + $0x4c] ss:$16 sps:$4 sm:$0xff]  }
 0x1c3   : > { %3482 = vmatmul.mubr.bf16.gmra.mrb[56].mxu0 %v11907_v12 }
 0x1c4   : > { %3821 = vmatmul.mubr.bf16.gmra.mrb[56].mxu1 %v11907_v12  ;;  %3491 = vmatprep.mubr.bf16.mxu0 %v11909_v13  ;;  %v1008_v12 = vlaneseq }
 0x1c5   : > { %3830 = vmatprep.mubr.bf16.mxu1 %v11909_v13  ;;  %v10446_v13 = vld [vmem:[#allocation2 + $0x40] ss:$16 sps:$4 sm:$0xff]  }
 0x1c6   : > { %v12521_v61 = vshrl.u32 %v1008_v12, 7  ;;  %v10484_v12 = vld [vmem:[#allocation2 + $0x104] ss:$16 sps:$4 sm:$0xff]  }
 0x1c8   : > { %v12528_v0 = vsub.s32 0, %v12521_v61  ;;  %v1018_v9 = vsub.s32 2, %v12521_v61  ;;  %v12535_v10 = vsub.s32 1, %v12521_v61  ;;  %v1022_v37 = vsub.s32 3, %v12521_v61 }
 0x1cb   : > { %3492 = vmatmul.mubr.bf16.gmra.mrb[60].mxu0 %v11917_v19 }
 0x1cc   : > { %3831 = vmatmul.mubr.bf16.gmra.mrb[60].mxu1 %v11917_v19  ;;  %3534 = vmatprep.mubr.bf16.mxu0 %v11065_v30  ;;  %v10449_v19 = vld [vmem:[#allocation2 + $0x48] ss:$16 sps:$4 sm:$0xff]  }
 0x1cd   : > { %3873 = vmatprep.mubr.bf16.mxu1 %v11065_v30 }
 0x1d3   : > { %8999 = vmatmul.mubr.msk.bf16.vlgmr.msra.gmra.mrb[32].mxu0 %vm2548_vm1, %v11937_v39 }
 0x1d4   : > { %9008 = vmatmul.mubr.msk.bf16.vlgmr.msra.gmra.mrb[32].mxu1 %vm2548_vm1, %v11937_v39  ;;  %5705 = vmatpush1.bf16.msra.mxu0 %v10434_v18  ;;  %v10457_v39 = vld [vmem:[#allocation2 + $0x6c] ss:$16 sps:$4 sm:$0xff]  }
 0x1d5   : > { %6157 = vmatpush1.bf16.msra.mxu1 %v10437_v20  ;;  %5706 = vmatprep.subr.bf16.mxu0 %v10442_v46 }
 0x1d6   : > { %6158 = vmatprep.subr.bf16.mxu1 %v10445_v50  ;;  %3544 = vmatprep.mubr.bf16.mxu0 %v11065_v30  ;;  %v10476_v50 = vld [vmem:[#allocation2 + $0xe0] ss:$16 sps:$4 sm:$0xff]  }
 0x1d7   : > { %3883 = vmatprep.mubr.bf16.mxu1 %v11065_v30 }
 0x1d8   : > { %5707 = vmatpush1.bf16.msra.mxu0 %v10440_v59 }
 0x1d9   : > { %6159 = vmatpush1.bf16.msra.mxu1 %v10443_v60  ;;  %5708 = vmatprep.subr.bf16.mxu0 %v10448_v3 }
 0x1da   : > { %6160 = vmatprep.subr.bf16.mxu1 %v10451_v6  ;;  %v10479_v6 = vld [vmem:[#allocation2 + $0xe8] ss:$16 sps:$4 sm:$0xff]  }
 0x1db   : > { %9000 = vmatmul.mubr.msk.bf16.gmra.mrb[36].mxu0 %vm2548_vm1, %v11975_v7 }
 0x1dc   : > { %9009 = vmatmul.mubr.msk.bf16.gmra.mrb[36].mxu1 %vm2548_vm1, %v11975_v7  ;;  %5709 = vmatpush1.bf16.msra.mxu0 %v10446_v13  ;;  %v1006_v7 = vld [vmem:[%s13446_s2] sm:$0xff] }
 0x1dd   : > { %6161 = vmatpush1.bf16.msra.mxu1 %v10449_v19  ;;  %5710 = vmatprep.subr.bf16.mxu0 %v10454_v5  ;;  %v12541_v58 = vrot.slane %v1006_v7, %v12528_v0  ;;  %v12547_v26 = vrot.slane %v1006_v7, %v1018_v9  ;;  %v12550_v16 = vrot.slane %v1006_v7, %v12535_v10 }
 0x1de   : > { %6162 = vmatprep.subr.bf16.mxu1 %v10457_v39  ;;  %3554 = vmatprep.mubr.bf16.mxu0 %v11065_v30  ;;  %v12554_v17 = vrot.slane %v1006_v7, %v1022_v37  ;;  %v10487_v39 = vld [vmem:[#allocation2 + $0x10c] ss:$16 sps:$4 sm:$0xff]  }
 0x1df   : > { %3893 = vmatprep.mubr.bf16.mxu1 %v11065_v30 }
 0x1e0   : > { %5711 = vmatpush1.bf16.msra.mxu0 %v10452_v55 }
 0x1e1   : > { %6163 = vmatpush1.bf16.msra.mxu1 %v10455_v57  ;;  %5712 = vmatprep.subr.bf16.mxu0 %v10460_v62 }
 0x1e2   : > { %6164 = vmatprep.subr.bf16.mxu1 %v10463_v4 }
 0x1e3   : > { %9001 = vmatmul.mubr.msk.bf16.gmra.mrb[40].mxu0 %vm2548_vm1, %v12009_v52 }
 0x1e4   : > { %9010 = vmatmul.mubr.msk.bf16.gmra.mrb[40].mxu1 %vm2548_vm1, %v12009_v52  ;;  %5713 = vmatpush1.bf16.msra.mxu0 %v10458_v1  ;;  %v10475_v52 = vld [vmem:[#allocation2 + $0xcc] ss:$16 sps:$4 sm:$0xff]  }
 0x1e5   : > { %6165 = vmatpush1.bf16.msra.mxu1 %v10461_v8  ;;  %5714 = vmatprep.subr.bf16.mxu0 %v10466_v11  ;;  %v10482_v11 = vld [vmem:[#allocation2 + $0x100] ss:$16 sps:$4 sm:$0xff]  }
 0x1e6   : > { %v2858_v45 = vpop.f32.mrb[0].mxu0  ;;  %6166 = vmatprep.subr.bf16.mxu1 %v10469_v22  ;;  %3564 = vmatprep.mubr.bf16.mxu0 %v11065_v30 }
 0x1e7   : > { %v9687_v29 = vadd.f32 %v2858_v45, %v12541_v58  ;;  %v3197_v31 = vpop.f32.mrb[0].mxu1  ;;  %v2860_v33 = vpop.f32.mrb[1].mxu0  ;;  %3903 = vmatprep.mubr.bf16.mxu1 %v11065_v30  ;;  %v10485_v45 = vld [vmem:[#allocation2 + $0x108] ss:$16 sps:$4 sm:$0xff]  }
 0x1e8   : > { %v9719_v38 = vadd.f32 %v3197_v31, %v12547_v26  ;;  %v9688_v40 = vadd.f32 %v2860_v33, %v12550_v16  ;;  %v3199_v43 = vpop.f32.mrb[1].mxu1  ;;  %v2862_v34 = vpop.f32.mrb[2].mxu0  ;;  %5715 = vmatpush1.bf16.msra.mxu0 %v10464_v14 }
 0x1e9   : > { %v9720_v44 = vadd.f32 %v3199_v43, %v12554_v17  ;;  %v9689_v54 = vadd.f32 %v2862_v34, %v12541_v58  ;;  %v3201_v48 = vpop.f32.mrb[2].mxu1  ;;  %6167 = vmatpush1.bf16.msra.mxu1 %v10467_v28  ;;  %v2864_v49 = vpop.f32.mrb[3].mxu0  ;;  %5716 = vmatprep.subr.bf16.mxu0 %v10472_v27  ;;  %v3954_v23 = vmax.f32 %v9687_v29, 0.0 }
 0x1ea   : > { %v9721_v41 = vadd.f32 %v3201_v48, %v12547_v26  ;;  %v9690_v63 = vadd.f32 %v2864_v49, %v12550_v16  ;;  %v3203_v51 = vpop.f32.mrb[3].mxu1  ;;  %6168 = vmatprep.subr.bf16.mxu1 %v10475_v52  ;;  %v3956_v36 = vmax.f32 %v9719_v38, 0.0  ;;  %v3955_v18 = vmax.f32 %v9688_v40, 0.0  ;;  %v10490_v52 = vld [vmem:[#allocation2 + $0x124] ss:$16 sps:$4 sm:$0xff]  }
 0x1eb   : > { %v3962_v35 = vmax.f32 %v9689_v54, 0.0  ;;  %v9722_v53 = vadd.f32 %v3203_v51, %v12554_v17  ;;  %9002 = vmatmul.mubr.msk.bf16.gmra.mrb[44].mxu0 %vm2548_vm1, %v12043_v32  ;;  %v3957_v59 = vmax.f32 %v9720_v44, 0.0  ;;  %v10493_v38 = vld [vmem:[#allocation2 + $0x12c] ss:$16 sps:$4 sm:$0xff]   ;;  %v10488_v49 = vld [vmem:[#allocation2 + $0x120] ss:$16 sps:$4 sm:$0xff]  }
 0x1ec   : > { %v3964_v20 = vmax.f32 %v9721_v41, 0.0  ;;  %v3963_v46 = vmax.f32 %v9690_v63, 0.0  ;;  %9011 = vmatmul.mubr.msk.bf16.gmra.mrb[44].mxu1 %vm2548_vm1, %v12043_v32  ;;  %5717 = vmatpush1.bf16.msra.mxu0 %v10470_v15  ;;  %v10491_v63 = vld [vmem:[#allocation2 + $0x128] ss:$16 sps:$4 sm:$0xff]   ;;  %v10496_v51 = vld [vmem:[#allocation2 + $0x144] ss:$16 sps:$4 sm:$0xff]  }
 0x1ed   : > { %v12570_v60 = vpack.c.bf16 %v3962_v35, %v3954_v23  ;;  %v3965_v3 = vmax.f32 %v9722_v53, 0.0  ;;  %6169 = vmatpush1.bf16.msra.mxu1 %v10473_v47  ;;  %5718 = vmatprep.subr.bf16.mxu0 %v10478_v56  ;;  %v10499_v53 = vld [vmem:[#allocation2 + $0x14c] ss:$16 sps:$4 sm:$0xff]  }
 0x1ee   : > { %v12572_v13 = vpack.c.bf16 %v3964_v20, %v3956_v36  ;;  %v12574_v19 = vpack.c.bf16 %v3963_v46, %v3955_v18  ;;  %v2868_v5 = vpop.f32.mrb[4].mxu0  ;;  %6170 = vmatprep.subr.bf16.mxu1 %v10481_v24  ;;  %3574 = vmatprep.mubr.bf16.mxu0 %v11065_v30 }
 0x1ef   : > { %v12577_v32 = vpack.c.bf16 %v3965_v3, %v3957_v59  ;;  %v9691_v55 = vadd.f32 %v2868_v5, %v12541_v58  ;;  %v3207_v57 = vpop.f32.mrb[4].mxu1  ;;  %v2870_v62 = vpop.f32.mrb[5].mxu0  ;;  %3913 = vmatprep.mubr.bf16.mxu1 %v11065_v30 }
 0x1f0   : > { %v9723_v4 = vadd.f32 %v3207_v57, %v12547_v26  ;;  %v9692_v1 = vadd.f32 %v2870_v62, %v12550_v16  ;;  %v3209_v7 = vpop.f32.mrb[5].mxu1  ;;  %v2872_v8 = vpop.f32.mrb[6].mxu0  ;;  %5719 = vmatpush1.bf16.msra.mxu0 %v10476_v50  ;;  %v10497_v57 = vld [vmem:[#allocation2 + $0x148] ss:$16 sps:$4 sm:$0xff]   ;;  %v10502_v62 = vld [vmem:[#allocation2 + $0x164] ss:$16 sps:$4 sm:$0xff]  }
 0x1f1   : > { %v9724_v22 = vadd.f32 %v3209_v7, %v12554_v17  ;;  %v9693_v14 = vadd.f32 %v2872_v8, %v12541_v58  ;;  %v3211_v28 = vpop.f32.mrb[6].mxu1  ;;  %6171 = vmatpush1.bf16.msra.mxu1 %v10479_v6  ;;  %v2874_v27 = vpop.f32.mrb[7].mxu0  ;;  %5720 = vmatprep.subr.bf16.mxu0 %v10484_v12  ;;  %v3970_v40 = vmax.f32 %v9691_v55, 0.0  ;;  %v10494_v6 = vld [vmem:[#allocation2 + $0x140] ss:$16 sps:$4 sm:$0xff]  }
 0x1f2   : > { %v9725_v29 = vadd.f32 %v3211_v28, %v12547_v26  ;;  %v9694_v31 = vadd.f32 %v2874_v27, %v12550_v16  ;;  %v3213_v33 = vpop.f32.mrb[7].mxu1  ;;  %6172 = vmatprep.subr.bf16.mxu1 %v10487_v39  ;;  %v3972_v15 = vmax.f32 %v9723_v4, 0.0  ;;  %v3971_v44 = vmax.f32 %v9692_v1, 0.0  ;;  %v10505_v8 = vld [vmem:[#allocation2 + $0x16c] ss:$16 sps:$4 sm:$0xff]  }
 0x1f3   : > { %v3978_v43 = vmax.f32 %v9693_v14, 0.0  ;;  %v9726_v34 = vadd.f32 %v3213_v33, %v12554_v17  ;;  %9003 = vmatmul.mubr.msk.bf16.gmra.mrb[48].mxu0 %vm2548_vm1, %v12077_v2  ;;  %v3973_v47 = vmax.f32 %v9724_v22, 0.0 }
 0x1f4   : > { %v3980_v54 = vmax.f32 %v9725_v29, 0.0  ;;  %v3979_v48 = vmax.f32 %v9694_v31, 0.0  ;;  %9012 = vmatmul.mubr.msk.bf16.gmra.mrb[48].mxu1 %vm2548_vm1, %v12077_v2  ;;  %5721 = vmatpush1.bf16.msra.mxu0 %v10482_v11  ;;  %v10500_v29 = vld [vmem:[#allocation2 + $0x160] ss:$16 sps:$4 sm:$0xff]  }
 0x1f5   : > { %v12592_v56 = vpack.c.bf16 %v3978_v43, %v3970_v40  ;;  %v3981_v41 = vmax.f32 %v9726_v34, 0.0  ;;  %6173 = vmatpush1.bf16.msra.mxu1 %v10485_v45  ;;  %5722 = vmatprep.subr.bf16.mxu0 %v10490_v52  ;;  %v10503_v40 = vld [vmem:[#allocation2 + $0x168] ss:$16 sps:$4 sm:$0xff]   ;;  %v10508_v43 = vld [vmem:[#allocation2 + $0x184] ss:$16 sps:$4 sm:$0xff]  }
 0x1f6   : > { %v12594_v24 = vpack.c.bf16 %v3980_v54, %v3972_v15  ;;  %v12596_v23 = vpack.c.bf16 %v3979_v48, %v3971_v44  ;;  %v2878_v35 = vpop.f32.mrb[8].mxu0  ;;  %6174 = vmatprep.subr.bf16.mxu1 %v10493_v38  ;;  %3584 = vmatprep.mubr.bf16.mxu0 %v11065_v30  ;;  %v10511_v54 = vld [vmem:[#allocation2 + $0x18c] ss:$16 sps:$4 sm:$0xff]  }
 0x1f7   : > { %v12599_v2 = vpack.c.bf16 %v3981_v41, %v3973_v47  ;;  %v9695_v36 = vadd.f32 %v2878_v35, %v12541_v58  ;;  %v3217_v18 = vpop.f32.mrb[8].mxu1  ;;  %v2880_v20 = vpop.f32.mrb[9].mxu0  ;;  %3923 = vmatprep.mubr.bf16.mxu1 %v11065_v30 }
 0x1f8   : > { %v9727_v46 = vadd.f32 %v3217_v18, %v12547_v26  ;;  %v9696_v50 = vadd.f32 %v2880_v20, %v12550_v16  ;;  %v3219_v59 = vpop.f32.mrb[9].mxu1  ;;  %v2882_v3 = vpop.f32.mrb[10].mxu0  ;;  %5723 = vmatpush1.bf16.msra.mxu0 %v10488_v49 }
 0x1f9   : > { %v9728_v12 = vadd.f32 %v3219_v59, %v12554_v17  ;;  %v9697_v5 = vadd.f32 %v2882_v3, %v12541_v58  ;;  %v3221_v39 = vpop.f32.mrb[10].mxu1  ;;  %6175 = vmatpush1.bf16.msra.mxu1 %v10491_v63  ;;  %v2884_v55 = vpop.f32.mrb[11].mxu0  ;;  %5724 = vmatprep.subr.bf16.mxu0 %v10496_v51  ;;  %v3986_v11 = vmax.f32 %v9695_v36, 0.0  ;;  %v10514_v59 = vld [vmem:[#allocation2 + $0x1a4] ss:$16 sps:$4 sm:$0xff]  }
 0x1fa   : > { %v9729_v4 = vadd.f32 %v3221_v39, %v12547_v26  ;;  %v9698_v1 = vadd.f32 %v2884_v55, %v12550_v16  ;;  %v3223_v7 = vpop.f32.mrb[11].mxu1  ;;  %6176 = vmatprep.subr.bf16.mxu1 %v10499_v53  ;;  %v3988_v28 = vmax.f32 %v9727_v46, 0.0  ;;  %v3987_v27 = vmax.f32 %v9696_v50, 0.0  ;;  %v10506_v53 = vld [vmem:[#allocation2 + $0x180] ss:$16 sps:$4 sm:$0xff]  }
 0x1fb   : > { %v3994_v22 = vmax.f32 %v9697_v5, 0.0  ;;  %v9730_v14 = vadd.f32 %v3223_v7, %v12554_v17  ;;  %9004 = vmatmul.mubr.msk.bf16.gmra.mrb[52].mxu0 %vm2548_vm1, %v12111_v25  ;;  %v3989_v31 = vmax.f32 %v9728_v12, 0.0  ;;  %v10509_v50 = vld [vmem:[#allocation2 + $0x188] ss:$16 sps:$4 sm:$0xff]   ;;  %v10517_v5 = vld [vmem:[#allocation2 + $0x1ac] ss:$16 sps:$4 sm:$0xff]  }
 0x1fc   : > { %v3996_v45 = vmax.f32 %v9729_v4, 0.0  ;;  %v3995_v52 = vmax.f32 %v9698_v1, 0.0  ;;  %9013 = vmatmul.mubr.msk.bf16.gmra.mrb[52].mxu1 %vm2548_vm1, %v12111_v25  ;;  %5725 = vmatpush1.bf16.msra.mxu0 %v10494_v6 }
 0x1fd   : > { %v12614_v33 = vpack.c.bf16 %v3994_v22, %v3986_v11  ;;  %v3997_v38 = vmax.f32 %v9730_v14, 0.0  ;;  %6177 = vmatpush1.bf16.msra.mxu1 %v10497_v57  ;;  %5726 = vmatprep.subr.bf16.mxu0 %v10502_v62 }
 0x1fe   : > { %v12616_v34 = vpack.c.bf16 %v3996_v45, %v3988_v28  ;;  %v12618_v15 = vpack.c.bf16 %v3995_v52, %v3987_v27  ;;  %v2888_v44 = vpop.f32.mrb[12].mxu0  ;;  %6178 = vmatprep.subr.bf16.mxu1 %v10505_v8  ;;  %3594 = vmatprep.mubr.bf16.mxu0 %v11065_v30  ;;  %v10512_v8 = vld [vmem:[#allocation2 + $0x1a0] ss:$16 sps:$4 sm:$0xff]   ;;  %v10515_v28 = vld [vmem:[#allocation2 + $0x1a8] ss:$16 sps:$4 sm:$0xff]  }
 0x1ff   : > { %v12621_v25 = vpack.c.bf16 %v3997_v38, %v3989_v31  ;;  %v9699_v48 = vadd.f32 %v2888_v44, %v12541_v58  ;;  %v3227_v49 = vpop.f32.mrb[12].mxu1  ;;  %v2890_v47 = vpop.f32.mrb[13].mxu0  ;;  %3933 = vmatprep.mubr.bf16.mxu1 %v11065_v30  ;;  %v10520_v27 = vld [vmem:[#allocation2 + $0x1c4] ss:$16 sps:$4 sm:$0xff]   ;;  %v10523_v31 = vld [vmem:[#allocation2 + $0x1cc] ss:$16 sps:$4 sm:$0xff]  }
 0x200   : > { %v9731_v41 = vadd.f32 %v3227_v49, %v12547_v26  ;;  %v9700_v63 = vadd.f32 %v2890_v47, %v12550_v16  ;;  %v3229_v51 = vpop.f32.mrb[13].mxu1  ;;  %v2892_v35 = vpop.f32.mrb[14].mxu0  ;;  %5727 = vmatpush1.bf16.msra.mxu0 %v10500_v29  ;;  %v10518_v47 = vld [vmem:[#allocation2 + $0x1c0] ss:$16 sps:$4 sm:$0xff]  }
 0x201   : > { %v9732_v36 = vadd.f32 %v3229_v51, %v12554_v17  ;;  %v9701_v18 = vadd.f32 %v2892_v35, %v12541_v58  ;;  %v3231_v20 = vpop.f32.mrb[14].mxu1  ;;  %6179 = vmatpush1.bf16.msra.mxu1 %v10503_v40  ;;  %v2894_v46 = vpop.f32.mrb[15].mxu0  ;;  %5728 = vmatprep.subr.bf16.mxu0 %v10508_v43  ;;  %v4002_v39 = vmax.f32 %v9699_v48, 0.0 }
 0x202   : > { %v9733_v3 = vadd.f32 %v3231_v20, %v12547_v26  ;;  %v9702_v6 = vadd.f32 %v2894_v46, %v12550_v16  ;;  %v3233_v12 = vpop.f32.mrb[15].mxu1  ;;  %6180 = vmatprep.subr.bf16.mxu1 %v10511_v54  ;;  %v4004_v62 = vmax.f32 %v9731_v41, 0.0  ;;  %v4003_v4 = vmax.f32 %v9700_v63, 0.0  ;;  %v10526_v20 = vld [vmem:[#allocation2 + $0x1e4] ss:$16 sps:$4 sm:$0xff]  }
 0x203   : > { %v4010_v55 = vmax.f32 %v9701_v18, 0.0  ;;  %v9734_v57 = vadd.f32 %v3233_v12, %v12554_v17  ;;  %9005 = vmatmul.mubr.msk.bf16.gmra.mrb[56].mxu0 %vm2548_vm1, %v12145_v42  ;;  %v4005_v11 = vmax.f32 %v9732_v36, 0.0 }
 0x204   : > { %v4012_v1 = vmax.f32 %v9733_v3, 0.0  ;;  %v4011_v7 = vmax.f32 %v9702_v6, 0.0  ;;  %9014 = vmatmul.mubr.msk.bf16.gmra.mrb[56].mxu1 %vm2548_vm1, %v12145_v42  ;;  %5729 = vmatpush1.bf16.msra.mxu0 %v10506_v53  ;;  %v10521_v53 = vld [vmem:[#allocation2 + $0x1c8] ss:$16 sps:$4 sm:$0xff]   ;;  %v10529_v3 = vld [vmem:[#allocation2 + $0x1ec] ss:$16 sps:$4 sm:$0xff]  }
 0x205   : > { %v12636_v22 = vpack.c.bf16 %v4010_v55, %v4002_v39  ;;  %v4013_v14 = vmax.f32 %v9734_v57, 0.0  ;;  %6181 = vmatpush1.bf16.msra.mxu1 %v10509_v50  ;;  %5730 = vmatprep.subr.bf16.mxu0 %v10514_v59  ;;  %v10524_v55 = vld [vmem:[#allocation2 + $0x1e0] ss:$16 sps:$4 sm:$0xff]  }
 0x206   : > { %v12638_v45 = vpack.c.bf16 %v4012_v1, %v4004_v62  ;;  %v12640_v52 = vpack.c.bf16 %v4011_v7, %v4003_v4  ;;  %v2898_v29 = vpop.f32.mrb[16].mxu0  ;;  %6182 = vmatprep.subr.bf16.mxu1 %v10517_v5  ;;  %3604 = vmatprep.mubr.bf16.mxu0 %v11065_v30  ;;  %v10527_v1 = vld [vmem:[#allocation2 + $0x1e8] ss:$16 sps:$4 sm:$0xff]   ;;  %v10532_v7 = vld [vmem:[#allocation2 + $0x204] ss:$16 sps:$4 sm:$0xff]  }
 0x207   : > { %v12643_v42 = vpack.c.bf16 %v4013_v14, %v4005_v11  ;;  %v9703_v38 = vadd.f32 %v2898_v29, %v12541_v58  ;;  %v3237_v40 = vpop.f32.mrb[16].mxu1  ;;  %v2900_v43 = vpop.f32.mrb[17].mxu0  ;;  %3943 = vmatprep.mubr.bf16.mxu1 %v11065_v30 }
 0x208   : > { %v9735_v44 = vadd.f32 %v3237_v40, %v12547_v26  ;;  %v9704_v54 = vadd.f32 %v2900_v43, %v12550_v16  ;;  %v3239_v48 = vpop.f32.mrb[17].mxu1  ;;  %v2902_v49 = vpop.f32.mrb[18].mxu0  ;;  %5731 = vmatpush1.bf16.msra.mxu0 %v10512_v8 }
 0x209   : > { %v9736_v41 = vadd.f32 %v3239_v48, %v12554_v17  ;;  %v9705_v63 = vadd.f32 %v2902_v49, %v12541_v58  ;;  %v3241_v51 = vpop.f32.mrb[18].mxu1  ;;  %6183 = vmatpush1.bf16.msra.mxu1 %v10515_v28  ;;  %v2904_v35 = vpop.f32.mrb[19].mxu0  ;;  %5732 = vmatprep.subr.bf16.mxu0 %v10520_v27  ;;  %v4018_v46 = vmax.f32 %v9703_v38, 0.0 }
 0x20a   : > { %v9737_v36 = vadd.f32 %v3241_v51, %v12547_v26  ;;  %v9706_v30 = vadd.f32 %v2904_v35, %v12550_v16  ;;  %v3243_v18 = vpop.f32.mrb[19].mxu1  ;;  %6184 = vmatprep.subr.bf16.mxu1 %v10523_v31  ;;  %v4020_v6 = vmax.f32 %v9735_v44, 0.0  ;;  %v4019_v12 = vmax.f32 %v9704_v54, 0.0  ;;  %v10533_v35 = vld [vmem:[#allocation2 + $0x208] ss:$16 sps:$4 sm:$0xff]  }
 0x20b   : > { %v4026_v50 = vmax.f32 %v9705_v63, 0.0  ;;  %v9738_v59 = vadd.f32 %v3243_v18, %v12554_v17  ;;  %9006 = vmatmul.mubr.msk.bf16.gmra.mrb[60].mxu0 %vm2548_vm1, %v12179_v21  ;;  %v4021_v57 = vmax.f32 %v9736_v41, 0.0 }
 0x20c   : > { %v4028_v5 = vmax.f32 %v9737_v36, 0.0  ;;  %v4027_v39 = vmax.f32 %v9706_v30, 0.0  ;;  %9015 = vmatmul.mubr.msk.bf16.gmra.mrb[60].mxu1 %vm2548_vm1, %v12179_v21  ;;  %5733 = vmatpush1.bf16.msra.mxu0 %v10518_v47  ;;  %v10535_v21 = vld [vmem:[#allocation2 + $0x20c] ss:$16 sps:$4 sm:$0xff]   ;;  %v10530_v47 = vld [vmem:[#allocation2 + $0x200] ss:$16 sps:$4 sm:$0xff]  }
 0x20d   : > { %v12658_v62 = vpack.c.bf16 %v4026_v50, %v4018_v46  ;;  %v4029_v4 = vmax.f32 %v9738_v59, 0.0  ;;  %5736 = vmatprep.mubr.bf16.mxu0 %v12574_v19  ;;  %6185 = vmatpush1.bf16.msra.mxu1 %v10521_v53  ;;  %v10538_v53 = vld [vmem:[#allocation2 + $0x224] ss:$16 sps:$4 sm:$0xff]  }
 0x20e   : > { %v12661_v8 = vpack.c.bf16 %v4028_v5, %v4020_v6  ;;  %v12663_v11 = vpack.c.bf16 %v4027_v39, %v4019_v12  ;;  %6188 = vmatprep.mubr.bf16.mxu1 %v12574_v19  ;;  %v2908_v14 = vpop.f32.mrb[20].mxu0  ;;  %5734 = vmatprep.subr.bf16.mxu0 %v10526_v20  ;;  %v10541_v20 = vld [vmem:[#allocation2 + $0x22c] ss:$16 sps:$4 sm:$0xff]   ;;  %v10536_v39 = vld [vmem:[#allocation2 + $0x220] ss:$16 sps:$4 sm:$0xff]  }
 0x20f   : > { %v12666_v28 = vpack.c.bf16 %v4029_v4, %v4021_v57  ;;  %v9707_v27 = vadd.f32 %v2908_v14, %v12541_v58  ;;  %v3247_v29 = vpop.f32.mrb[20].mxu1  ;;  %v2910_v31 = vpop.f32.mrb[21].mxu0  ;;  %6186 = vmatprep.subr.bf16.mxu1 %v10529_v3 }
 0x210   : > { %v9739_v38 = vadd.f32 %v3247_v29, %v12547_v26  ;;  %v9708_v40 = vadd.f32 %v2910_v31, %v12550_v16  ;;  %v3249_v43 = vpop.f32.mrb[21].mxu1  ;;  %v2912_v44 = vpop.f32.mrb[22].mxu0  ;;  %5735 = vmatpush1.bf16.msra.mxu0 %v10524_v55  ;;  %v10547_v29 = vld [vmem:[#allocation2 + $0x24c] ss:$16 sps:$4 sm:$0xff]  }
 0x211   : > { %v9740_v54 = vadd.f32 %v3249_v43, %v12554_v17  ;;  %v9709_v19 = vadd.f32 %v2912_v44, %v12541_v58  ;;  %v3251_v48 = vpop.f32.mrb[22].mxu1  ;;  %6187 = vmatpush1.bf16.msra.mxu1 %v10527_v1  ;;  %v2914_v49 = vpop.f32.mrb[23].mxu0  ;;  %5817 = vmatprep.subr.bf16.mxu0 %v10532_v7  ;;  %v4034_v36 = vmax.f32 %v9707_v27, 0.0  ;;  %v10539_v1 = vld [vmem:[#allocation2 + $0x228] ss:$16 sps:$4 sm:$0xff]  }
 0x212   : > { %v9741_v41 = vadd.f32 %v3251_v48, %v12547_v26  ;;  %v9710_v63 = vadd.f32 %v2914_v49, %v12550_v16  ;;  %v3253_v51 = vpop.f32.mrb[23].mxu1  ;;  %6269 = vmatprep.subr.bf16.mxu1 %v10535_v21  ;;  %v4036_v46 = vmax.f32 %v9739_v38, 0.0  ;;  %v4035_v50 = vmax.f32 %v9708_v40, 0.0  ;;  %v10544_v7 = vld [vmem:[#allocation2 + $0x244] ss:$16 sps:$4 sm:$0xff]  }
 0x213   : > { %v4042_v30 = vmax.f32 %v9709_v19, 0.0  ;;  %v9742_v18 = vadd.f32 %v3253_v51, %v12554_v17  ;;  %5737 = vmatmul.mubr.bf16.vlgmr.msra.gmra.mrb[64].mxu0 %v12570_v60  ;;  %v4037_v6 = vmax.f32 %v9740_v54, 0.0  ;;  %v10542_v48 = vld [vmem:[#allocation2 + $0x240] ss:$16 sps:$4 sm:$0xff]   ;;  %v10550_v51 = vld [vmem:[#allocation2 + $0x264] ss:$16 sps:$4 sm:$0xff]  }
 0x214   : > { %v4044_v59 = vmax.f32 %v9741_v41, 0.0  ;;  %v4043_v3 = vmax.f32 %v9710_v63, 0.0  ;;  %6189 = vmatmul.mubr.bf16.vlgmr.msra.gmra.mrb[64].mxu1 %v12570_v60  ;;  %5746 = vmatprep.mubr.bf16.mxu0 %v12596_v23  ;;  %v10545_v63 = vld [vmem:[#allocation2 + $0x248] ss:$16 sps:$4 sm:$0xff]  }
 0x215   : > { %v12679_v12 = vpack.c.bf16 %v4042_v30, %v4034_v36  ;;  %v4045_v5 = vmax.f32 %v9742_v18, 0.0  ;;  %5818 = vmatpush1.bf16.msra.mxu0 %v10530_v47  ;;  %6198 = vmatprep.mubr.bf16.mxu1 %v12596_v23  ;;  %v10553_v30 = vld [vmem:[#allocation2 + $0x26c] ss:$16 sps:$4 sm:$0xff]  }
 0x216   : > { %v12682_v55 = vpack.c.bf16 %v4044_v59, %v4036_v46  ;;  %v12684_v57 = vpack.c.bf16 %v4043_v3, %v4035_v50  ;;  %6270 = vmatpush1.bf16.msra.mxu1 %v10533_v35  ;;  %v2918_v4 = vpop.f32.mrb[24].mxu0  ;;  %5819 = vmatprep.subr.bf16.mxu0 %v10538_v53 }
 0x217   : > { %v12686_v60 = vpack.c.bf16 %v4045_v5, %v4037_v6  ;;  %v9711_v14 = vadd.f32 %v2918_v4, %v12541_v58  ;;  %v3257_v21 = vpop.f32.mrb[24].mxu1  ;;  %v2920_v27 = vpop.f32.mrb[25].mxu0  ;;  %6271 = vmatprep.subr.bf16.mxu1 %v10541_v20  ;;  %v10548_v5 = vld [vmem:[#allocation2 + $0x260] ss:$16 sps:$4 sm:$0xff]  }
 0x218   : > { %v9743_v23 = vadd.f32 %v3257_v21, %v12547_v26  ;;  %v9712_v31 = vadd.f32 %v2920_v27, %v12550_v16  ;;  %v3259_v38 = vpop.f32.mrb[25].mxu1  ;;  %v2922_v40 = vpop.f32.mrb[26].mxu0 }
 0x219   : > { %v9744_v43 = vadd.f32 %v3259_v38, %v12554_v17  ;;  %v9713_v44 = vadd.f32 %v2922_v40, %v12541_v58  ;;  %v3261_v54 = vpop.f32.mrb[26].mxu1  ;;  %5820 = vmatpush1.bf16.msra.mxu0 %v10536_v39  ;;  %v2924_v19 = vpop.f32.mrb[27].mxu0  ;;  %v4050_v35 = vmax.f32 %v9711_v14, 0.0  ;;  %v10556_v14 = vld [vmem:[#allocation2 + $0x284] ss:$16 sps:$4 sm:$0xff]  }
 0x21a   : > { %v9745_v49 = vadd.f32 %v3261_v54, %v12547_v26  ;;  %6272 = vmatpush1.bf16.msra.mxu1 %v10539_v1  ;;  %v9714_v47 = vadd.f32 %v2924_v19, %v12550_v16  ;;  %v3263_v41 = vpop.f32.mrb[27].mxu1  ;;  %5821 = vmatprep.subr.bf16.mxu0 %v10544_v7  ;;  %v4052_v18 = vmax.f32 %v9743_v23, 0.0  ;;  %v4051_v20 = vmax.f32 %v9712_v31, 0.0  ;;  %v10551_v7 = vld [vmem:[#allocation2 + $0x268] ss:$16 sps:$4 sm:$0xff]  }
 0x21b   : > { %v4058_v53 = vmax.f32 %v9713_v44, 0.0  ;;  %v9746_v36 = vadd.f32 %v3263_v41, %v12554_v17  ;;  %5747 = vmatmul.mubr.bf16.gmra.mrb[68].mxu0 %v12592_v56  ;;  %6273 = vmatprep.subr.bf16.mxu1 %v10547_v29  ;;  %v4053_v59 = vmax.f32 %v9744_v43, 0.0  ;;  %v10559_v23 = vld [vmem:[#allocation2 + $0x28c] ss:$16 sps:$4 sm:$0xff]  }
 0x21c   : > { %v4060_v46 = vmax.f32 %v9745_v49, 0.0  ;;  %v4059_v50 = vmax.f32 %v9714_v47, 0.0  ;;  %6199 = vmatmul.mubr.bf16.gmra.mrb[68].mxu1 %v12592_v56  ;;  %5756 = vmatprep.mubr.bf16.mxu0 %v12618_v15 }
 0x21d   : > { %v12699_v3 = vpack.c.bf16 %v4058_v53, %v4050_v35  ;;  %v4061_v6 = vmax.f32 %v9746_v36, 0.0  ;;  %5822 = vmatpush1.bf16.msra.mxu0 %v10542_v48  ;;  %6208 = vmatprep.mubr.bf16.mxu1 %v12618_v15  ;;  %v10554_v48 = vld [vmem:[#allocation2 + $0x280] ss:$16 sps:$4 sm:$0xff]  }
 0x21e   : > { %v12702_v39 = vpack.c.bf16 %v4060_v46, %v4052_v18  ;;  %v12704_v4 = vpack.c.bf16 %v4059_v50, %v4051_v20  ;;  %6274 = vmatpush1.bf16.msra.mxu1 %v10545_v63  ;;  %v2928_v1 = vpop.f32.mrb[28].mxu0  ;;  %5823 = vmatprep.subr.bf16.mxu0 %v10550_v51  ;;  %v10557_v63 = vld [vmem:[#allocation2 + $0x288] ss:$16 sps:$4 sm:$0xff]   ;;  %v10562_v51 = vld [vmem:[#allocation2 + $0x2a4] ss:$16 sps:$4 sm:$0xff]  }
 0x21f   : > { %v12706_v56 = vpack.c.bf16 %v4061_v6, %v4053_v59  ;;  %v9715_v21 = vadd.f32 %v2928_v1, %v12541_v58  ;;  %v3267_v27 = vpop.f32.mrb[28].mxu1  ;;  %v2930_v29 = vpop.f32.mrb[29].mxu0  ;;  %6275 = vmatprep.subr.bf16.mxu1 %v10553_v30  ;;  %v10568_v1 = vld [vmem:[#allocation2 + $0x2c4] ss:$16 sps:$4 sm:$0xff]  }
 0x220   : > { %v9747_v15 = vadd.f32 %v3267_v27, %v12547_v26  ;;  %v9716_v31 = vadd.f32 %v2930_v29, %v12550_v16  ;;  %v3269_v38 = vpop.f32.mrb[29].mxu1  ;;  %v2932_v40 = vpop.f32.mrb[30].mxu0  ;;  %v10574_v27 = vld [vmem:[#allocation2 + $0x2e4] ss:$16 sps:$4 sm:$0xff]   ;;  %v10572_v29 = vld [vmem:[#allocation2 + $0x2e0] ss:$16 sps:$4 sm:$0xff]  }
 0x221   : > { %v9748_v43 = vadd.f32 %v3269_v38, %v12554_v17  ;;  %v9717_v44 = vadd.f32 %v2932_v40, %v12541_v58  ;;  %v3271_v54 = vpop.f32.mrb[30].mxu1  ;;  %5824 = vmatpush1.bf16.msra.mxu0 %v10548_v5  ;;  %v2934_v19 = vpop.f32.mrb[31].mxu0  ;;  %v4066_v35 = vmax.f32 %v9715_v21, 0.0  ;;  %v10565_v58 = vld [vmem:[#allocation2 + $0x2ac] ss:$16 sps:$4 sm:$0xff]  }
 0x222   : > { %v9749_v49 = vadd.f32 %v3271_v54, %v12547_v26  ;;  %6276 = vmatpush1.bf16.msra.mxu1 %v10551_v7  ;;  %v9718_v47 = vadd.f32 %v2934_v19, %v12550_v16  ;;  %v3273_v41 = vpop.f32.mrb[31].mxu1  ;;  %5825 = vmatprep.subr.bf16.mxu0 %v10556_v14  ;;  %v4068_v30 = vmax.f32 %v9747_v15, 0.0  ;;  %v4067_v18 = vmax.f32 %v9716_v31, 0.0  ;;  %v10563_v5 = vld [vmem:[#allocation2 + $0x2a8] ss:$16 sps:$4 sm:$0xff]  }
 0x223   : > { %v4074_v53 = vmax.f32 %v9717_v44, 0.0  ;;  %v9750_v36 = vadd.f32 %v3273_v41, %v12554_v17  ;;  %5757 = vmatmul.mubr.bf16.gmra.mrb[72].mxu0 %v12614_v33  ;;  %6277 = vmatprep.subr.bf16.mxu1 %v10559_v23  ;;  %v4069_v26 = vmax.f32 %v9748_v43, 0.0  ;;  %v10560_v17 = vld [vmem:[#allocation2 + $0x2a0] ss:$16 sps:$4 sm:$0xff]   ;;  %v10569_v21 = vld [vmem:[#allocation2 + $0x2c8] ss:$16 sps:$4 sm:$0xff]  }
 0x224   : > { %v4076_v20 = vmax.f32 %v9749_v49, 0.0  ;;  %v4075_v46 = vmax.f32 %v9718_v47, 0.0  ;;  %6209 = vmatmul.mubr.bf16.gmra.mrb[72].mxu1 %v12614_v33  ;;  %5766 = vmatprep.mubr.bf16.mxu0 %v12640_v52  ;;  %v10571_v33 = vld [vmem:[#allocation2 + $0x2cc] ss:$16 sps:$4 sm:$0xff]   ;;  %v10566_v14 = vld [vmem:[#allocation2 + $0x2c0] ss:$16 sps:$4 sm:$0xff]  }
 0x225   : > { %v12719_v16 = vpack.c.bf16 %v4074_v53, %v4066_v35  ;;  %v4077_v50 = vmax.f32 %v9750_v36, 0.0  ;;  %5826 = vmatpush1.bf16.msra.mxu0 %v10554_v48  ;;  %6218 = vmatprep.mubr.bf16.mxu1 %v12640_v52  ;;  %v10577_v52 = vld [vmem:[#allocation2 + $0x2ec] ss:$16 sps:$4 sm:$0xff]   ;;  %v10575_v23 = vld [vmem:[#allocation2 + $0x2e8] ss:$16 sps:$4 sm:$0xff]  }
 0x226   : > { %v12722_v59 = vpack.c.bf16 %v4076_v20, %v4068_v30  ;;  %v12724_v6 = vpack.c.bf16 %v4075_v46, %v4067_v18  ;;  %6278 = vmatpush1.bf16.msra.mxu1 %v10557_v63  ;;  %5827 = vmatprep.subr.bf16.mxu0 %v10562_v51  ;;  %v10580_v15 = vld [vmem:[#allocation2 + $0x304] ss:$16 sps:$4 sm:$0xff]   ;;  %v10583_v31 = vld [vmem:[#allocation2 + $0x30c] ss:$16 sps:$4 sm:$0xff]   ;;  %v10578_v38 = vld [vmem:[#allocation2 + $0x300] ss:$16 sps:$4 sm:$0xff]  }
 0x227   : > { %v12726_v7 = vpack.c.bf16 %v4077_v50, %v4069_v26  ;;  %6279 = vmatprep.subr.bf16.mxu1 %v10565_v58  ;;  %v10581_v40 = vld [vmem:[#allocation2 + $0x308] ss:$16 sps:$4 sm:$0xff]   ;;  %v10586_v43 = vld [vmem:[#allocation2 + $0x324] ss:$16 sps:$4 sm:$0xff]   ;;  %v10595_v19 = vld [vmem:[#allocation2 + $0x34c] ss:$16 sps:$4 sm:$0xff]  }
 0x228   : > { %v10587_v44 = vld [vmem:[#allocation2 + $0x328] ss:$16 sps:$4 sm:$0xff]   ;;  %v10592_v54 = vld [vmem:[#allocation2 + $0x344] ss:$16 sps:$4 sm:$0xff]   ;;  %v10590_v48 = vld [vmem:[#allocation2 + $0x340] ss:$16 sps:$4 sm:$0xff]  }
 0x229   : > { %5828 = vmatpush1.bf16.msra.mxu0 %v10560_v17  ;;  %v10593_v49 = vld [vmem:[#allocation2 + $0x348] ss:$16 sps:$4 sm:$0xff]   ;;  %v10598_v47 = vld [vmem:[#allocation2 + $0x364] ss:$16 sps:$4 sm:$0xff]   ;;  %v10607_v51 = vld [vmem:[#allocation2 + $0x38c] ss:$16 sps:$4 sm:$0xff]  }
 0x22a   : > { %6280 = vmatpush1.bf16.msra.mxu1 %v10563_v5  ;;  %5829 = vmatprep.subr.bf16.mxu0 %v10568_v1  ;;  %v10599_v41 = vld [vmem:[#allocation2 + $0x368] ss:$16 sps:$4 sm:$0xff]   ;;  %v10604_v63 = vld [vmem:[#allocation2 + $0x384] ss:$16 sps:$4 sm:$0xff]   ;;  %v10602_v35 = vld [vmem:[#allocation2 + $0x380] ss:$16 sps:$4 sm:$0xff]  }
 0x22b   : > { %5767 = vmatmul.mubr.bf16.gmra.mrb[76].mxu0 %v12636_v22  ;;  %6281 = vmatprep.subr.bf16.mxu1 %v10571_v33  ;;  %v10605_v53 = vld [vmem:[#allocation2 + $0x388] ss:$16 sps:$4 sm:$0xff]   ;;  %v10610_v36 = vld [vmem:[#allocation2 + $0x3a4] ss:$16 sps:$4 sm:$0xff]   ;;  %v10619_v18 = vld [vmem:[#allocation2 + $0x3cc] ss:$16 sps:$4 sm:$0xff]  }
 0x22c   : > { %6219 = vmatmul.mubr.bf16.gmra.mrb[76].mxu1 %v12636_v22  ;;  %5776 = vmatprep.mubr.bf16.mxu0 %v12663_v11  ;;  %v10589_v22 = vld [vmem:[#allocation2 + $0x32c] ss:$16 sps:$4 sm:$0xff]   ;;  %v10611_v58 = vld [vmem:[#allocation2 + $0x3a8] ss:$16 sps:$4 sm:$0xff]   ;;  %v10616_v30 = vld [vmem:[#allocation2 + $0x3c4] ss:$16 sps:$4 sm:$0xff]  }
 0x22d   : > { %5830 = vmatpush1.bf16.msra.mxu0 %v10566_v14  ;;  %6228 = vmatprep.mubr.bf16.mxu1 %v12663_v11  ;;  %v10584_v11 = vld [vmem:[#allocation2 + $0x320] ss:$16 sps:$4 sm:$0xff]   ;;  %v10617_v46 = vld [vmem:[#allocation2 + $0x3c8] ss:$16 sps:$4 sm:$0xff]   ;;  %v10622_v26 = vld [vmem:[#allocation2 + $0x3e4] ss:$16 sps:$4 sm:$0xff]  }
 0x22e   : > { %6282 = vmatpush1.bf16.msra.mxu1 %v10569_v21  ;;  %5831 = vmatprep.subr.bf16.mxu0 %v10574_v27  ;;  %v10614_v20 = vld [vmem:[#allocation2 + $0x3c0] ss:$16 sps:$4 sm:$0xff]   ;;  %v10623_v17 = vld [vmem:[#allocation2 + $0x3e8] ss:$16 sps:$4 sm:$0xff]   ;;  %v10631_v5 = vld [vmem:[#allocation2 + $0x40c] ss:$16 sps:$4 sm:$0xff]  }
 0x22f   : > { %6283 = vmatprep.subr.bf16.mxu1 %v10577_v52  ;;  %v10620_v50 = vld [vmem:[#allocation2 + $0x3e0] ss:$16 sps:$4 sm:$0xff]   ;;  %v10629_v33 = vld [vmem:[#allocation2 + $0x408] ss:$16 sps:$4 sm:$0xff]   ;;  %v10634_v14 = vld [vmem:[#allocation2 + $0x424] ss:$16 sps:$4 sm:$0xff]  }
 0x230   : > { %v10626_v1 = vld [vmem:[#allocation2 + $0x400] ss:$16 sps:$4 sm:$0xff]   ;;  %v10635_v21 = vld [vmem:[#allocation2 + $0x428] ss:$16 sps:$4 sm:$0xff]   ;;  %v10640_v27 = vld [vmem:[#allocation2 + $0x444] ss:$16 sps:$4 sm:$0xff]  }
 0x231   : > { %5832 = vmatpush1.bf16.msra.mxu0 %v10572_v29  ;;  %v10643_v52 = vld [vmem:[#allocation2 + $0x44c] ss:$16 sps:$4 sm:$0xff]   ;;  %v10638_v29 = vld [vmem:[#allocation2 + $0x440] ss:$16 sps:$4 sm:$0xff]  }
 0x232   : > { %6284 = vmatpush1.bf16.msra.mxu1 %v10575_v23  ;;  %5833 = vmatprep.subr.bf16.mxu0 %v10580_v15  ;;  %v10641_v23 = vld [vmem:[#allocation2 + $0x448] ss:$16 sps:$4 sm:$0xff]   ;;  %v10646_v15 = vld [vmem:[#allocation2 + $0x464] ss:$16 sps:$4 sm:$0xff]  }
 0x233   : > { %5777 = vmatmul.mubr.bf16.gmra.mrb[80].mxu0 %v12658_v62  ;;  %6285 = vmatprep.subr.bf16.mxu1 %v10583_v31  ;;  %v10647_v31 = vld [vmem:[#allocation2 + $0x468] ss:$16 sps:$4 sm:$0xff]  }
 0x234   : > { %6229 = vmatmul.mubr.bf16.gmra.mrb[80].mxu1 %v12658_v62  ;;  %5786 = vmatprep.mubr.bf16.mxu0 %v12684_v57  ;;  %v10601_v62 = vld [vmem:[#allocation2 + $0x36c] ss:$16 sps:$4 sm:$0xff]  }
 0x235   : > { %5834 = vmatpush1.bf16.msra.mxu0 %v10578_v38  ;;  %6238 = vmatprep.mubr.bf16.mxu1 %v12684_v57  ;;  %v10596_v57 = vld [vmem:[#allocation2 + $0x360] ss:$16 sps:$4 sm:$0xff]   ;;  %v10652_v38 = vld [vmem:[#allocation2 + $0x484] ss:$16 sps:$4 sm:$0xff]  }
 0x236   : > { %6286 = vmatpush1.bf16.msra.mxu1 %v10581_v40  ;;  %5835 = vmatprep.subr.bf16.mxu0 %v10586_v43  ;;  %v10655_v40 = vld [vmem:[#allocation2 + $0x48c] ss:$16 sps:$4 sm:$0xff]   ;;  %v10650_v43 = vld [vmem:[#allocation2 + $0x480] ss:$16 sps:$4 sm:$0xff]  }
 0x237   : > { %6287 = vmatprep.subr.bf16.mxu1 %v10589_v22  ;;  %v10653_v22 = vld [vmem:[#allocation2 + $0x488] ss:$16 sps:$4 sm:$0xff]  }
 0x239   : > { %5836 = vmatpush1.bf16.msra.mxu0 %v10584_v11  ;;  %v10658_v11 = vld [vmem:[#allocation2 + $0x4a4] ss:$16 sps:$4 sm:$0xff]  }
 0x23a   : > { %6288 = vmatpush1.bf16.msra.mxu1 %v10587_v44  ;;  %5837 = vmatprep.subr.bf16.mxu0 %v10592_v54  ;;  %v10659_v44 = vld [vmem:[#allocation2 + $0x4a8] ss:$16 sps:$4 sm:$0xff]   ;;  %v10664_v54 = vld [vmem:[#allocation2 + $0x4c4] ss:$16 sps:$4 sm:$0xff]  }
 0x23b   : > { %5787 = vmatmul.mubr.bf16.gmra.mrb[84].mxu0 %v12679_v12  ;;  %6289 = vmatprep.subr.bf16.mxu1 %v10595_v19  ;;  %v10667_v19 = vld [vmem:[#allocation2 + $0x4cc] ss:$16 sps:$4 sm:$0xff]  }
 0x23c   : > { %6239 = vmatmul.mubr.bf16.gmra.mrb[84].mxu1 %v12679_v12  ;;  %5796 = vmatprep.mubr.bf16.mxu0 %v12704_v4  ;;  %v10613_v12 = vld [vmem:[#allocation2 + $0x3ac] ss:$16 sps:$4 sm:$0xff]  }
 0x23d   : > { %5838 = vmatpush1.bf16.msra.mxu0 %v10590_v48  ;;  %6248 = vmatprep.mubr.bf16.mxu1 %v12704_v4  ;;  %v10608_v4 = vld [vmem:[#allocation2 + $0x3a0] ss:$16 sps:$4 sm:$0xff]  }
 0x23e   : > { %6290 = vmatpush1.bf16.msra.mxu1 %v10593_v49  ;;  %5839 = vmatprep.subr.bf16.mxu0 %v10598_v47  ;;  %v10662_v48 = vld [vmem:[#allocation2 + $0x4c0] ss:$16 sps:$4 sm:$0xff]   ;;  %v10665_v49 = vld [vmem:[#allocation2 + $0x4c8] ss:$16 sps:$4 sm:$0xff]   ;;  %v10670_v47 = vld [vmem:[#allocation2 + $0x4e4] ss:$16 sps:$4 sm:$0xff]  }
 0x23f   : > { %6291 = vmatprep.subr.bf16.mxu1 %v10601_v62  ;;  %v10671_v62 = vld [vmem:[#allocation2 + $0x4e8] ss:$16 sps:$4 sm:$0xff]  }
 0x241   : > { %5840 = vmatpush1.bf16.msra.mxu0 %v10596_v57  ;;  %v10676_v57 = vld [vmem:[#allocation2 + $0x504] ss:$16 sps:$4 sm:$0xff]  }
 0x242   : > { %6292 = vmatpush1.bf16.msra.mxu1 %v10599_v41  ;;  %5841 = vmatprep.subr.bf16.mxu0 %v10604_v63  ;;  %v10679_v41 = vld [vmem:[#allocation2 + $0x50c] ss:$16 sps:$4 sm:$0xff]   ;;  %v10674_v63 = vld [vmem:[#allocation2 + $0x500] ss:$16 sps:$4 sm:$0xff]  }
 0x243   : > { %5797 = vmatmul.mubr.bf16.gmra.mrb[88].mxu0 %v12699_v3  ;;  %6293 = vmatprep.subr.bf16.mxu1 %v10607_v51  ;;  %v10677_v51 = vld [vmem:[#allocation2 + $0x508] ss:$16 sps:$4 sm:$0xff]  }
 0x244   : > { %6249 = vmatmul.mubr.bf16.gmra.mrb[88].mxu1 %v12699_v3  ;;  %5806 = vmatprep.mubr.bf16.mxu0 %v12724_v6  ;;  %v10625_v3 = vld [vmem:[#allocation2 + $0x3ec] ss:$16 sps:$4 sm:$0xff]  }
 0x245   : > { %5842 = vmatpush1.bf16.msra.mxu0 %v10602_v35  ;;  %6258 = vmatprep.mubr.bf16.mxu1 %v12724_v6  ;;  %v10628_v6 = vld [vmem:[#allocation2 + $0x404] ss:$16 sps:$4 sm:$0xff]  }
 0x246   : > { %6294 = vmatpush1.bf16.msra.mxu1 %v10605_v53  ;;  %5843 = vmatprep.subr.bf16.mxu0 %v10610_v36  ;;  %v10682_v35 = vld [vmem:[#allocation2 + $0x524] ss:$16 sps:$4 sm:$0xff]   ;;  %v10683_v53 = vld [vmem:[#allocation2 + $0x528] ss:$16 sps:$4 sm:$0xff]  }
 0x247   : > { %6295 = vmatprep.subr.bf16.mxu1 %v10613_v12  ;;  %v10688_v36 = vld [vmem:[#allocation2 + $0x544] ss:$16 sps:$4 sm:$0xff]   ;;  %v10691_v12 = vld [vmem:[#allocation2 + $0x54c] ss:$16 sps:$4 sm:$0xff]  }
 0x249   : > { %5844 = vmatpush1.bf16.msra.mxu0 %v10608_v4  ;;  %v10686_v4 = vld [vmem:[#allocation2 + $0x540] ss:$16 sps:$4 sm:$0xff]  }
 0x24a   : > { %6296 = vmatpush1.bf16.msra.mxu1 %v10611_v58  ;;  %5845 = vmatprep.subr.bf16.mxu0 %v10616_v30  ;;  %v10689_v58 = vld [vmem:[#allocation2 + $0x548] ss:$16 sps:$4 sm:$0xff]   ;;  %v10694_v30 = vld [vmem:[#allocation2 + $0x564] ss:$16 sps:$4 sm:$0xff]  }
 0x24b   : > { %5807 = vmatmul.mubr.bf16.gmra.mrb[92].mxu0 %v12719_v16  ;;  %6297 = vmatprep.subr.bf16.mxu1 %v10619_v18  ;;  %v10695_v18 = vld [vmem:[#allocation2 + $0x568] ss:$16 sps:$4 sm:$0xff]  }
 0x24c   : > { %6259 = vmatmul.mubr.bf16.gmra.mrb[92].mxu1 %v12719_v16  ;;  %5849 = vmatprep.mubr.bf16.mxu0 %v12577_v32  ;;  %v10637_v16 = vld [vmem:[#allocation2 + $0x42c] ss:$16 sps:$4 sm:$0xff]  }
 0x24d   : > { %5846 = vmatpush1.bf16.msra.mxu0 %v10614_v20  ;;  %6301 = vmatprep.mubr.bf16.mxu1 %v12577_v32  ;;  %v10632_v32 = vld [vmem:[#allocation2 + $0x420] ss:$16 sps:$4 sm:$0xff]   ;;  %v10700_v20 = vld [vmem:[#allocation2 + $0x584] ss:$16 sps:$4 sm:$0xff]  }
 0x24e   : > { %6298 = vmatpush1.bf16.msra.mxu1 %v10617_v46  ;;  %5847 = vmatprep.subr.bf16.mxu0 %v10622_v26  ;;  %v10703_v46 = vld [vmem:[#allocation2 + $0x58c] ss:$16 sps:$4 sm:$0xff]   ;;  %v10698_v26 = vld [vmem:[#allocation2 + $0x580] ss:$16 sps:$4 sm:$0xff]  }
 0x24f   : > { %6299 = vmatprep.subr.bf16.mxu1 %v10625_v3  ;;  %v10701_v3 = vld [vmem:[#allocation2 + $0x588] ss:$16 sps:$4 sm:$0xff]  }
 0x251   : > { %5848 = vmatpush1.bf16.msra.mxu0 %v10620_v50  ;;  %v10706_v50 = vld [vmem:[#allocation2 + $0x5a4] ss:$16 sps:$4 sm:$0xff]  }
 0x252   : > { %6300 = vmatpush1.bf16.msra.mxu1 %v10623_v17  ;;  %5930 = vmatprep.subr.bf16.mxu0 %v10628_v6  ;;  %v10707_v17 = vld [vmem:[#allocation2 + $0x5a8] ss:$16 sps:$4 sm:$0xff]   ;;  %v10712_v6 = vld [vmem:[#allocation2 + $0x5c4] ss:$16 sps:$4 sm:$0xff]  }
 0x253   : > { %6382 = vmatprep.subr.bf16.mxu1 %v10631_v5  ;;  %v10715_v5 = vld [vmem:[#allocation2 + $0x5cc] ss:$16 sps:$4 sm:$0xff]  }
 0x254   : > { %5850 = vmatmul.mubr.bf16.vlgmr.msra.gmra.mrb[64].mxu0 %v12572_v13 }
 0x255   : > { %6302 = vmatmul.mubr.bf16.vlgmr.msra.gmra.mrb[64].mxu1 %v12572_v13  ;;  %5859 = vmatprep.mubr.bf16.mxu0 %v12599_v2  ;;  %v10649_v13 = vld [vmem:[#allocation2 + $0x46c] ss:$16 sps:$4 sm:$0xff]  }
 0x256   : > { %6311 = vmatprep.mubr.bf16.mxu1 %v12599_v2  ;;  %5931 = vmatpush1.bf16.msra.mxu0 %v10626_v1  ;;  %v10644_v2 = vld [vmem:[#allocation2 + $0x460] ss:$16 sps:$4 sm:$0xff]  }
 0x257   : > { %6383 = vmatpush1.bf16.msra.mxu1 %v10629_v33  ;;  %5932 = vmatprep.subr.bf16.mxu0 %v10634_v14  ;;  %v10710_v1 = vld [vmem:[#allocation2 + $0x5c0] ss:$16 sps:$4 sm:$0xff]   ;;  %v10713_v33 = vld [vmem:[#allocation2 + $0x5c8] ss:$16 sps:$4 sm:$0xff]   ;;  %v10718_v14 = vld [vmem:[#allocation2 + $0x5e4] ss:$16 sps:$4 sm:$0xff]  }
 0x258   : > { %6384 = vmatprep.subr.bf16.mxu1 %v10637_v16  ;;  %v10719_v16 = vld [vmem:[#allocation2 + $0x5e8] ss:$16 sps:$4 sm:$0xff]  }
 0x25a   : > { %5933 = vmatpush1.bf16.msra.mxu0 %v10632_v32  ;;  %v10724_v32 = vld [vmem:[#allocation2 + $0x604] ss:$16 sps:$4 sm:$0xff]  }
 0x25b   : > { %6385 = vmatpush1.bf16.msra.mxu1 %v10635_v21  ;;  %5934 = vmatprep.subr.bf16.mxu0 %v10640_v27  ;;  %v10727_v21 = vld [vmem:[#allocation2 + $0x60c] ss:$16 sps:$4 sm:$0xff]   ;;  %v1026_v27 = vsub.s32 4, %v12521_v61 }
 0x25c   : > { %5860 = vmatmul.mubr.bf16.gmra.mrb[68].mxu0 %v12594_v24  ;;  %6386 = vmatprep.subr.bf16.mxu1 %v10643_v52  ;;  %v1034_v52 = vsub.s32 6, %v12521_v61 }
 0x25d   : > { %6312 = vmatmul.mubr.bf16.gmra.mrb[68].mxu1 %v12594_v24  ;;  %5869 = vmatprep.mubr.bf16.mxu0 %v12621_v25  ;;  %v10661_v24 = vld [vmem:[#allocation2 + $0x4ac] ss:$16 sps:$4 sm:$0xff]  }
 0x25e   : > { %6321 = vmatprep.mubr.bf16.mxu1 %v12621_v25  ;;  %5935 = vmatpush1.bf16.msra.mxu0 %v10638_v29  ;;  %v10656_v25 = vld [vmem:[#allocation2 + $0x4a0] ss:$16 sps:$4 sm:$0xff]   ;;  %v1030_v29 = vsub.s32 5, %v12521_v61 }
 0x25f   : > { %6387 = vmatpush1.bf16.msra.mxu1 %v10641_v23  ;;  %5936 = vmatprep.subr.bf16.mxu0 %v10646_v15  ;;  %v10986_v23 = vld [vmem:[%s13446_s2] sm:$0xff] }
 0x260   : > { %6388 = vmatprep.subr.bf16.mxu1 %v10649_v13  ;;  %v12785_v15 = vrot.slane %v10986_v23, %v1026_v27  ;;  %v12787_v13 = vrot.slane %v10986_v23, %v1034_v52 }
 0x262   : > { %5937 = vmatpush1.bf16.msra.mxu0 %v10644_v2  ;;  %v12789_v2 = vrot.slane %v10986_v23, %v1030_v29  ;;  %v10736_v29 = vld [vmem:[#allocation2 + $0x644] ss:$16 sps:$4 sm:$0xff]  }
 0x263   : > { %6389 = vmatpush1.bf16.msra.mxu1 %v10647_v31  ;;  %5938 = vmatprep.subr.bf16.mxu0 %v10652_v38 }
 0x264   : > { %5870 = vmatmul.mubr.bf16.gmra.mrb[72].mxu0 %v12616_v34  ;;  %6390 = vmatprep.subr.bf16.mxu1 %v10655_v40 }
 0x265   : > { %6322 = vmatmul.mubr.bf16.gmra.mrb[72].mxu1 %v12616_v34  ;;  %5879 = vmatprep.mubr.bf16.mxu0 %v12643_v42  ;;  %v10673_v34 = vld [vmem:[#allocation2 + $0x4ec] ss:$16 sps:$4 sm:$0xff]  }
 0x266   : > { %6331 = vmatprep.mubr.bf16.mxu1 %v12643_v42  ;;  %5939 = vmatpush1.bf16.msra.mxu0 %v10650_v43  ;;  %v10668_v42 = vld [vmem:[#allocation2 + $0x4e0] ss:$16 sps:$4 sm:$0xff]  }
 0x267   : > { %6391 = vmatpush1.bf16.msra.mxu1 %v10653_v22  ;;  %5940 = vmatprep.subr.bf16.mxu0 %v10658_v11 }
 0x268   : > { %6392 = vmatprep.subr.bf16.mxu1 %v10661_v24 }
 0x26a   : > { %5941 = vmatpush1.bf16.msra.mxu0 %v10656_v25 }
 0x26b   : > { %6393 = vmatpush1.bf16.msra.mxu1 %v10659_v44  ;;  %5942 = vmatprep.subr.bf16.mxu0 %v10664_v54 }
 0x26c   : > { %5880 = vmatmul.mubr.bf16.gmra.mrb[76].mxu0 %v12638_v45  ;;  %6394 = vmatprep.subr.bf16.mxu1 %v10667_v19 }
 0x26d   : > { %6332 = vmatmul.mubr.bf16.gmra.mrb[76].mxu1 %v12638_v45  ;;  %5889 = vmatprep.mubr.bf16.mxu0 %v12666_v28  ;;  %v10685_v45 = vld [vmem:[#allocation2 + $0x52c] ss:$16 sps:$4 sm:$0xff]  }
 0x26e   : > { %6341 = vmatprep.mubr.bf16.mxu1 %v12666_v28  ;;  %5943 = vmatpush1.bf16.msra.mxu0 %v10662_v48  ;;  %v10680_v28 = vld [vmem:[#allocation2 + $0x520] ss:$16 sps:$4 sm:$0xff]  }
 0x26f   : > { %6395 = vmatpush1.bf16.msra.mxu1 %v10665_v49  ;;  %5944 = vmatprep.subr.bf16.mxu0 %v10670_v47 }
 0x270   : > { %6396 = vmatprep.subr.bf16.mxu1 %v10673_v34 }
 0x272   : > { %5945 = vmatpush1.bf16.msra.mxu0 %v10668_v42 }
 0x273   : > { %6397 = vmatpush1.bf16.msra.mxu1 %v10671_v62  ;;  %5946 = vmatprep.subr.bf16.mxu0 %v10676_v57 }
 0x274   : > { %5890 = vmatmul.mubr.bf16.gmra.mrb[80].mxu0 %v12661_v8  ;;  %6398 = vmatprep.subr.bf16.mxu1 %v10679_v41 }
 0x275   : > { %6342 = vmatmul.mubr.bf16.gmra.mrb[80].mxu1 %v12661_v8  ;;  %5899 = vmatprep.mubr.bf16.mxu0 %v12686_v60  ;;  %v10697_v8 = vld [vmem:[#allocation2 + $0x56c] ss:$16 sps:$4 sm:$0xff]  }
 0x276   : > { %6351 = vmatprep.mubr.bf16.mxu1 %v12686_v60  ;;  %5947 = vmatpush1.bf16.msra.mxu0 %v10674_v63  ;;  %v10692_v60 = vld [vmem:[#allocation2 + $0x560] ss:$16 sps:$4 sm:$0xff]  }
 0x277   : > { %6399 = vmatpush1.bf16.msra.mxu1 %v10677_v51  ;;  %5948 = vmatprep.subr.bf16.mxu0 %v10682_v35 }
 0x278   : > { %6400 = vmatprep.subr.bf16.mxu1 %v10685_v45 }
 0x27a   : > { %5949 = vmatpush1.bf16.msra.mxu0 %v10680_v28 }
 0x27b   : > { %6401 = vmatpush1.bf16.msra.mxu1 %v10683_v53  ;;  %5950 = vmatprep.subr.bf16.mxu0 %v10688_v36 }
 0x27c   : > { %5900 = vmatmul.mubr.bf16.gmra.mrb[84].mxu0 %v12682_v55  ;;  %6402 = vmatprep.subr.bf16.mxu1 %v10691_v12 }
 0x27d   : > { %6352 = vmatmul.mubr.bf16.gmra.mrb[84].mxu1 %v12682_v55  ;;  %5909 = vmatprep.mubr.bf16.mxu0 %v12706_v56  ;;  %v10709_v55 = vld [vmem:[#allocation2 + $0x5ac] ss:$16 sps:$4 sm:$0xff]  }
 0x27e   : > { %6361 = vmatprep.mubr.bf16.mxu1 %v12706_v56  ;;  %5951 = vmatpush1.bf16.msra.mxu0 %v10686_v4  ;;  %v10704_v56 = vld [vmem:[#allocation2 + $0x5a0] ss:$16 sps:$4 sm:$0xff]  }
 0x27f   : > { %6403 = vmatpush1.bf16.msra.mxu1 %v10689_v58  ;;  %5952 = vmatprep.subr.bf16.mxu0 %v10694_v30  ;;  %v10722_v30 = vld [vmem:[#allocation2 + $0x600] ss:$16 sps:$4 sm:$0xff]  }
 0x280   : > { %6404 = vmatprep.subr.bf16.mxu1 %v10697_v8  ;;  %v10725_v8 = vld [vmem:[#allocation2 + $0x608] ss:$16 sps:$4 sm:$0xff]  }
 0x282   : > { %5953 = vmatpush1.bf16.msra.mxu0 %v10692_v60 }
 0x283   : > { %6405 = vmatpush1.bf16.msra.mxu1 %v10695_v18  ;;  %5954 = vmatprep.subr.bf16.mxu0 %v10700_v20 }
 0x284   : > { %5910 = vmatmul.mubr.bf16.gmra.mrb[88].mxu0 %v12702_v39  ;;  %6406 = vmatprep.subr.bf16.mxu1 %v10703_v46 }
 0x285   : > { %6362 = vmatmul.mubr.bf16.gmra.mrb[88].mxu1 %v12702_v39  ;;  %5919 = vmatprep.mubr.bf16.mxu0 %v12726_v7  ;;  %v10721_v39 = vld [vmem:[#allocation2 + $0x5ec] ss:$16 sps:$4 sm:$0xff]  }
 0x286   : > { %6371 = vmatprep.mubr.bf16.mxu1 %v12726_v7  ;;  %5955 = vmatpush1.bf16.msra.mxu0 %v10698_v26  ;;  %v10716_v7 = vld [vmem:[#allocation2 + $0x5e0] ss:$16 sps:$4 sm:$0xff]   ;;  %v10730_v26 = vld [vmem:[#allocation2 + $0x624] ss:$16 sps:$4 sm:$0xff]  }
 0x287   : > { %6407 = vmatpush1.bf16.msra.mxu1 %v10701_v3  ;;  %5956 = vmatprep.subr.bf16.mxu0 %v10706_v50  ;;  %v10733_v3 = vld [vmem:[#allocation2 + $0x62c] ss:$16 sps:$4 sm:$0xff]  }
 0x288   : > { %6408 = vmatprep.subr.bf16.mxu1 %v10709_v55 }
 0x28a   : > { %5957 = vmatpush1.bf16.msra.mxu0 %v10704_v56 }
 0x28b   : > { %6409 = vmatpush1.bf16.msra.mxu1 %v10707_v17  ;;  %5958 = vmatprep.subr.bf16.mxu0 %v10712_v6 }
 0x28c   : > { %5920 = vmatmul.mubr.bf16.gmra.mrb[92].mxu0 %v12722_v59  ;;  %6410 = vmatprep.subr.bf16.mxu1 %v10715_v5 }
 0x28d   : > { %6372 = vmatmul.mubr.bf16.gmra.mrb[92].mxu1 %v12722_v59  ;;  %v1038_v59 = vsub.s32 7, %v12521_v61  ;;  %v10914_v61 = vld [vmem:[%s13451_s7 + $0x40] sm:$0xff]  }
 0x28e   : > { %5959 = vmatpush1.bf16.msra.mxu0 %v10710_v1 }
 0x28f   : > { %6411 = vmatpush1.bf16.msra.mxu1 %v10713_v33  ;;  %5960 = vmatprep.subr.bf16.mxu0 %v10718_v14  ;;  %v12791_v31 = vrot.slane %v10986_v23, %v1038_v59  ;;  %v10739_v59 = vld [vmem:[#allocation2 + $0x64c] ss:$16 sps:$4 sm:$0xff]  }
 0x290   : > { %6412 = vmatprep.subr.bf16.mxu1 %v10721_v39 }
 0x292   : > { %5961 = vmatpush1.bf16.msra.mxu0 %v10716_v7 }
 0x293   : > { %6413 = vmatpush1.bf16.msra.mxu1 %v10719_v16  ;;  %6043 = vmatprep.subr.bf16.mxu0 %v10724_v32  ;;  %v10728_v16 = vld [vmem:[#allocation2 + $0x620] ss:$16 sps:$4 sm:$0xff]   ;;  %v10731_v32 = vld [vmem:[#allocation2 + $0x628] ss:$16 sps:$4 sm:$0xff]  }
 0x294   : > { %6495 = vmatprep.subr.bf16.mxu1 %v10727_v21 }
 0x2a6   : > { %v3536_v38 = vpop.f32.mrb[32].mxu0 }
 0x2a7   : > { %v9751_v40 = vadd.f32 %v3536_v38, %v12785_v15  ;;  %v3875_v43 = vpop.f32.mrb[32].mxu1  ;;  %v3538_v22 = vpop.f32.mrb[33].mxu0 }
 0x2a8   : > { %v9783_v11 = vadd.f32 %v3875_v43, %v12787_v13  ;;  %v9752_v24 = vadd.f32 %v3538_v22, %v12789_v2  ;;  %v3877_v25 = vpop.f32.mrb[33].mxu1  ;;  %v3540_v44 = vpop.f32.mrb[34].mxu0 }
 0x2a9   : > { %v9784_v54 = vadd.f32 %v3877_v25, %v12791_v31  ;;  %v9753_v19 = vadd.f32 %v3540_v44, %v12785_v15  ;;  %v3879_v48 = vpop.f32.mrb[34].mxu1  ;;  %v3542_v49 = vpop.f32.mrb[35].mxu0  ;;  %v3958_v62 = vmax.f32 %v9751_v40, 0.0 }
 0x2aa   : > { %v9785_v47 = vadd.f32 %v3879_v48, %v12787_v13  ;;  %v9754_v34 = vadd.f32 %v3542_v49, %v12789_v2  ;;  %v3881_v42 = vpop.f32.mrb[35].mxu1  ;;  %v3960_v63 = vmax.f32 %v9783_v11, 0.0  ;;  %v3959_v51 = vmax.f32 %v9752_v24, 0.0  ;;  %v10737_v48 = vld [vmem:[#allocation2 + $0x648] ss:$16 sps:$4 sm:$0xff]  }
 0x2ab   : > { %v3966_v57 = vmax.f32 %v9753_v19, 0.0  ;;  %v9786_v41 = vadd.f32 %v3881_v42, %v12791_v31  ;;  %v3961_v28 = vmax.f32 %v9784_v54, 0.0  ;;  %v10734_v19 = vld [vmem:[#allocation2 + $0x640] ss:$16 sps:$4 sm:$0xff]  }
 0x2ac   : > { %v3968_v35 = vmax.f32 %v9785_v47, 0.0  ;;  %v3967_v45 = vmax.f32 %v9754_v34, 0.0 }
 0x2ad   : > { %v4086_v53 = vpack.c.bf16 %v3966_v57, %v3958_v62  ;;  %v3969_v36 = vmax.f32 %v9786_v41, 0.0  ;;  %v10742_v62 = vld [vmem:[#allocation2 + $0x664] ss:$16 sps:$4 sm:$0xff]   ;;  %v10745_v57 = vld [vmem:[#allocation2 + $0x66c] ss:$16 sps:$4 sm:$0xff]  }
 0x2ae   : > { %v12801_v12 = vpack.c.bf16 %v3968_v35, %v3960_v63  ;;  %v4087_v4 = vpack.c.bf16 %v3967_v45, %v3959_v51  ;;  %v3546_v58 = vpop.f32.mrb[36].mxu0 }
 0x2af   : > { %v12803_v60 = vpack.c.bf16 %v3969_v36, %v3961_v28  ;;  %v9755_v18 = vadd.f32 %v3546_v58, %v12785_v15  ;;  %v3885_v20 = vpop.f32.mrb[36].mxu1  ;;  %v3548_v46 = vpop.f32.mrb[37].mxu0 }
 0x2b0   : > { %v9787_v50 = vadd.f32 %v3885_v20, %v12787_v13  ;;  %v9756_v55 = vadd.f32 %v3548_v46, %v12789_v2  ;;  %v3887_v56 = vpop.f32.mrb[37].mxu1  ;;  %v3550_v17 = vpop.f32.mrb[38].mxu0  ;;  %5962 = vmatprep.mubr.bf16.mxu0 %v4087_v4  ;;  %6414 = vmatprep.mubr.bf16.mxu1 %v4087_v4 }
 0x2b1   : > { %v9788_v6 = vadd.f32 %v3887_v56, %v12791_v31  ;;  %v9757_v5 = vadd.f32 %v3550_v17, %v12785_v15  ;;  %v3889_v1 = vpop.f32.mrb[38].mxu1  ;;  %v3552_v33 = vpop.f32.mrb[39].mxu0  ;;  %5963 = vmatmul.mubr.bf16.vlgmr.msra.gmra.mrb[64].mxu0 %v4086_v53  ;;  %6415 = vmatmul.mubr.bf16.vlgmr.msra.gmra.mrb[64].mxu1 %v4086_v53  ;;  %v3974_v21 = vmax.f32 %v9755_v18, 0.0  ;;  %v10743_v18 = vld [vmem:[#allocation2 + $0x668] ss:$16 sps:$4 sm:$0xff]  }
 0x2b2   : > { %v9789_v14 = vadd.f32 %v3889_v1, %v12787_v13  ;;  %v9758_v39 = vadd.f32 %v3552_v33, %v12789_v2  ;;  %v3891_v7 = vpop.f32.mrb[39].mxu1  ;;  %6044 = vmatpush1.bf16.msra.mxu0 %v10722_v30  ;;  %6496 = vmatpush1.bf16.msra.mxu1 %v10725_v8  ;;  %v3976_v23 = vmax.f32 %v9787_v50, 0.0  ;;  %v3975_v38 = vmax.f32 %v9756_v55, 0.0  ;;  %v10740_v8 = vld [vmem:[#allocation2 + $0x660] ss:$16 sps:$4 sm:$0xff]  }
 0x2b3   : > { %v3982_v27 = vmax.f32 %v9757_v5, 0.0  ;;  %v9790_v52 = vadd.f32 %v3891_v7, %v12791_v31  ;;  %6045 = vmatprep.subr.bf16.mxu0 %v10730_v26  ;;  %6497 = vmatprep.subr.bf16.mxu1 %v10733_v3  ;;  %v3977_v22 = vmax.f32 %v9788_v6, 0.0  ;;  %v10748_v3 = vld [vmem:[#allocation2 + $0x684] ss:$16 sps:$4 sm:$0xff]   ;;  %v10751_v50 = vld [vmem:[#allocation2 + $0x68c] ss:$16 sps:$4 sm:$0xff]  }
 0x2b4   : > { %v3984_v40 = vmax.f32 %v9789_v14, 0.0  ;;  %v3983_v43 = vmax.f32 %v9758_v39, 0.0 }
 0x2b5   : > { %v4094_v11 = vpack.c.bf16 %v3982_v27, %v3974_v21  ;;  %v3985_v24 = vmax.f32 %v9790_v52, 0.0 }
 0x2b6   : > { %v12813_v25 = vpack.c.bf16 %v3984_v40, %v3976_v23  ;;  %v4095_v44 = vpack.c.bf16 %v3983_v43, %v3975_v38  ;;  %v3556_v54 = vpop.f32.mrb[40].mxu0  ;;  %6046 = vmatpush1.bf16.msra.mxu0 %v10728_v16  ;;  %6498 = vmatpush1.bf16.msra.mxu1 %v10731_v32  ;;  %v10746_v16 = vld [vmem:[#allocation2 + $0x680] ss:$16 sps:$4 sm:$0xff]   ;;  %v10749_v32 = vld [vmem:[#allocation2 + $0x688] ss:$16 sps:$4 sm:$0xff]  }
 0x2b7   : > { %v12815_v49 = vpack.c.bf16 %v3985_v24, %v3977_v22  ;;  %v9759_v47 = vadd.f32 %v3556_v54, %v12785_v15  ;;  %v3895_v34 = vpop.f32.mrb[40].mxu1  ;;  %v3558_v42 = vpop.f32.mrb[41].mxu0  ;;  %6047 = vmatprep.subr.bf16.mxu0 %v10736_v29  ;;  %6499 = vmatprep.subr.bf16.mxu1 %v10739_v59  ;;  %v10754_v59 = vld [vmem:[#allocation2 + $0x6a4] ss:$16 sps:$4 sm:$0xff]   ;;  %v10757_v23 = vld [vmem:[#allocation2 + $0x6ac] ss:$16 sps:$4 sm:$0xff]  }
 0x2b8   : > { %v9791_v41 = vadd.f32 %v3895_v34, %v12787_v13  ;;  %v9760_v63 = vadd.f32 %v3558_v42, %v12789_v2  ;;  %v3897_v51 = vpop.f32.mrb[41].mxu1  ;;  %v3560_v35 = vpop.f32.mrb[42].mxu0  ;;  %5972 = vmatprep.mubr.bf16.mxu0 %v4095_v44  ;;  %6424 = vmatprep.mubr.bf16.mxu1 %v4095_v44  ;;  %v10752_v34 = vld [vmem:[#allocation2 + $0x6a0] ss:$16 sps:$4 sm:$0xff]   ;;  %v10755_v42 = vld [vmem:[#allocation2 + $0x6a8] ss:$16 sps:$4 sm:$0xff]  }
 0x2b9   : > { %v9792_v45 = vadd.f32 %v3897_v51, %v12791_v31  ;;  %v9761_v28 = vadd.f32 %v3560_v35, %v12785_v15  ;;  %v3899_v53 = vpop.f32.mrb[42].mxu1  ;;  %v3562_v36 = vpop.f32.mrb[43].mxu0  ;;  %5973 = vmatmul.mubr.bf16.gmra.mrb[68].mxu0 %v4094_v11  ;;  %6425 = vmatmul.mubr.bf16.gmra.mrb[68].mxu1 %v4094_v11  ;;  %v3990_v20 = vmax.f32 %v9759_v47, 0.0  ;;  %v10763_v51 = vld [vmem:[#allocation2 + $0x6cc] ss:$16 sps:$4 sm:$0xff]  }
 0x2ba   : > { %v9793_v4 = vadd.f32 %v3899_v53, %v12787_v13  ;;  %v9762_v58 = vadd.f32 %v3562_v36, %v12789_v2  ;;  %v3901_v30 = vpop.f32.mrb[43].mxu1  ;;  %6048 = vmatpush1.bf16.msra.mxu0 %v10734_v19  ;;  %6500 = vmatpush1.bf16.msra.mxu1 %v10737_v48  ;;  %v3992_v55 = vmax.f32 %v9791_v41, 0.0  ;;  %v3991_v56 = vmax.f32 %v9760_v63, 0.0  ;;  %v10760_v63 = vld [vmem:[#allocation2 + $0x6c4] ss:$16 sps:$4 sm:$0xff]  }
 0x2bb   : > { %v3998_v46 = vmax.f32 %v9761_v28, 0.0  ;;  %v9794_v26 = vadd.f32 %v3901_v30, %v12791_v31  ;;  %6049 = vmatprep.subr.bf16.mxu0 %v10742_v62  ;;  %6501 = vmatprep.subr.bf16.mxu1 %v10745_v57  ;;  %v3993_v5 = vmax.f32 %v9792_v45, 0.0 }
 0x2bc   : > { %v4000_v17 = vmax.f32 %v9793_v4, 0.0  ;;  %v3999_v6 = vmax.f32 %v9762_v58, 0.0 }
 0x2bd   : > { %v4102_v1 = vpack.c.bf16 %v3998_v46, %v3990_v20  ;;  %v4001_v33 = vmax.f32 %v9794_v26, 0.0  ;;  %v10758_v20 = vld [vmem:[#allocation2 + $0x6c0] ss:$16 sps:$4 sm:$0xff]   ;;  %v10761_v46 = vld [vmem:[#allocation2 + $0x6c8] ss:$16 sps:$4 sm:$0xff]  }
 0x2be   : > { %v12825_v14 = vpack.c.bf16 %v4000_v17, %v3992_v55  ;;  %v4103_v39 = vpack.c.bf16 %v3999_v6, %v3991_v56  ;;  %v3566_v7 = vpop.f32.mrb[44].mxu0  ;;  %6050 = vmatpush1.bf16.msra.mxu0 %v10740_v8  ;;  %6502 = vmatpush1.bf16.msra.mxu1 %v10743_v18  ;;  %v10766_v56 = vld [vmem:[#allocation2 + $0x6e4] ss:$16 sps:$4 sm:$0xff]   ;;  %v10769_v17 = vld [vmem:[#allocation2 + $0x6ec] ss:$16 sps:$4 sm:$0xff]  }
 0x2bf   : > { %v12827_v21 = vpack.c.bf16 %v4001_v33, %v3993_v5  ;;  %v9763_v27 = vadd.f32 %v3566_v7, %v12785_v15  ;;  %v3905_v52 = vpop.f32.mrb[44].mxu1  ;;  %v3568_v29 = vpop.f32.mrb[45].mxu0  ;;  %6051 = vmatprep.subr.bf16.mxu0 %v10748_v3  ;;  %6503 = vmatprep.subr.bf16.mxu1 %v10751_v50 }
 0x2c0   : > { %v9795_v38 = vadd.f32 %v3905_v52, %v12787_v13  ;;  %v9764_v40 = vadd.f32 %v3568_v29, %v12789_v2  ;;  %v3907_v43 = vpop.f32.mrb[45].mxu1  ;;  %v3570_v22 = vpop.f32.mrb[46].mxu0  ;;  %5982 = vmatprep.mubr.bf16.mxu0 %v4103_v39  ;;  %6434 = vmatprep.mubr.bf16.mxu1 %v4103_v39 }
 0x2c1   : > { %v9796_v11 = vadd.f32 %v3907_v43, %v12791_v31  ;;  %v9765_v24 = vadd.f32 %v3570_v22, %v12785_v15  ;;  %v3909_v44 = vpop.f32.mrb[46].mxu1  ;;  %v3572_v54 = vpop.f32.mrb[47].mxu0  ;;  %5983 = vmatmul.mubr.bf16.gmra.mrb[72].mxu0 %v4102_v1  ;;  %6435 = vmatmul.mubr.bf16.gmra.mrb[72].mxu1 %v4102_v1  ;;  %v4006_v62 = vmax.f32 %v9763_v27, 0.0  ;;  %v10772_v22 = vld [vmem:[#allocation2 + $0x704] ss:$16 sps:$4 sm:$0xff]  }
 0x2c2   : > { %v9797_v19 = vadd.f32 %v3909_v44, %v12787_v13  ;;  %v9766_v48 = vadd.f32 %v3572_v54, %v12789_v2  ;;  %v3911_v47 = vpop.f32.mrb[47].mxu1  ;;  %6052 = vmatpush1.bf16.msra.mxu0 %v10746_v16  ;;  %6504 = vmatpush1.bf16.msra.mxu1 %v10749_v32  ;;  %v4008_v35 = vmax.f32 %v9795_v38, 0.0  ;;  %v4007_v45 = vmax.f32 %v9764_v40, 0.0 }
 0x2c3   : > { %v4014_v57 = vmax.f32 %v9765_v24, 0.0  ;;  %v9798_v41 = vadd.f32 %v3911_v47, %v12791_v31  ;;  %6053 = vmatprep.subr.bf16.mxu0 %v10754_v59  ;;  %6505 = vmatprep.subr.bf16.mxu1 %v10757_v23  ;;  %v4009_v36 = vmax.f32 %v9796_v11, 0.0  ;;  %v10764_v59 = vld [vmem:[#allocation2 + $0x6e0] ss:$16 sps:$4 sm:$0xff]   ;;  %v10767_v23 = vld [vmem:[#allocation2 + $0x6e8] ss:$16 sps:$4 sm:$0xff]  }
 0x2c4   : > { %v4016_v28 = vmax.f32 %v9797_v19, 0.0  ;;  %v4015_v53 = vmax.f32 %v9766_v48, 0.0  ;;  %v10775_v11 = vld [vmem:[#allocation2 + $0x70c] ss:$16 sps:$4 sm:$0xff]  }
 0x2c5   : > { %v4110_v4 = vpack.c.bf16 %v4014_v57, %v4006_v62  ;;  %v4017_v58 = vmax.f32 %v9798_v41, 0.0  ;;  %v10770_v41 = vld [vmem:[#allocation2 + $0x700] ss:$16 sps:$4 sm:$0xff]  }
 0x2c6   : > { %v12837_v30 = vpack.c.bf16 %v4016_v28, %v4008_v35  ;;  %v4111_v8 = vpack.c.bf16 %v4015_v53, %v4007_v45  ;;  %v3576_v18 = vpop.f32.mrb[48].mxu0  ;;  %6054 = vmatpush1.bf16.msra.mxu0 %v10752_v34  ;;  %6506 = vmatpush1.bf16.msra.mxu1 %v10755_v42  ;;  %v10778_v53 = vld [vmem:[#allocation2 + $0x724] ss:$16 sps:$4 sm:$0xff]  }
 0x2c7   : > { %v12839_v26 = vpack.c.bf16 %v4017_v58, %v4009_v36  ;;  %v9767_v3 = vadd.f32 %v3576_v18, %v12785_v15  ;;  %v3915_v50 = vpop.f32.mrb[48].mxu1  ;;  %v3578_v55 = vpop.f32.mrb[49].mxu0  ;;  %6055 = vmatprep.subr.bf16.mxu0 %v10760_v63  ;;  %6507 = vmatprep.subr.bf16.mxu1 %v10763_v51  ;;  %v10773_v63 = vld [vmem:[#allocation2 + $0x708] ss:$16 sps:$4 sm:$0xff]   ;;  %v10781_v36 = vld [vmem:[#allocation2 + $0x72c] ss:$16 sps:$4 sm:$0xff]  }
 0x2c8   : > { %v9799_v6 = vadd.f32 %v3915_v50, %v12787_v13  ;;  %v9768_v5 = vadd.f32 %v3578_v55, %v12789_v2  ;;  %v3917_v1 = vpop.f32.mrb[49].mxu1  ;;  %v3580_v33 = vpop.f32.mrb[50].mxu0  ;;  %5992 = vmatprep.mubr.bf16.mxu0 %v4111_v8  ;;  %6444 = vmatprep.mubr.bf16.mxu1 %v4111_v8 }
 0x2c9   : > { %v9800_v39 = vadd.f32 %v3917_v1, %v12791_v31  ;;  %v9769_v7 = vadd.f32 %v3580_v33, %v12785_v15  ;;  %v3919_v16 = vpop.f32.mrb[50].mxu1  ;;  %v3582_v32 = vpop.f32.mrb[51].mxu0  ;;  %5993 = vmatmul.mubr.bf16.gmra.mrb[76].mxu0 %v4110_v4  ;;  %6445 = vmatmul.mubr.bf16.gmra.mrb[76].mxu1 %v4110_v4  ;;  %v4022_v38 = vmax.f32 %v9767_v3, 0.0 }
 0x2ca   : > { %v9801_v27 = vadd.f32 %v3919_v16, %v12787_v13  ;;  %v9770_v52 = vadd.f32 %v3582_v32, %v12789_v2  ;;  %v3921_v29 = vpop.f32.mrb[51].mxu1  ;;  %6056 = vmatpush1.bf16.msra.mxu0 %v10758_v20  ;;  %6508 = vmatpush1.bf16.msra.mxu1 %v10761_v46  ;;  %v4024_v24 = vmax.f32 %v9799_v6, 0.0  ;;  %v4023_v44 = vmax.f32 %v9768_v5, 0.0  ;;  %v10776_v6 = vld [vmem:[#allocation2 + $0x720] ss:$16 sps:$4 sm:$0xff]  }
 0x2cb   : > { %v4030_v40 = vmax.f32 %v9769_v7, 0.0  ;;  %v9802_v43 = vadd.f32 %v3921_v29, %v12791_v31  ;;  %6057 = vmatprep.subr.bf16.mxu0 %v10766_v56  ;;  %6509 = vmatprep.subr.bf16.mxu1 %v10769_v17  ;;  %v4025_v48 = vmax.f32 %v9800_v39, 0.0  ;;  %v10779_v5 = vld [vmem:[#allocation2 + $0x728] ss:$16 sps:$4 sm:$0xff]   ;;  %v10784_v7 = vld [vmem:[#allocation2 + $0x744] ss:$16 sps:$4 sm:$0xff]  }
 0x2cc   : > { %v4032_v54 = vmax.f32 %v9801_v27, 0.0  ;;  %v4031_v19 = vmax.f32 %v9770_v52, 0.0  ;;  %v10787_v16 = vld [vmem:[#allocation2 + $0x74c] ss:$16 sps:$4 sm:$0xff]  }
 0x2cd   : > { %v4118_v47 = vpack.c.bf16 %v4030_v40, %v4022_v38  ;;  %v4033_v34 = vmax.f32 %v9802_v43, 0.0 }
 0x2ce   : > { %v12849_v42 = vpack.c.bf16 %v4032_v54, %v4024_v24  ;;  %v4119_v62 = vpack.c.bf16 %v4031_v19, %v4023_v44  ;;  %v3586_v57 = vpop.f32.mrb[52].mxu0  ;;  %6058 = vmatpush1.bf16.msra.mxu0 %v10764_v59  ;;  %6510 = vmatpush1.bf16.msra.mxu1 %v10767_v23  ;;  %v10785_v24 = vld [vmem:[#allocation2 + $0x748] ss:$16 sps:$4 sm:$0xff]  }
 0x2cf   : > { %v12851_v51 = vpack.c.bf16 %v4033_v34, %v4025_v48  ;;  %v9771_v35 = vadd.f32 %v3586_v57, %v12785_v15  ;;  %v3925_v45 = vpop.f32.mrb[52].mxu1  ;;  %v3588_v28 = vpop.f32.mrb[53].mxu0  ;;  %6059 = vmatprep.subr.bf16.mxu0 %v10772_v22  ;;  %6511 = vmatprep.subr.bf16.mxu1 %v10775_v11  ;;  %v10782_v11 = vld [vmem:[#allocation2 + $0x740] ss:$16 sps:$4 sm:$0xff]   ;;  %v10793_v34 = vld [vmem:[#allocation2 + $0x76c] ss:$16 sps:$4 sm:$0xff]  }
 0x2d0   : > { %v9803_v4 = vadd.f32 %v3925_v45, %v12787_v13  ;;  %v9772_v58 = vadd.f32 %v3588_v28, %v12789_v2  ;;  %v3927_v8 = vpop.f32.mrb[53].mxu1  ;;  %v3590_v18 = vpop.f32.mrb[54].mxu0  ;;  %6002 = vmatprep.mubr.bf16.mxu0 %v4119_v62  ;;  %6454 = vmatprep.mubr.bf16.mxu1 %v4119_v62 }
 0x2d1   : > { %v9804_v20 = vadd.f32 %v3927_v8, %v12791_v31  ;;  %v9773_v46 = vadd.f32 %v3590_v18, %v12785_v15  ;;  %v3929_v3 = vpop.f32.mrb[54].mxu1  ;;  %v3592_v50 = vpop.f32.mrb[55].mxu0  ;;  %6003 = vmatmul.mubr.bf16.gmra.mrb[80].mxu0 %v4118_v47  ;;  %6455 = vmatmul.mubr.bf16.gmra.mrb[80].mxu1 %v4118_v47  ;;  %v4038_v1 = vmax.f32 %v9771_v35, 0.0  ;;  %v10790_v47 = vld [vmem:[#allocation2 + $0x764] ss:$16 sps:$4 sm:$0xff]  }
 0x2d2   : > { %v9805_v55 = vadd.f32 %v3929_v3, %v12787_v13  ;;  %v9774_v56 = vadd.f32 %v3592_v50, %v12789_v2  ;;  %v3931_v17 = vpop.f32.mrb[55].mxu1  ;;  %6060 = vmatpush1.bf16.msra.mxu0 %v10770_v41  ;;  %6512 = vmatpush1.bf16.msra.mxu1 %v10773_v63  ;;  %v4040_v32 = vmax.f32 %v9803_v4, 0.0  ;;  %v4039_v27 = vmax.f32 %v9772_v58, 0.0  ;;  %v10788_v8 = vld [vmem:[#allocation2 + $0x760] ss:$16 sps:$4 sm:$0xff]  }
 0x2d3   : > { %v4046_v33 = vmax.f32 %v9773_v46, 0.0  ;;  %v9806_v39 = vadd.f32 %v3931_v17, %v12791_v31  ;;  %6061 = vmatprep.subr.bf16.mxu0 %v10778_v53  ;;  %6513 = vmatprep.subr.bf16.mxu1 %v10781_v36  ;;  %v4041_v59 = vmax.f32 %v9804_v20, 0.0  ;;  %v10791_v18 = vld [vmem:[#allocation2 + $0x768] ss:$16 sps:$4 sm:$0xff]   ;;  %v10796_v50 = vld [vmem:[#allocation2 + $0x784] ss:$16 sps:$4 sm:$0xff]  }
 0x2d4   : > { %v4048_v52 = vmax.f32 %v9805_v55, 0.0  ;;  %v4047_v29 = vmax.f32 %v9774_v56, 0.0  ;;  %v10799_v55 = vld [vmem:[#allocation2 + $0x78c] ss:$16 sps:$4 sm:$0xff]  }
 0x2d5   : > { %v4126_v23 = vpack.c.bf16 %v4046_v33, %v4038_v1  ;;  %v4049_v38 = vmax.f32 %v9806_v39, 0.0 }
 0x2d6   : > { %v12861_v40 = vpack.c.bf16 %v4048_v52, %v4040_v32  ;;  %v4127_v43 = vpack.c.bf16 %v4047_v29, %v4039_v27  ;;  %v3596_v22 = vpop.f32.mrb[56].mxu0  ;;  %6062 = vmatpush1.bf16.msra.mxu0 %v10776_v6  ;;  %6514 = vmatpush1.bf16.msra.mxu1 %v10779_v5  ;;  %v10794_v27 = vld [vmem:[#allocation2 + $0x780] ss:$16 sps:$4 sm:$0xff]   ;;  %v10797_v52 = vld [vmem:[#allocation2 + $0x788] ss:$16 sps:$4 sm:$0xff]  }
 0x2d7   : > { %v12863_v44 = vpack.c.bf16 %v4049_v38, %v4041_v59  ;;  %v9775_v54 = vadd.f32 %v3596_v22, %v12785_v15  ;;  %v3935_v19 = vpop.f32.mrb[56].mxu1  ;;  %v3598_v48 = vpop.f32.mrb[57].mxu0  ;;  %6063 = vmatprep.subr.bf16.mxu0 %v10784_v7  ;;  %6515 = vmatprep.subr.bf16.mxu1 %v10787_v16  ;;  %v10805_v22 = vld [vmem:[#allocation2 + $0x7ac] ss:$16 sps:$4 sm:$0xff]  }
 0x2d8   : > { %v9807_v62 = vadd.f32 %v3935_v19, %v12787_v13  ;;  %v9776_v57 = vadd.f32 %v3598_v48, %v12789_v2  ;;  %v3937_v41 = vpop.f32.mrb[57].mxu1  ;;  %v3600_v63 = vpop.f32.mrb[58].mxu0  ;;  %6012 = vmatprep.mubr.bf16.mxu0 %v4127_v43  ;;  %6464 = vmatprep.mubr.bf16.mxu1 %v4127_v43  ;;  %v10802_v43 = vld [vmem:[#allocation2 + $0x7a4] ss:$16 sps:$4 sm:$0xff]  }
 0x2d9   : > { %v9808_v35 = vadd.f32 %v3937_v41, %v12791_v31  ;;  %v9777_v45 = vadd.f32 %v3600_v63, %v12785_v15  ;;  %v3939_v28 = vpop.f32.mrb[58].mxu1  ;;  %v3602_v53 = vpop.f32.mrb[59].mxu0  ;;  %6013 = vmatmul.mubr.bf16.gmra.mrb[84].mxu0 %v4126_v23  ;;  %6465 = vmatmul.mubr.bf16.gmra.mrb[84].mxu1 %v4126_v23  ;;  %v4054_v20 = vmax.f32 %v9775_v54, 0.0 }
 0x2da   : > { %v9809_v36 = vadd.f32 %v3939_v28, %v12787_v13  ;;  %v9778_v4 = vadd.f32 %v3602_v53, %v12789_v2  ;;  %v3941_v58 = vpop.f32.mrb[59].mxu1  ;;  %6064 = vmatpush1.bf16.msra.mxu0 %v10782_v11  ;;  %6516 = vmatpush1.bf16.msra.mxu1 %v10785_v24  ;;  %v4056_v56 = vmax.f32 %v9807_v62, 0.0  ;;  %v4055_v17 = vmax.f32 %v9776_v57, 0.0 }
 0x2db   : > { %v4062_v46 = vmax.f32 %v9777_v45, 0.0  ;;  %v9810_v3 = vadd.f32 %v3941_v58, %v12791_v31  ;;  %6065 = vmatprep.subr.bf16.mxu0 %v10790_v47  ;;  %6517 = vmatprep.subr.bf16.mxu1 %v10793_v34  ;;  %v4057_v1 = vmax.f32 %v9808_v35, 0.0  ;;  %v10800_v35 = vld [vmem:[#allocation2 + $0x7a0] ss:$16 sps:$4 sm:$0xff]   ;;  %v10803_v45 = vld [vmem:[#allocation2 + $0x7a8] ss:$16 sps:$4 sm:$0xff]  }
 0x2dc   : > { %v4064_v6 = vmax.f32 %v9809_v36, 0.0  ;;  %v4063_v5 = vmax.f32 %v9778_v4, 0.0  ;;  %v10811_v4 = vld [vmem:[#allocation2 + $0x7cc] ss:$16 sps:$4 sm:$0xff]  }
 0x2dd   : > { %v4134_v33 = vpack.c.bf16 %v4062_v46, %v4054_v20  ;;  %v4065_v39 = vmax.f32 %v9810_v3, 0.0 }
 0x2de   : > { %v12873_v7 = vpack.c.bf16 %v4064_v6, %v4056_v56  ;;  %v4135_v16 = vpack.c.bf16 %v4063_v5, %v4055_v17  ;;  %v3606_v32 = vpop.f32.mrb[60].mxu0  ;;  %6066 = vmatpush1.bf16.msra.mxu0 %v10788_v8  ;;  %6518 = vmatpush1.bf16.msra.mxu1 %v10791_v18  ;;  %v10814_v17 = vld [vmem:[#allocation2 + $0x7e4] ss:$16 sps:$4 sm:$0xff]   ;;  %v10817_v6 = vld [vmem:[#allocation2 + $0x7ec] ss:$16 sps:$4 sm:$0xff]  }
 0x2df   : > { %v12875_v29 = vpack.c.bf16 %v4065_v39, %v4057_v1  ;;  %v9779_v59 = vadd.f32 %v3606_v32, %v12785_v15  ;;  %v3945_v23 = vpop.f32.mrb[60].mxu1  ;;  %v3608_v38 = vpop.f32.mrb[61].mxu0  ;;  %6067 = vmatprep.subr.bf16.mxu0 %v10796_v50  ;;  %6519 = vmatprep.subr.bf16.mxu1 %v10799_v55  ;;  %v10806_v55 = vld [vmem:[#allocation2 + $0x7c0] ss:$16 sps:$4 sm:$0xff]   ;;  %v10815_v1 = vld [vmem:[#allocation2 + $0x7e8] ss:$16 sps:$4 sm:$0xff]  }
 0x2e0   : > { %v9811_v11 = vadd.f32 %v3945_v23, %v12787_v13  ;;  %v9780_v24 = vadd.f32 %v3608_v38, %v12789_v2  ;;  %v3947_v54 = vpop.f32.mrb[61].mxu1  ;;  %v3610_v19 = vpop.f32.mrb[62].mxu0  ;;  %6022 = vmatprep.mubr.bf16.mxu0 %v4135_v16  ;;  %6474 = vmatprep.mubr.bf16.mxu1 %v4135_v16  ;;  %v10812_v5 = vld [vmem:[#allocation2 + $0x7e0] ss:$16 sps:$4 sm:$0xff]   ;;  %v10823_v16 = vld [vmem:[#allocation4 + $0x14] ss:$8 sps:$4 sm:$0xff]  }
 0x2e1   : > { %v9812_v48 = vadd.f32 %v3947_v54, %v12791_v31  ;;  %v9781_v47 = vadd.f32 %v3610_v19, %v12785_v15  ;;  %v3949_v34 = vpop.f32.mrb[62].mxu1  ;;  %v3612_v62 = vpop.f32.mrb[63].mxu0  ;;  %6023 = vmatmul.mubr.bf16.gmra.mrb[88].mxu0 %v4134_v33  ;;  %6475 = vmatmul.mubr.bf16.gmra.mrb[88].mxu1 %v4134_v33  ;;  %v4070_v28 = vmax.f32 %v9779_v59, 0.0  ;;  %v10808_v15 = vld [vmem:[#allocation2 + $0x7c4] ss:$16 sps:$4 sm:$0xff]  }
 0x2e2   : > { %v9813_v57 = vadd.f32 %v3949_v34, %v12787_v13  ;;  %v9782_v41 = vadd.f32 %v3612_v62, %v12789_v2  ;;  %v3951_v63 = vpop.f32.mrb[63].mxu1  ;;  %6068 = vmatpush1.bf16.msra.mxu0 %v10794_v27  ;;  %6520 = vmatpush1.bf16.msra.mxu1 %v10797_v52  ;;  %v4072_v58 = vmax.f32 %v9811_v11, 0.0  ;;  %v4071_v8 = vmax.f32 %v9780_v24, 0.0  ;;  %v10820_v33 = vld [vmem:[#allocation4 + $0x4] ss:$8 sps:$4 sm:$0xff]  }
 0x2e3   : > { %v4078_v53 = vmax.f32 %v9781_v47, 0.0  ;;  %v9814_v36 = vadd.f32 %v3951_v63, %v12791_v31  ;;  %6069 = vmatprep.subr.bf16.mxu0 %v10802_v43  ;;  %6521 = vmatprep.subr.bf16.mxu1 %v10805_v22  ;;  %v4073_v13 = vmax.f32 %v9812_v48, 0.0  ;;  %v10809_v31 = vld [vmem:[#allocation2 + $0x7c8] ss:$16 sps:$4 sm:$0xff]   ;;  %v10829_v52 = vld [vmem:[#allocation4 + $0x34] ss:$8 sps:$4 sm:$0xff]  }
 0x2e4   : > { %v4080_v18 = vmax.f32 %v9813_v57, 0.0  ;;  %v4079_v20 = vmax.f32 %v9782_v41, 0.0  ;;  %v10818_v39 = vld [vmem:[#allocation4] ss:$8 sps:$4 sm:$0xff]   ;;  %v10821_v32 = vld [vmem:[#allocation4 + $0x10] ss:$8 sps:$4 sm:$0xff]  }
 0x2e5   : > { %v4142_v46 = vpack.c.bf16 %v4078_v53, %v4070_v28  ;;  %v4081_v2 = vmax.f32 %v9814_v36, 0.0  ;;  %v10824_v27 = vld [vmem:[#allocation4 + $0x20] ss:$8 sps:$4 sm:$0xff]   ;;  %v10835_v23 = vld [vmem:[#allocation4 + $0x54] ss:$8 sps:$4 sm:$0xff]  }
 0x2e6   : > { %v12885_v3 = vpack.c.bf16 %v4080_v18, %v4072_v58  ;;  %v4143_v50 = vpack.c.bf16 %v4079_v20, %v4071_v8  ;;  %6070 = vmatpush1.bf16.msra.mxu0 %v10800_v35  ;;  %6522 = vmatpush1.bf16.msra.mxu1 %v10803_v45  ;;  %v10830_v59 = vld [vmem:[#allocation4 + $0x40] ss:$8 sps:$4 sm:$0xff]   ;;  %v10841_v43 = vld [vmem:[#allocation4 + $0x74] ss:$8 sps:$4 sm:$0xff]   ;;  %v10863_v62 = vld [vmem:[#allocation4 + $0xf0] ss:$8 sps:$4 sm:$0xff]  }
 0x2e7   : > { %v12887_v56 = vpack.c.bf16 %v4081_v2, %v4073_v13  ;;  %6071 = vmatprep.subr.bf16.mxu0 %v10808_v15  ;;  %6523 = vmatprep.subr.bf16.mxu1 %v10811_v4  ;;  %v10836_v38 = vld [vmem:[#allocation4 + $0x60] ss:$8 sps:$4 sm:$0xff]   ;;  %v10847_v11 = vld [vmem:[#allocation4 + $0x94] ss:$8 sps:$4 sm:$0xff]  }
 0x2e8   : > { %6032 = vmatprep.mubr.bf16.mxu0 %v4143_v50  ;;  %6484 = vmatprep.mubr.bf16.mxu1 %v4143_v50  ;;  %v10842_v22 = vld [vmem:[#allocation4 + $0x80] ss:$8 sps:$4 sm:$0xff]   ;;  %v10853_v54 = vld [vmem:[#allocation4 + $0xb4] ss:$8 sps:$4 sm:$0xff]  }
 0x2e9   : > { %6033 = vmatmul.mubr.bf16.gmra.mrb[92].mxu0 %v4142_v46  ;;  %6485 = vmatmul.mubr.bf16.gmra.mrb[92].mxu1 %v4142_v46  ;;  %v10848_v24 = vld [vmem:[#allocation4 + $0xa0] ss:$8 sps:$4 sm:$0xff]   ;;  %v10859_v48 = vld [vmem:[#allocation4 + $0xd4] ss:$8 sps:$4 sm:$0xff]  }
 0x2ea   : > { %6072 = vmatpush1.bf16.msra.mxu0 %v10806_v55  ;;  %6075 = vmatprep.mubr.bf16.mxu0 %v12803_v60  ;;  %v10854_v19 = vld [vmem:[#allocation4 + $0xc0] ss:$8 sps:$4 sm:$0xff]   ;;  %v10865_v34 = vld [vmem:[#allocation4 + $0xf4] ss:$8 sps:$4 sm:$0xff]  }
 0x2eb   : > { %6524 = vmatpush1.bf16.msra.mxu1 %v10809_v31  ;;  %6527 = vmatprep.mubr.bf16.mxu1 %v12803_v60  ;;  %v10826_v60 = vld [vmem:[#allocation4 + $0x24] ss:$8 sps:$4 sm:$0xff]   ;;  %v10860_v47 = vld [vmem:[#allocation4 + $0xe0] ss:$8 sps:$4 sm:$0xff]  }
 0x2ec   : > { %6073 = vmatprep.subr.bf16.mxu0 %v10814_v17  ;;  %6525 = vmatprep.subr.bf16.mxu1 %v10817_v6  ;;  %v4402_v57 = vld [vmem:[%s13448_s4] sm:$0xf]  ;;  %v10916_v2 = vld [vmem:[%s13451_s7 + $0x48] sm:$0xff]  }
 0x2ed   : > { %v12925_v41 = vrot.slane %v4402_v57, %v12528_v0  ;;  %v12929_v63 = vrot.slane %v4402_v57, %v1018_v9  ;;  %v12932_v35 = vrot.slane %v4402_v57, %v12535_v10  ;;  %v12936_v45 = vrot.slane %v4402_v57, %v1022_v37  ;;  %v10915_v37 = vld [vmem:[%s13451_s7] sm:$0xff]  }
 0x2ee   : > { %6074 = vmatpush1.bf16.msra.mxu0 %v10812_v5 }
 0x2ef   : > { %6526 = vmatpush1.bf16.msra.mxu1 %v10815_v1  ;;  %7100 = vmatprep.subr.bf16.mxu0 %v10820_v33 }
 0x2f0   : > { %9399 = vmatprep.subr.bf16.mxu1 %v10914_v61 }
 0x2f1   : > { %6076 = vmatmul.mubr.bf16.vlgmr.msra.gmra.mrb[64].mxu0 %v12801_v12 }
 0x2f2   : > { %6528 = vmatmul.mubr.bf16.vlgmr.msra.gmra.mrb[64].mxu1 %v12801_v12  ;;  %6085 = vmatprep.mubr.bf16.mxu0 %v12815_v49  ;;  %v10827_v12 = vld [vmem:[#allocation4 + $0x30] ss:$8 sps:$4 sm:$0xff]  }
 0x2f3   : > { %6537 = vmatprep.mubr.bf16.mxu1 %v12815_v49  ;;  %7101 = vmatpush1.bf16.msra.mxu0 %v10818_v39  ;;  %v10832_v49 = vld [vmem:[#allocation4 + $0x44] ss:$8 sps:$4 sm:$0xff]  }
 0x2f4   : > { %7102 = vmatprep.subr.bf16.mxu0 %v10823_v16  ;;  %9400 = vmatpush3.bf16.msra.mxu1 %v10915_v37  ;;  %v10917_v39 = vld [vmem:[%s13451_s7 + $0x8] sm:$0xff]  }
 0x2f5   : > { %9401 = vmatprep.subr.bf16.mxu1 %v10916_v2 }
 0x2f7   : > { %7103 = vmatpush1.bf16.msra.mxu0 %v10821_v32 }
 0x2f8   : > { %7104 = vmatprep.subr.bf16.mxu0 %v10826_v60  ;;  %9402 = vmatpush3.bf16.msra.mxu1 %v10917_v39 }
 0x2f9   : > { %6086 = vmatmul.mubr.bf16.gmra.mrb[68].mxu0 %v12813_v25 }
 0x2fa   : > { %6538 = vmatmul.mubr.bf16.gmra.mrb[68].mxu1 %v12813_v25  ;;  %6095 = vmatprep.mubr.bf16.mxu0 %v12827_v21  ;;  %v10833_v25 = vld [vmem:[#allocation4 + $0x50] ss:$8 sps:$4 sm:$0xff]  }
 0x2fb   : > { %6547 = vmatprep.mubr.bf16.mxu1 %v12827_v21  ;;  %7105 = vmatpush1.bf16.msra.mxu0 %v10824_v27  ;;  %v10838_v21 = vld [vmem:[#allocation4 + $0x64] ss:$8 sps:$4 sm:$0xff]   ;;  %v10918_v27 = vld [vmem:[%s13451_s7 + $0x50] sm:$0xff]  }
 0x2fc   : > { %7106 = vmatprep.subr.bf16.mxu0 %v10829_v52  ;;  %9403 = vmatprep.subr.bf16.mxu1 %v10918_v27 }
 0x2ff   : > { %7107 = vmatpush1.bf16.msra.mxu0 %v10827_v12 }
 0x300   : > { %7108 = vmatprep.subr.bf16.mxu0 %v10832_v49 }
 0x301   : > { %6096 = vmatmul.mubr.bf16.gmra.mrb[72].mxu0 %v12825_v14 }
 0x302   : > { %6548 = vmatmul.mubr.bf16.gmra.mrb[72].mxu1 %v12825_v14  ;;  %6105 = vmatprep.mubr.bf16.mxu0 %v12839_v26  ;;  %v10839_v14 = vld [vmem:[#allocation4 + $0x70] ss:$8 sps:$4 sm:$0xff]  }
 0x303   : > { %6557 = vmatprep.mubr.bf16.mxu1 %v12839_v26  ;;  %7109 = vmatpush1.bf16.msra.mxu0 %v10830_v59  ;;  %v10844_v26 = vld [vmem:[#allocation4 + $0x84] ss:$8 sps:$4 sm:$0xff]   ;;  %v10866_v59 = vld [vmem:[#allocation4 + $0x100] ss:$8 sps:$4 sm:$0xff]  }
 0x304   : > { %7110 = vmatprep.subr.bf16.mxu0 %v10835_v23 }
 0x307   : > { %7111 = vmatpush1.bf16.msra.mxu0 %v10833_v25 }
 0x308   : > { %7112 = vmatprep.subr.bf16.mxu0 %v10838_v21 }
 0x309   : > { %6106 = vmatmul.mubr.bf16.gmra.mrb[76].mxu0 %v12837_v30 }
 0x30a   : > { %6558 = vmatmul.mubr.bf16.gmra.mrb[76].mxu1 %v12837_v30  ;;  %6115 = vmatprep.mubr.bf16.mxu0 %v12851_v51  ;;  %v10845_v30 = vld [vmem:[#allocation4 + $0x90] ss:$8 sps:$4 sm:$0xff]  }
 0x30b   : > { %6567 = vmatprep.mubr.bf16.mxu1 %v12851_v51  ;;  %7113 = vmatpush1.bf16.msra.mxu0 %v10836_v38  ;;  %v10850_v51 = vld [vmem:[#allocation4 + $0xa4] ss:$8 sps:$4 sm:$0xff]  }
 0x30c   : > { %7114 = vmatprep.subr.bf16.mxu0 %v10841_v43  ;;  %v10871_v43 = vld [vmem:[#allocation4 + $0x114] ss:$8 sps:$4 sm:$0xff]  }
 0x30f   : > { %7115 = vmatpush1.bf16.msra.mxu0 %v10839_v14 }
 0x310   : > { %7116 = vmatprep.subr.bf16.mxu0 %v10844_v26 }
 0x311   : > { %6116 = vmatmul.mubr.bf16.gmra.mrb[80].mxu0 %v12849_v42 }
 0x312   : > { %6568 = vmatmul.mubr.bf16.gmra.mrb[80].mxu1 %v12849_v42  ;;  %6125 = vmatprep.mubr.bf16.mxu0 %v12863_v44  ;;  %v10851_v42 = vld [vmem:[#allocation4 + $0xb0] ss:$8 sps:$4 sm:$0xff]  }
 0x313   : > { %6577 = vmatprep.mubr.bf16.mxu1 %v12863_v44  ;;  %7117 = vmatpush1.bf16.msra.mxu0 %v10842_v22  ;;  %v10856_v44 = vld [vmem:[#allocation4 + $0xc4] ss:$8 sps:$4 sm:$0xff]  }
 0x314   : > { %7118 = vmatprep.subr.bf16.mxu0 %v10847_v11 }
 0x317   : > { %7119 = vmatpush1.bf16.msra.mxu0 %v10845_v30  ;;  %v10919_v30 = vld [vmem:[%s13451_s7 + $0x10] sm:$0xff]  }
 0x318   : > { %7120 = vmatprep.subr.bf16.mxu0 %v10850_v51  ;;  %9404 = vmatpush3.bf16.msra.mxu1 %v10919_v30 }
 0x319   : > { %6126 = vmatmul.mubr.bf16.gmra.mrb[84].mxu0 %v12861_v40 }
 0x31a   : > { %6578 = vmatmul.mubr.bf16.gmra.mrb[84].mxu1 %v12861_v40  ;;  %6135 = vmatprep.mubr.bf16.mxu0 %v12875_v29  ;;  %v10857_v40 = vld [vmem:[#allocation4 + $0xd0] ss:$8 sps:$4 sm:$0xff]  }
 0x31b   : > { %6587 = vmatprep.mubr.bf16.mxu1 %v12875_v29  ;;  %7121 = vmatpush1.bf16.msra.mxu0 %v10848_v24  ;;  %v10862_v29 = vld [vmem:[#allocation4 + $0xe4] ss:$8 sps:$4 sm:$0xff]  }
 0x31c   : > { %7122 = vmatprep.subr.bf16.mxu0 %v10853_v54 }
 0x31f   : > { %7123 = vmatpush1.bf16.msra.mxu0 %v10851_v42 }
 0x320   : > { %7124 = vmatprep.subr.bf16.mxu0 %v10856_v44  ;;  %v10920_v44 = vld [vmem:[%s13451_s7 + $0x58] sm:$0xff]  }
 0x321   : > { %6136 = vmatmul.mubr.bf16.gmra.mrb[88].mxu0 %v12873_v7  ;;  %9405 = vmatprep.subr.bf16.mxu1 %v10920_v44 }
 0x322   : > { %6588 = vmatmul.mubr.bf16.gmra.mrb[88].mxu1 %v12873_v7  ;;  %6145 = vmatprep.mubr.bf16.mxu0 %v12887_v56  ;;  %v10868_v7 = vld [vmem:[#allocation4 + $0x104] ss:$8 sps:$4 sm:$0xff]  }
 0x323   : > { %6597 = vmatprep.mubr.bf16.mxu1 %v12887_v56  ;;  %7125 = vmatpush1.bf16.msra.mxu0 %v10854_v19 }
 0x324   : > { %7126 = vmatprep.subr.bf16.mxu0 %v10859_v48 }
 0x327   : > { %7127 = vmatpush1.bf16.msra.mxu0 %v10857_v40 }
 0x328   : > { %7128 = vmatprep.subr.bf16.mxu0 %v10862_v29  ;;  %v10869_v29 = vld [vmem:[#allocation4 + $0x110] ss:$8 sps:$4 sm:$0xff]  }
 0x329   : > { %6146 = vmatmul.mubr.bf16.gmra.mrb[92].mxu0 %v12885_v3 }
 0x32a   : > { %6598 = vmatmul.mubr.bf16.gmra.mrb[92].mxu1 %v12885_v3 }
 0x32b   : > { %7129 = vmatpush1.bf16.msra.mxu0 %v10860_v47 }
 0x32c   : > { %7130 = vmatprep.subr.bf16.mxu0 %v10865_v34 }
 0x32f   : > { %7131 = vmatpush1.bf16.msra.mxu0 %v10863_v62 }
 0x330   : > { %7213 = vmatprep.subr.bf16.mxu0 %v10868_v7  ;;  %v10874_v7 = vld [vmem:[#allocation4 + $0x124] ss:$8 sps:$4 sm:$0xff]  }
 0x3c4   : > { %v6077_v28 = vpop.f32.mrb[64].mxu0 }
 0x3c5   : > { %v9815_v53 = vadd.f32 %v6077_v28, %v12925_v41  ;;  %v6529_v36 = vpop.f32.mrb[64].mxu1  ;;  %v6079_v15 = vpop.f32.mrb[65].mxu0 }
 0x3c6   : > { %v9847_v4 = vadd.f32 %v6529_v36, %v12929_v63  ;;  %v9816_v58 = vadd.f32 %v6079_v15, %v12932_v35  ;;  %v6531_v8 = vpop.f32.mrb[65].mxu1  ;;  %v6081_v18 = vpop.f32.mrb[66].mxu0  ;;  %v10921_v15 = vld [vmem:[%s13451_s7 + $0x18] sm:$0xff]  }
 0x3c7   : > { %v9848_v9 = vadd.f32 %v6531_v8, %v12936_v45  ;;  %v9817_v20 = vadd.f32 %v6081_v18, %v12925_v41  ;;  %v6533_v13 = vpop.f32.mrb[66].mxu1  ;;  %v6083_v46 = vpop.f32.mrb[67].mxu0  ;;  %v6608_v56 = vmax.f32 %v9815_v53, 0.0  ;;  %v10922_v18 = vld [vmem:[%s13451_s7 + $0x60] sm:$0xff]   ;;  %9406 = vmatpush3.bf16.msra.mxu1 %v10921_v15 }
 0x3c8   : > { %v9849_v3 = vadd.f32 %v6533_v13, %v12929_v63  ;;  %v9818_v50 = vadd.f32 %v6083_v46, %v12932_v35  ;;  %v6535_v55 = vpop.f32.mrb[67].mxu1  ;;  %v6610_v6 = vmax.f32 %v9847_v4, 0.0  ;;  %v6609_v5 = vmax.f32 %v9816_v58, 0.0  ;;  %v10872_v46 = vld [vmem:[#allocation4 + $0x120] ss:$8 sps:$4 sm:$0xff]   ;;  %9407 = vmatprep.subr.bf16.mxu1 %v10922_v18 }
 0x3c9   : > { %v6612_v31 = vmax.f32 %v9817_v20, 0.0  ;;  %v9850_v17 = vadd.f32 %v6535_v55, %v12936_v45  ;;  %v6611_v16 = vmax.f32 %v9848_v9, 0.0 }
 0x3ca   : > { %v6614_v1 = vmax.f32 %v9849_v3, 0.0  ;;  %v6613_v33 = vmax.f32 %v9818_v50, 0.0  ;;  %v10877_v50 = vld [vmem:[#allocation4 + $0x134] ss:$8 sps:$4 sm:$0xff]  }
 0x3cb   : > { %v6672_v32 = vpack.c.bf16 %v6612_v31, %v6608_v56  ;;  %v6615_v60 = vmax.f32 %v9850_v17, 0.0 }
 0x3cc   : > { %v12961_v52 = vpack.c.bf16 %v6614_v1, %v6610_v6  ;;  %v6673_v12 = vpack.c.bf16 %v6613_v33, %v6609_v5  ;;  %v6087_v49 = vpop.f32.mrb[68].mxu0  ;;  %v10923_v6 = vld [vmem:[%s13451_s7 + $0x20] sm:$0xff]  }
 0x3cd   : > { %v12963_v23 = vpack.c.bf16 %v6615_v60, %v6611_v16  ;;  %v9819_v25 = vadd.f32 %v6087_v49, %v12925_v41  ;;  %v6539_v21 = vpop.f32.mrb[68].mxu1  ;;  %v6089_v38 = vpop.f32.mrb[69].mxu0  ;;  %v10924_v16 = vld [vmem:[%s13451_s7 + $0x68] sm:$0xff]   ;;  %9408 = vmatpush3.bf16.msra.mxu1 %v10923_v6 }
 0x3ce   : > { %v9851_v14 = vadd.f32 %v6539_v21, %v12929_v63  ;;  %v9820_v26 = vadd.f32 %v6089_v38, %v12932_v35  ;;  %v6541_v22 = vpop.f32.mrb[69].mxu1  ;;  %v6091_v11 = vpop.f32.mrb[70].mxu0  ;;  %7132 = vmatprep.mubr.bf16.mxu0 %v6673_v12  ;;  %v10875_v12 = vld [vmem:[#allocation4 + $0x130] ss:$8 sps:$4 sm:$0xff]   ;;  %v10880_v21 = vld [vmem:[#allocation4 + $0x144] ss:$8 sps:$4 sm:$0xff]   ;;  %9409 = vmatprep.subr.bf16.mxu1 %v10924_v16 }
 0x3cf   : > { %v9852_v51 = vadd.f32 %v6541_v22, %v12936_v45  ;;  %v9821_v24 = vadd.f32 %v6091_v11, %v12925_v41  ;;  %v6543_v54 = vpop.f32.mrb[70].mxu1  ;;  %v6093_v42 = vpop.f32.mrb[71].mxu0  ;;  %7133 = vmatmul.mubr.bf16.vlgmr.msra.gmra.mrb[96].mxu0 %v6672_v32  ;;  %v6616_v47 = vmax.f32 %v9819_v25, 0.0  ;;  %v10925_v22 = vld [vmem:[%s13451_s7 + $0x28] sm:$0xff]  }
 0x3d0   : > { %v9853_v19 = vadd.f32 %v6543_v54, %v12929_v63  ;;  %v9822_v48 = vadd.f32 %v6093_v42, %v12932_v35  ;;  %v6545_v40 = vpop.f32.mrb[71].mxu1  ;;  %7214 = vmatpush1.bf16.msra.mxu0 %v10866_v59  ;;  %v6618_v57 = vmax.f32 %v9851_v14, 0.0  ;;  %v6617_v28 = vmax.f32 %v9820_v26, 0.0  ;;  %v10884_v16 = vld [vmem:[#allocation4 + $0x160] ss:$8 sps:$4 sm:$0xff]  }
 0x3d1   : > { %v6620_v34 = vmax.f32 %v9821_v24, 0.0  ;;  %v9854_v62 = vadd.f32 %v6545_v40, %v12936_v45  ;;  %7215 = vmatprep.subr.bf16.mxu0 %v10871_v43  ;;  %v6619_v4 = vmax.f32 %v9852_v51, 0.0  ;;  %v10926_v24 = vld [vmem:[%s13451_s7 + $0x70] sm:$0xff]   ;;  %9410 = vmatpush3.bf16.msra.mxu1 %v10925_v22 }
 0x3d2   : > { %v6622_v53 = vmax.f32 %v9853_v19, 0.0  ;;  %v6621_v36 = vmax.f32 %v9822_v48, 0.0  ;;  %v10878_v19 = vld [vmem:[#allocation4 + $0x140] ss:$8 sps:$4 sm:$0xff]   ;;  %9411 = vmatprep.subr.bf16.mxu1 %v10926_v24  ;;  %v10887_v24 = vld [vmem:[#allocation4 + $0x170] ss:$8 sps:$4 sm:$0xff]  }
 0x3d3   : > { %v6676_v58 = vpack.c.bf16 %v6620_v34, %v6616_v47  ;;  %v6623_v8 = vmax.f32 %v9854_v62, 0.0  ;;  %v10883_v34 = vld [vmem:[#allocation4 + $0x154] ss:$8 sps:$4 sm:$0xff]  }
 0x3d4   : > { %v12985_v9 = vpack.c.bf16 %v6622_v53, %v6618_v57  ;;  %v6677_v20 = vpack.c.bf16 %v6621_v36, %v6617_v28  ;;  %v6097_v13 = vpop.f32.mrb[72].mxu0  ;;  %7216 = vmatpush1.bf16.msra.mxu0 %v10869_v29  ;;  %v10927_v53 = vld [vmem:[%s13451_s7 + $0x30] sm:$0xff]  }
 0x3d5   : > { %v12987_v61 = vpack.c.bf16 %v6623_v8, %v6619_v4  ;;  %v9823_v37 = vadd.f32 %v6097_v13, %v12925_v41  ;;  %v6549_v2 = vpop.f32.mrb[72].mxu1  ;;  %v6099_v3 = vpop.f32.mrb[73].mxu0  ;;  %7217 = vmatprep.subr.bf16.mxu0 %v10874_v7  ;;  %v10881_v13 = vld [vmem:[#allocation4 + $0x150] ss:$8 sps:$4 sm:$0xff]   ;;  %9412 = vmatpush3.bf16.msra.mxu1 %v10927_v53 }
 0x3d6   : > { %v9855_v55 = vadd.f32 %v6549_v2, %v12929_v63  ;;  %v9824_v56 = vadd.f32 %v6099_v3, %v12932_v35  ;;  %v6551_v31 = vpop.f32.mrb[73].mxu1  ;;  %v6101_v17 = vpop.f32.mrb[74].mxu0  ;;  %7142 = vmatprep.mubr.bf16.mxu0 %v6677_v20  ;;  %v10886_v3 = vld [vmem:[#allocation4 + $0x164] ss:$8 sps:$4 sm:$0xff]  }
 0x3d7   : > { %v9856_v5 = vadd.f32 %v6551_v31, %v12936_v45  ;;  %v9825_v1 = vadd.f32 %v6101_v17, %v12925_v41  ;;  %v6553_v33 = vpop.f32.mrb[74].mxu1  ;;  %v6103_v39 = vpop.f32.mrb[75].mxu0  ;;  %7143 = vmatmul.mubr.bf16.gmra.mrb[100].mxu0 %v6676_v58  ;;  %v6624_v49 = vmax.f32 %v9823_v37, 0.0 }
 0x3d8   : > { %v9857_v32 = vadd.f32 %v6553_v33, %v12929_v63  ;;  %v9826_v60 = vadd.f32 %v6103_v39, %v12932_v35  ;;  %v6555_v27 = vpop.f32.mrb[75].mxu1  ;;  %7218 = vmatpush1.bf16.msra.mxu0 %v10872_v46  ;;  %v6626_v38 = vmax.f32 %v9855_v55, 0.0  ;;  %v6625_v43 = vmax.f32 %v9824_v56, 0.0 }
 0x3d9   : > { %v6628_v59 = vmax.f32 %v9825_v1, 0.0  ;;  %v9858_v25 = vadd.f32 %v6555_v27, %v12936_v45  ;;  %7219 = vmatprep.subr.bf16.mxu0 %v10877_v50  ;;  %v6627_v11 = vmax.f32 %v9856_v5, 0.0 }
 0x3da   : > { %v6630_v14 = vmax.f32 %v9857_v32, 0.0  ;;  %v6629_v26 = vmax.f32 %v9826_v60, 0.0 }
 0x3db   : > { %v6680_v30 = vpack.c.bf16 %v6628_v59, %v6624_v49  ;;  %v6631_v51 = vmax.f32 %v9858_v25, 0.0  ;;  %v10889_v49 = vld [vmem:[#allocation4 + $0x174] ss:$8 sps:$4 sm:$0xff]  }
 0x3dc   : > { %v13009_v54 = vpack.c.bf16 %v6630_v14, %v6626_v38  ;;  %v6681_v42 = vpack.c.bf16 %v6629_v26, %v6625_v43  ;;  %v6107_v44 = vpop.f32.mrb[76].mxu0  ;;  %7220 = vmatpush1.bf16.msra.mxu0 %v10875_v12 }
 0x3dd   : > { %v13011_v48 = vpack.c.bf16 %v6631_v51, %v6627_v11  ;;  %v9827_v40 = vadd.f32 %v6107_v44, %v12925_v41  ;;  %v6559_v29 = vpop.f32.mrb[76].mxu1  ;;  %v6109_v47 = vpop.f32.mrb[77].mxu0  ;;  %7221 = vmatprep.subr.bf16.mxu0 %v10880_v21 }
 0x3de   : > { %v9859_v62 = vadd.f32 %v6559_v29, %v12929_v63  ;;  %v9828_v7 = vadd.f32 %v6109_v47, %v12932_v35  ;;  %v6561_v57 = vpop.f32.mrb[77].mxu1  ;;  %v6111_v28 = vpop.f32.mrb[78].mxu0  ;;  %7152 = vmatprep.mubr.bf16.mxu0 %v6681_v42 }
 0x3df   : > { %v9860_v36 = vadd.f32 %v6561_v57, %v12936_v45  ;;  %v9829_v15 = vadd.f32 %v6111_v28, %v12925_v41  ;;  %v6563_v4 = vpop.f32.mrb[78].mxu1  ;;  %v6113_v58 = vpop.f32.mrb[79].mxu0  ;;  %7153 = vmatmul.mubr.bf16.gmra.mrb[104].mxu0 %v6680_v30  ;;  %v6632_v46 = vmax.f32 %v9827_v40, 0.0  ;;  %v10892_v40 = vld [vmem:[#allocation4 + $0x184] ss:$8 sps:$4 sm:$0xff]  }
 0x3e0   : > { %v9861_v8 = vadd.f32 %v6563_v4, %v12929_v63  ;;  %v9830_v18 = vadd.f32 %v6113_v58, %v12932_v35  ;;  %v6565_v20 = vpop.f32.mrb[79].mxu1  ;;  %7222 = vmatpush1.bf16.msra.mxu0 %v10878_v19  ;;  %v6634_v50 = vmax.f32 %v9859_v62, 0.0  ;;  %v6633_v55 = vmax.f32 %v9828_v7, 0.0  ;;  %v10890_v4 = vld [vmem:[#allocation4 + $0x180] ss:$8 sps:$4 sm:$0xff]  }
 0x3e1   : > { %v6636_v37 = vmax.f32 %v9829_v15, 0.0  ;;  %v9862_v2 = vadd.f32 %v6565_v20, %v12936_v45  ;;  %7223 = vmatprep.subr.bf16.mxu0 %v10883_v34  ;;  %v6635_v17 = vmax.f32 %v9860_v36, 0.0 }
 0x3e2   : > { %v6638_v56 = vmax.f32 %v9861_v8, 0.0  ;;  %v6637_v31 = vmax.f32 %v9830_v18, 0.0 }
 0x3e3   : > { %v6684_v6 = vpack.c.bf16 %v6636_v37, %v6632_v46  ;;  %v6639_v5 = vmax.f32 %v9862_v2, 0.0 }
 0x3e4   : > { %v13024_v1 = vpack.c.bf16 %v6638_v56, %v6634_v50  ;;  %v6685_v33 = vpack.c.bf16 %v6637_v31, %v6633_v55  ;;  %v6117_v39 = vpop.f32.mrb[80].mxu0  ;;  %7224 = vmatpush1.bf16.msra.mxu0 %v10881_v13  ;;  %v10895_v13 = vld [vmem:[#allocation4 + $0x194] ss:$8 sps:$4 sm:$0xff]  }
 0x3e5   : > { %v13026_v32 = vpack.c.bf16 %v6639_v5, %v6635_v17  ;;  %v9831_v60 = vadd.f32 %v6117_v39, %v12925_v41  ;;  %v6569_v27 = vpop.f32.mrb[80].mxu1  ;;  %v6119_v12 = vpop.f32.mrb[81].mxu0  ;;  %7225 = vmatprep.subr.bf16.mxu0 %v10886_v3 }
 0x3e6   : > { %v9863_v59 = vadd.f32 %v6569_v27, %v12929_v63  ;;  %v9832_v25 = vadd.f32 %v6119_v12, %v12932_v35  ;;  %v6571_v21 = vpop.f32.mrb[81].mxu1  ;;  %v6121_v38 = vpop.f32.mrb[82].mxu0  ;;  %7162 = vmatprep.mubr.bf16.mxu0 %v6685_v33  ;;  %v10893_v33 = vld [vmem:[#allocation4 + $0x190] ss:$8 sps:$4 sm:$0xff]   ;;  %v10898_v27 = vld [vmem:[#allocation4 + $0x1a4] ss:$8 sps:$4 sm:$0xff]  }
 0x3e7   : > { %v9864_v43 = vadd.f32 %v6571_v21, %v12936_v45  ;;  %v9833_v14 = vadd.f32 %v6121_v38, %v12925_v41  ;;  %v6573_v26 = vpop.f32.mrb[82].mxu1  ;;  %v6123_v22 = vpop.f32.mrb[83].mxu0  ;;  %7163 = vmatmul.mubr.bf16.gmra.mrb[108].mxu0 %v6684_v6  ;;  %v6640_v42 = vmax.f32 %v9831_v60, 0.0 }
 0x3e8   : > { %v9865_v11 = vadd.f32 %v6573_v26, %v12929_v63  ;;  %v9834_v30 = vadd.f32 %v6123_v22, %v12932_v35  ;;  %v6575_v51 = vpop.f32.mrb[83].mxu1  ;;  %7226 = vmatpush1.bf16.msra.mxu0 %v10884_v16  ;;  %v6642_v29 = vmax.f32 %v9863_v59, 0.0  ;;  %v6641_v47 = vmax.f32 %v9832_v25, 0.0 }
 0x3e9   : > { %v6644_v44 = vmax.f32 %v9833_v14, 0.0  ;;  %v9866_v19 = vadd.f32 %v6575_v51, %v12936_v45  ;;  %7227 = vmatprep.subr.bf16.mxu0 %v10889_v49  ;;  %v6643_v7 = vmax.f32 %v9864_v43, 0.0 }
 0x3ea   : > { %v6646_v34 = vmax.f32 %v9865_v11, 0.0  ;;  %v6645_v62 = vmax.f32 %v9834_v30, 0.0  ;;  %v10896_v11 = vld [vmem:[#allocation4 + $0x1a0] ss:$8 sps:$4 sm:$0xff]  }
 0x3eb   : > { %v6688_v57 = vpack.c.bf16 %v6644_v44, %v6640_v42  ;;  %v6647_v28 = vmax.f32 %v9866_v19, 0.0  ;;  %v10901_v44 = vld [vmem:[#allocation4 + $0x1b4] ss:$8 sps:$4 sm:$0xff]  }
 0x3ec   : > { %v13036_v53 = vpack.c.bf16 %v6646_v34, %v6642_v29  ;;  %v6689_v36 = vpack.c.bf16 %v6645_v62, %v6641_v47  ;;  %v6127_v15 = vpop.f32.mrb[84].mxu0  ;;  %7228 = vmatpush1.bf16.msra.mxu0 %v10887_v24 }
 0x3ed   : > { %v13038_v58 = vpack.c.bf16 %v6647_v28, %v6643_v7  ;;  %v9835_v8 = vadd.f32 %v6127_v15, %v12925_v41  ;;  %v6579_v18 = vpop.f32.mrb[84].mxu1  ;;  %v6129_v20 = vpop.f32.mrb[85].mxu0  ;;  %7229 = vmatprep.subr.bf16.mxu0 %v10892_v40 }
 0x3ee   : > { %v9867_v46 = vadd.f32 %v6579_v18, %v12929_v63  ;;  %v9836_v37 = vadd.f32 %v6129_v20, %v12932_v35  ;;  %v6581_v2 = vpop.f32.mrb[85].mxu1  ;;  %v6131_v3 = vpop.f32.mrb[86].mxu0  ;;  %7172 = vmatprep.mubr.bf16.mxu0 %v6689_v36 }
 0x3ef   : > { %v9868_v50 = vadd.f32 %v6581_v2, %v12936_v45  ;;  %v9837_v55 = vadd.f32 %v6131_v3, %v12925_v41  ;;  %v6583_v56 = vpop.f32.mrb[86].mxu1  ;;  %v6133_v31 = vpop.f32.mrb[87].mxu0  ;;  %7173 = vmatmul.mubr.bf16.gmra.mrb[112].mxu0 %v6688_v57  ;;  %v6648_v39 = vmax.f32 %v9835_v8, 0.0 }
 0x3f0   : > { %v9869_v17 = vadd.f32 %v6583_v56, %v12929_v63  ;;  %v9838_v6 = vadd.f32 %v6133_v31, %v12932_v35  ;;  %v6585_v5 = vpop.f32.mrb[87].mxu1  ;;  %7230 = vmatpush1.bf16.msra.mxu0 %v10890_v4  ;;  %v6650_v12 = vmax.f32 %v9867_v46, 0.0  ;;  %v6649_v49 = vmax.f32 %v9836_v37, 0.0  ;;  %v10899_v4 = vld [vmem:[#allocation4 + $0x1b0] ss:$8 sps:$4 sm:$0xff]  }
 0x3f1   : > { %v6652_v16 = vmax.f32 %v9837_v55, 0.0  ;;  %v9870_v60 = vadd.f32 %v6585_v5, %v12936_v45  ;;  %7231 = vmatprep.subr.bf16.mxu0 %v10895_v13  ;;  %v6651_v21 = vmax.f32 %v9868_v50, 0.0  ;;  %v10904_v13 = vld [vmem:[#allocation4 + $0x1c4] ss:$8 sps:$4 sm:$0xff]   ;;  %v10902_v5 = vld [vmem:[#allocation4 + $0x1c0] ss:$8 sps:$4 sm:$0xff]  }
 0x3f2   : > { %v6654_v59 = vmax.f32 %v9869_v17, 0.0  ;;  %v6653_v25 = vmax.f32 %v9838_v6, 0.0 }
 0x3f3   : > { %v6692_v38 = vpack.c.bf16 %v6652_v16, %v6648_v39  ;;  %v6655_v43 = vmax.f32 %v9870_v60, 0.0 }
 0x3f4   : > { %v13048_v14 = vpack.c.bf16 %v6654_v59, %v6650_v12  ;;  %v6693_v26 = vpack.c.bf16 %v6653_v25, %v6649_v49  ;;  %v6137_v22 = vpop.f32.mrb[88].mxu0  ;;  %7232 = vmatpush1.bf16.msra.mxu0 %v10893_v33 }
 0x3f5   : > { %v13050_v30 = vpack.c.bf16 %v6655_v43, %v6651_v21  ;;  %v9839_v51 = vadd.f32 %v6137_v22, %v12925_v41  ;;  %v6589_v24 = vpop.f32.mrb[88].mxu1  ;;  %v6139_v42 = vpop.f32.mrb[89].mxu0  ;;  %7233 = vmatprep.subr.bf16.mxu0 %v10898_v27  ;;  %v10907_v27 = vld [vmem:[#allocation4 + $0x1d4] ss:$8 sps:$4 sm:$0xff]  }
 0x3f6   : > { %v9871_v19 = vadd.f32 %v6589_v24, %v12929_v63  ;;  %v9840_v40 = vadd.f32 %v6139_v42, %v12932_v35  ;;  %v6591_v29 = vpop.f32.mrb[89].mxu1  ;;  %v6141_v47 = vpop.f32.mrb[90].mxu0  ;;  %7182 = vmatprep.mubr.bf16.mxu0 %v6693_v26  ;;  %v10905_v24 = vld [vmem:[#allocation4 + $0x1d0] ss:$8 sps:$4 sm:$0xff]  }
 0x3f7   : > { %v9872_v34 = vadd.f32 %v6591_v29, %v12936_v45  ;;  %v9841_v62 = vadd.f32 %v6141_v47, %v12925_v41  ;;  %v6593_v7 = vpop.f32.mrb[90].mxu1  ;;  %v6143_v57 = vpop.f32.mrb[91].mxu0  ;;  %7183 = vmatmul.mubr.bf16.gmra.mrb[116].mxu0 %v6692_v38  ;;  %v6656_v8 = vmax.f32 %v9839_v51, 0.0 }
 0x3f8   : > { %v9873_v28 = vadd.f32 %v6593_v7, %v12929_v63  ;;  %v9842_v36 = vadd.f32 %v6143_v57, %v12932_v35  ;;  %v6595_v15 = vpop.f32.mrb[91].mxu1  ;;  %7234 = vmatpush1.bf16.msra.mxu0 %v10896_v11  ;;  %v6658_v46 = vmax.f32 %v9871_v19, 0.0  ;;  %v6657_v37 = vmax.f32 %v9840_v40, 0.0  ;;  %v10910_v40 = vld [vmem:[#allocation4 + $0x1e4] ss:$8 sps:$4 sm:$0xff]  }
 0x3f9   : > { %v6660_v18 = vmax.f32 %v9841_v62, 0.0  ;;  %v9874_v20 = vadd.f32 %v6595_v15, %v12936_v45  ;;  %7235 = vmatprep.subr.bf16.mxu0 %v10901_v44  ;;  %v6659_v50 = vmax.f32 %v9872_v34, 0.0  ;;  %v10913_v15 = vld [vmem:[#allocation4 + $0x1f4] ss:$8 sps:$4 sm:$0xff]  }
 0x3fa   : > { %v6662_v2 = vmax.f32 %v9873_v28, 0.0  ;;  %v6661_v3 = vmax.f32 %v9842_v36, 0.0 }
 0x3fb   : > { %v6696_v55 = vpack.c.bf16 %v6660_v18, %v6656_v8  ;;  %v6663_v56 = vmax.f32 %v9874_v20, 0.0 }
 0x3fc   : > { %v13060_v31 = vpack.c.bf16 %v6662_v2, %v6658_v46  ;;  %v6697_v17 = vpack.c.bf16 %v6661_v3, %v6657_v37  ;;  %v6147_v6 = vpop.f32.mrb[92].mxu0  ;;  %7236 = vmatpush1.bf16.msra.mxu0 %v10899_v4 }
 0x3fd   : > { %v6699_v33 = vpack.c.bf16 %v6663_v56, %v6659_v50  ;;  %v9843_v39 = vadd.f32 %v6147_v6, %v12925_v41  ;;  %v6599_v16 = vpop.f32.mrb[92].mxu1  ;;  %v6149_v60 = vpop.f32.mrb[93].mxu0  ;;  %7237 = vmatprep.subr.bf16.mxu0 %v10904_v13  ;;  %v10931_v50 = vld [vmem:[%s13453_s9 + $0x8] sm:$0xff]  }
 0x3fe   : > { %v9875_v12 = vadd.f32 %v6599_v16, %v12929_v63  ;;  %v9844_v49 = vadd.f32 %v6149_v60, %v12932_v35  ;;  %v6601_v59 = vpop.f32.mrb[93].mxu1  ;;  %v6151_v25 = vpop.f32.mrb[94].mxu0  ;;  %7192 = vmatprep.mubr.bf16.mxu0 %v6697_v17 }
 0x3ff   : > { %v9876_v21 = vadd.f32 %v6601_v59, %v12936_v45  ;;  %v9845_v38 = vadd.f32 %v6151_v25, %v12925_v41  ;;  %v6603_v43 = vpop.f32.mrb[94].mxu1  ;;  %v6153_v26 = vpop.f32.mrb[95].mxu0  ;;  %7193 = vmatmul.mubr.bf16.gmra.mrb[120].mxu0 %v6696_v55  ;;  %v6664_v42 = vmax.f32 %v9843_v39, 0.0  ;;  %v10932_v39 = vld [vmem:[%s13453_s9 + $0x10] sm:$0xff]  }
 0x400   : > { %v9877_v22 = vadd.f32 %v6603_v43, %v12929_v63  ;;  %v9846_v11 = vadd.f32 %v6153_v26, %v12932_v35  ;;  %v6605_v51 = vpop.f32.mrb[95].mxu1  ;;  %7238 = vmatpush1.bf16.msra.mxu0 %v10902_v5  ;;  %v6666_v29 = vmax.f32 %v9875_v12, 0.0  ;;  %v6665_v47 = vmax.f32 %v9844_v49, 0.0  ;;  %v10908_v35 = vld [vmem:[#allocation4 + $0x1e0] ss:$8 sps:$4 sm:$0xff]  }
 0x401   : > { %v6668_v44 = vmax.f32 %v9845_v38, 0.0  ;;  %v9878_v19 = vadd.f32 %v6605_v51, %v12936_v45  ;;  %7239 = vmatprep.subr.bf16.mxu0 %v10907_v27  ;;  %v6667_v62 = vmax.f32 %v9876_v21, 0.0  ;;  %v10911_v45 = vld [vmem:[#allocation4 + $0x1f0] ss:$8 sps:$4 sm:$0xff]  }
 0x402   : > { %v6670_v34 = vmax.f32 %v9877_v22, 0.0  ;;  %v6669_v41 = vmax.f32 %v9846_v11, 0.0 }
 0x403   : > { %v6700_v7 = vpack.c.bf16 %v6668_v44, %v6664_v42  ;;  %v6671_v57 = vmax.f32 %v9878_v19, 0.0 }
 0x404   : > { %v6702_v28 = vpack.c.bf16 %v6670_v34, %v6666_v29  ;;  %v6701_v63 = vpack.c.bf16 %v6669_v41, %v6665_v47  ;;  %7240 = vmatpush1.bf16.msra.mxu0 %v10905_v24 }
 0x405   : > { %v6703_v36 = vpack.c.bf16 %v6671_v57, %v6667_v62  ;;  %7241 = vmatprep.subr.bf16.mxu0 %v10910_v40 }
 0x406   : > { %7202 = vmatprep.mubr.bf16.mxu0 %v6701_v63 }
 0x407   : > { %7203 = vmatmul.mubr.bf16.gmra.mrb[124].mxu0 %v6700_v7 }
 0x408   : > { %7242 = vmatpush1.bf16.msra.mxu0 %v10908_v35  ;;  %7245 = vmatprep.mubr.bf16.mxu0 %v12963_v23  ;;  %v10929_v23 = vld [vmem:[%s13451_s7 + $0x38] sm:$0xff]  }
 0x409   : > { %7243 = vmatprep.subr.bf16.mxu0 %v10913_v15 }
 0x40c   : > { %7244 = vmatpush1.bf16.msra.mxu0 %v10911_v45 }
 0x40f   : > { %7246 = vmatmul.mubr.bf16.vlgmr.msra.gmra.mrb[96].mxu0 %v12961_v52  ;;  %v10928_v52 = vld [vmem:[%s13451_s7 + $0x78] sm:$0xff]  }
 0x410   : > { %7255 = vmatprep.mubr.bf16.mxu0 %v12987_v61  ;;  %9413 = vmatprep.subr.bf16.mxu1 %v10928_v52  ;;  %v6768_v61 = vld [vmem:[%s13450_s6] sm:$0x3] }
 0x411   : > { %9414 = vmatpush3.bf16.msra.mxu1 %v10929_v23 }
 0x417   : > { %7256 = vmatmul.mubr.bf16.gmra.mrb[100].mxu0 %v12985_v9  ;;  %v10930_v9 = vld [vmem:[%s13453_s9] sm:$0xff]  }
 0x418   : > { %7265 = vmatprep.mubr.bf16.mxu0 %v13011_v48  ;;  %9535 = vmatprep.subr.bf16.mxu1 %v10930_v9  ;;  %v13099_v48 = vrot.slane %v6768_v61, %v12535_v10 }
 0x41f   : > { %7266 = vmatmul.mubr.bf16.gmra.mrb[104].mxu0 %v13009_v54  ;;  %v13096_v54 = vrot.slane %v6768_v61, %v12528_v0 }
 0x420   : > { %7275 = vmatprep.mubr.bf16.mxu0 %v13026_v32 }
 0x427   : > { %7276 = vmatmul.mubr.bf16.gmra.mrb[108].mxu0 %v13024_v1 }
 0x428   : > { %7285 = vmatprep.mubr.bf16.mxu0 %v13038_v58 }
 0x42f   : > { %7286 = vmatmul.mubr.bf16.gmra.mrb[112].mxu0 %v13036_v53 }
 0x430   : > { %7295 = vmatprep.mubr.bf16.mxu0 %v13050_v30 }
 0x437   : > { %7296 = vmatmul.mubr.bf16.gmra.mrb[116].mxu0 %v13048_v14 }
 0x438   : > { %7305 = vmatprep.mubr.bf16.mxu0 %v6699_v33 }
 0x43f   : > { %7306 = vmatmul.mubr.bf16.gmra.mrb[120].mxu0 %v13060_v31 }
 0x440   : > { %7315 = vmatprep.mubr.bf16.mxu0 %v6703_v36 }
 0x447   : > { %7316 = vmatmul.mubr.bf16.gmra.mrb[124].mxu0 %v6702_v28 }
 0x4e2   : > { %v7247_v1 = vpop.f32.mrb[96].mxu0 }
 0x4e3   : > { %v9879_v32 = vadd.f32 %v7247_v1, %v13096_v54  ;;  %v7249_v53 = vpop.f32.mrb[97].mxu0 }
 0x4e4   : > { %v9880_v58 = vadd.f32 %v7249_v53, %v13099_v48  ;;  %v7251_v14 = vpop.f32.mrb[98].mxu0 }
 0x4e5   : > { %v9881_v30 = vadd.f32 %v7251_v14, %v13096_v54  ;;  %v7253_v4 = vpop.f32.mrb[99].mxu0  ;;  %v7326_v18 = vmax.f32 %v9879_v32, 0.0 }
 0x4e6   : > { %v9882_v8 = vadd.f32 %v7253_v4, %v13099_v48  ;;  %v7327_v13 = vmax.f32 %v9880_v58, 0.0 }
 0x4e7   : > { %v7328_v20 = vmax.f32 %v9881_v30, 0.0 }
 0x4e8   : > { %v7329_v0 = vmax.f32 %v9882_v8, 0.0 }
 0x4e9   : > { %v7358_v46 = vpack.c.bf16 %v7328_v20, %v7326_v18 }
 0x4ea   : > { %v7359_v37 = vpack.c.bf16 %v7329_v0, %v7327_v13  ;;  %v7257_v10 = vpop.f32.mrb[100].mxu0 }
 0x4eb   : > { %v9883_v2 = vadd.f32 %v7257_v10, %v13096_v54  ;;  %v7259_v3 = vpop.f32.mrb[101].mxu0 }
 0x4ec   : > { %v9884_v55 = vadd.f32 %v7259_v3, %v13099_v48  ;;  %v7261_v56 = vpop.f32.mrb[102].mxu0  ;;  %7541 = vmatprep.mubr.bf16.mxu1 %v7359_v37 }
 0x4ed   : > { %v9885_v31 = vadd.f32 %v7261_v56, %v13096_v54  ;;  %v7263_v17 = vpop.f32.mrb[103].mxu0  ;;  %7542 = vmatmul.mubr.bf16.vlgmr.msra.gmra.mrb[96].mxu1 %v7358_v46  ;;  %v7330_v5 = vmax.f32 %v9883_v2, 0.0 }
 0x4ee   : > { %v9886_v6 = vadd.f32 %v7263_v17, %v13099_v48  ;;  %9536 = vmatpush3.bf16.msra.mxu1 %v10930_v9  ;;  %v7331_v16 = vmax.f32 %v9884_v55, 0.0 }
 0x4ef   : > { %v7332_v33 = vmax.f32 %v9885_v31, 0.0  ;;  %9537 = vmatprep.subr.bf16.mxu1 %v10931_v50 }
 0x4f0   : > { %v7333_v60 = vmax.f32 %v9886_v6, 0.0 }
 0x4f1   : > { %v7360_v27 = vpack.c.bf16 %v7332_v33, %v7330_v5 }
 0x4f2   : > { %v7361_v12 = vpack.c.bf16 %v7333_v60, %v7331_v16  ;;  %v7267_v49 = vpop.f32.mrb[104].mxu0  ;;  %9538 = vmatpush3.bf16.msra.mxu1 %v10931_v50 }
 0x4f3   : > { %v9887_v59 = vadd.f32 %v7267_v49, %v13096_v54  ;;  %v7269_v25 = vpop.f32.mrb[105].mxu0  ;;  %9539 = vmatprep.subr.bf16.mxu1 %v10932_v39 }
 0x4f4   : > { %v9888_v21 = vadd.f32 %v7269_v25, %v13099_v48  ;;  %v7271_v38 = vpop.f32.mrb[106].mxu0  ;;  %7549 = vmatprep.mubr.bf16.mxu1 %v7361_v12 }
 0x4f5   : > { %v9889_v43 = vadd.f32 %v7271_v38, %v13096_v54  ;;  %v7273_v26 = vpop.f32.mrb[107].mxu0  ;;  %7550 = vmatmul.mubr.bf16.gmra.mrb[100].mxu1 %v7360_v27  ;;  %v7334_v11 = vmax.f32 %v9887_v59, 0.0 }
 0x4f6   : > { %v9890_v22 = vadd.f32 %v7273_v26, %v13099_v48  ;;  %9540 = vmatpush3.bf16.msra.mxu1 %v10932_v39  ;;  %v7335_v24 = vmax.f32 %v9888_v21, 0.0 }
 0x4f7   : > { %v7336_v51 = vmax.f32 %v9889_v43, 0.0 }
 0x4f8   : > { %v7337_v42 = vmax.f32 %v9890_v22, 0.0 }
 0x4f9   : > { %v7362_v44 = vpack.c.bf16 %v7336_v51, %v7334_v11 }
 0x4fa   : > { %v7363_v19 = vpack.c.bf16 %v7337_v42, %v7335_v24  ;;  %v7277_v40 = vpop.f32.mrb[108].mxu0 }
 0x4fb   : > { %v9891_v29 = vadd.f32 %v7277_v40, %v13096_v54  ;;  %v7279_v47 = vpop.f32.mrb[109].mxu0 }
 0x4fc   : > { %v9892_v34 = vadd.f32 %v7279_v47, %v13099_v48  ;;  %v7281_v41 = vpop.f32.mrb[110].mxu0  ;;  %7557 = vmatprep.mubr.bf16.mxu1 %v7363_v19 }
 0x4fd   : > { %v9893_v62 = vadd.f32 %v7281_v41, %v13096_v54  ;;  %v7283_v7 = vpop.f32.mrb[111].mxu0  ;;  %7558 = vmatmul.mubr.bf16.gmra.mrb[104].mxu1 %v7362_v44  ;;  %v7338_v28 = vmax.f32 %v9891_v29, 0.0 }
 0x4fe   : > { %v9894_v57 = vadd.f32 %v7283_v7, %v13099_v48  ;;  %v7339_v35 = vmax.f32 %v9892_v34, 0.0 }
 0x4ff   : > { %v7340_v63 = vmax.f32 %v9893_v62, 0.0 }
 0x500   : > { %v7341_v36 = vmax.f32 %v9894_v57, 0.0 }
 0x501   : > { %v7364_v15 = vpack.c.bf16 %v7340_v63, %v7338_v28  ;;  %v10933_v28 = vld [vmem:[%s13453_s9 + $0x18] sm:$0xff]   ;;  %v10936_v63 = vld [vmem:[%s13453_s9 + $0x30] sm:$0xff]  }
 0x502   : > { %v7365_v45 = vpack.c.bf16 %v7341_v36, %v7339_v35  ;;  %v7287_v52 = vpop.f32.mrb[112].mxu0  ;;  %9541 = vmatprep.subr.bf16.mxu1 %v10933_v28  ;;  %v10937_v35 = vld [vmem:[%s13453_s9 + $0x38] sm:$0xff]  }
 0x503   : > { %v9895_v23 = vadd.f32 %v7287_v52, %v13096_v54  ;;  %v7289_v9 = vpop.f32.mrb[113].mxu0  ;;  %9542 = vmatpush3.bf16.msra.mxu1 %v10933_v28 }
 0x504   : > { %v9896_v61 = vadd.f32 %v7289_v9, %v13099_v48  ;;  %v7291_v1 = vpop.f32.mrb[114].mxu0  ;;  %7565 = vmatprep.mubr.bf16.mxu1 %v7365_v45 }
 0x505   : > { %v9897_v32 = vadd.f32 %v7291_v1, %v13096_v54  ;;  %v7293_v53 = vpop.f32.mrb[115].mxu0  ;;  %7566 = vmatmul.mubr.bf16.gmra.mrb[108].mxu1 %v7364_v15  ;;  %v7342_v14 = vmax.f32 %v9895_v23, 0.0  ;;  %v13157_v15 = vld [vmem:[%s13452_s8] ss:$0 sm:$0xff] }
 0x506   : > { %v9898_v58 = vadd.f32 %v7293_v53, %v13099_v48  ;;  %v7343_v4 = vmax.f32 %v9896_v61, 0.0 }
 0x507   : > { %v7344_v30 = vmax.f32 %v9897_v32, 0.0 }
 0x508   : > { %v7345_v8 = vmax.f32 %v9898_v58, 0.0 }
 0x509   : > { %v7366_v18 = vpack.c.bf16 %v7344_v30, %v7342_v14 }
 0x50a   : > { %v7367_v20 = vpack.c.bf16 %v7345_v8, %v7343_v4  ;;  %v7297_v13 = vpop.f32.mrb[116].mxu0 }
 0x50b   : > { %v9899_v0 = vadd.f32 %v7297_v13, %v13096_v54  ;;  %v7299_v46 = vpop.f32.mrb[117].mxu0 }
 0x50c   : > { %v9900_v37 = vadd.f32 %v7299_v46, %v13099_v48  ;;  %v7301_v10 = vpop.f32.mrb[118].mxu0  ;;  %7573 = vmatprep.mubr.bf16.mxu1 %v7367_v20 }
 0x50d   : > { %v9901_v2 = vadd.f32 %v7301_v10, %v13096_v54  ;;  %v7303_v3 = vpop.f32.mrb[119].mxu0  ;;  %7574 = vmatmul.mubr.bf16.gmra.mrb[112].mxu1 %v7366_v18  ;;  %v7346_v55 = vmax.f32 %v9899_v0, 0.0 }
 0x50e   : > { %v9902_v50 = vadd.f32 %v7303_v3, %v13099_v48  ;;  %v7347_v31 = vmax.f32 %v9900_v37, 0.0 }
 0x50f   : > { %v7348_v56 = vmax.f32 %v9901_v2, 0.0 }
 0x510   : > { %v7349_v17 = vmax.f32 %v9902_v50, 0.0 }
 0x511   : > { %v7368_v6 = vpack.c.bf16 %v7348_v56, %v7346_v55 }
 0x512   : > { %v7369_v5 = vpack.c.bf16 %v7349_v17, %v7347_v31  ;;  %v7307_v33 = vpop.f32.mrb[120].mxu0 }
 0x513   : > { %v9903_v39 = vadd.f32 %v7307_v33, %v13096_v54  ;;  %v7309_v16 = vpop.f32.mrb[121].mxu0 }
 0x514   : > { %v9904_v60 = vadd.f32 %v7309_v16, %v13099_v48  ;;  %v7311_v27 = vpop.f32.mrb[122].mxu0  ;;  %7581 = vmatprep.mubr.bf16.mxu1 %v7369_v5 }
 0x515   : > { %v9905_v12 = vadd.f32 %v7311_v27, %v13096_v54  ;;  %v7313_v49 = vpop.f32.mrb[123].mxu0  ;;  %7582 = vmatmul.mubr.bf16.gmra.mrb[116].mxu1 %v7368_v6  ;;  %v7350_v25 = vmax.f32 %v9903_v39, 0.0 }
 0x516   : > { %v9906_v59 = vadd.f32 %v7313_v49, %v13099_v48  ;;  %v7351_v38 = vmax.f32 %v9904_v60, 0.0 }
 0x517   : > { %v7352_v21 = vmax.f32 %v9905_v12, 0.0 }
 0x518   : > { %v7353_v43 = vmax.f32 %v9906_v59, 0.0 }
 0x519   : > { %v7370_v26 = vpack.c.bf16 %v7352_v21, %v7350_v25 }
 0x51a   : > { %v7371_v22 = vpack.c.bf16 %v7353_v43, %v7351_v38  ;;  %v7317_v11 = vpop.f32.mrb[124].mxu0 }
 0x51b   : > { %v9907_v51 = vadd.f32 %v7317_v11, %v13096_v54  ;;  %v7319_v24 = vpop.f32.mrb[125].mxu0 }
 0x51c   : > { %v9908_v42 = vadd.f32 %v7319_v24, %v13099_v48  ;;  %v7321_v44 = vpop.f32.mrb[126].mxu0  ;;  %7589 = vmatprep.mubr.bf16.mxu1 %v7371_v22 }
 0x51d   : > { %v9909_v19 = vadd.f32 %v7321_v44, %v13096_v54  ;;  %v7323_v40 = vpop.f32.mrb[127].mxu0  ;;  %7590 = vmatmul.mubr.bf16.gmra.mrb[120].mxu1 %v7370_v26  ;;  %v7354_v47 = vmax.f32 %v9907_v51, 0.0  ;;  %v10934_v54 = vld [vmem:[%s13453_s9 + $0x20] sm:$0xff]  }
 0x51e   : > { %v9910_v29 = vadd.f32 %v7323_v40, %v13099_v48  ;;  %v7355_v41 = vmax.f32 %v9908_v42, 0.0  ;;  %9543 = vmatprep.subr.bf16.mxu1 %v10934_v54  ;;  %v10935_v48 = vld [vmem:[%s13453_s9 + $0x28] sm:$0xff]  }
 0x51f   : > { %v7356_v34 = vmax.f32 %v9909_v19, 0.0  ;;  %9544 = vmatpush3.bf16.msra.mxu1 %v10934_v54 }
 0x520   : > { %v7357_v62 = vmax.f32 %v9910_v29, 0.0  ;;  %9545 = vmatprep.subr.bf16.mxu1 %v10935_v48 }
 0x521   : > { %v7372_v7 = vpack.c.bf16 %v7356_v34, %v7354_v47 }
 0x522   : > { %v7373_v57 = vpack.c.bf16 %v7357_v62, %v7355_v41 }
 0x523   : > { %9546 = vmatpush3.bf16.msra.mxu1 %v10935_v48 }
 0x524   : > { %7597 = vmatprep.mubr.bf16.mxu1 %v7373_v57  ;;  %9547 = vmatprep.subr.bf16.mxu1 %v10936_v63 }
 0x525   : > { %7598 = vmatmul.mubr.bf16.gmra.mrb[124].mxu1 %v7372_v7 }
 0x527   : > { %9548 = vmatpush3.bf16.msra.mxu1 %v10936_v63 }
 0x528   : > { %9549 = vmatprep.subr.bf16.mxu1 %v10937_v35 }
 0x52b   : > { %9550 = vmatpush3.bf16.msra.mxu1 %v10937_v35 }
 0x5c0   : > { %v9415_v36 = vpop.f32.mrb[96].mxu1 }
 0x5c1   : > { %v9416_v45 = vpop.f32.mrb[97].mxu1 }
 0x5c2   : > { %v9417_v52 = vadd.f32 %v9416_v45, %v9415_v36  ;;  %v9418_v23 = vpop.f32.mrb[98].mxu1 }
 0x5c3   : > { %v9419_v9 = vpop.f32.mrb[99].mxu1 }
 0x5c4   : > { %v7544_v61 = vadd.f32 %v9417_v52, %v13157_v15  ;;  %v9420_v1 = vadd.f32 %v9419_v9, %v9418_v23 }
 0x5c6   : > { %v7547_v32 = vadd.f32 %v9420_v1, %v13157_v15  ;;  %v7606_v53 = vmax.f32 %v7544_v61, 0.0 }
 0x5c8   : > { %v7607_v58 = vmax.f32 %v7547_v32, 0.0  ;;  %v9421_v14 = vpop.f32.mrb[100].mxu1 }
 0x5c9   : > { %v9422_v30 = vpop.f32.mrb[101].mxu1 }
 0x5ca   : > { %v9423_v4 = vadd.f32 %v9422_v30, %v9421_v14  ;;  %v9424_v8 = vpop.f32.mrb[102].mxu1  ;;  %v7622_v18 = vpack.c.bf16 %v7607_v58, %v7606_v53 }
 0x5cb   : > { %v9425_v20 = vpop.f32.mrb[103].mxu1 }
 0x5cc   : > { %v7552_v13 = vadd.f32 %v9423_v4, %v13157_v15  ;;  %v9426_v0 = vadd.f32 %v9425_v20, %v9424_v8  ;;  %9551 = vmatprep.mubr.bf16.mxu1 %v7622_v18 }
 0x5ce   : > { %v7555_v46 = vadd.f32 %v9426_v0, %v13157_v15  ;;  %v7608_v37 = vmax.f32 %v7552_v13, 0.0 }
 0x5d0   : > { %v7609_v10 = vmax.f32 %v7555_v46, 0.0  ;;  %v9427_v2 = vpop.f32.mrb[104].mxu1 }
 0x5d1   : > { %v9428_v3 = vpop.f32.mrb[105].mxu1 }
 0x5d2   : > { %v7623_v50 = vpack.c.bf16 %v7609_v10, %v7608_v37  ;;  %v9429_v55 = vadd.f32 %v9428_v3, %v9427_v2  ;;  %v9430_v56 = vpop.f32.mrb[106].mxu1 }
 0x5d3   : > { %v9431_v31 = vpop.f32.mrb[107].mxu1 }
 0x5d4   : > { %v7560_v17 = vadd.f32 %v9429_v55, %v13157_v15  ;;  %v9432_v6 = vadd.f32 %v9431_v31, %v9430_v56  ;;  %9552 = vmatmul.mubr.bf16.vlgmr.msra.gmra.mrb[128].mxu1 %v7623_v50  ;;  %v9353_v56 = vld [vmem:[%s13454_s10] ss:$0 sm:$0xff] }
 0x5d6   : > { %v7563_v5 = vadd.f32 %v9432_v6, %v13157_v15  ;;  %v7610_v33 = vmax.f32 %v7560_v17, 0.0 }
 0x5d8   : > { %v7611_v39 = vmax.f32 %v7563_v5, 0.0  ;;  %v9433_v16 = vpop.f32.mrb[108].mxu1 }
 0x5d9   : > { %v9434_v60 = vpop.f32.mrb[109].mxu1 }
 0x5da   : > { %v9435_v27 = vadd.f32 %v9434_v60, %v9433_v16  ;;  %v9436_v12 = vpop.f32.mrb[110].mxu1  ;;  %v7624_v49 = vpack.c.bf16 %v7611_v39, %v7610_v33 }
 0x5db   : > { %v9437_v59 = vpop.f32.mrb[111].mxu1 }
 0x5dc   : > { %v7568_v25 = vadd.f32 %v9435_v27, %v13157_v15  ;;  %v9438_v21 = vadd.f32 %v9437_v59, %v9436_v12  ;;  %9555 = vmatprep.mubr.bf16.mxu1 %v7624_v49 }
 0x5de   : > { %v7571_v38 = vadd.f32 %v9438_v21, %v13157_v15  ;;  %v7612_v43 = vmax.f32 %v7568_v25, 0.0 }
 0x5e0   : > { %v7613_v26 = vmax.f32 %v7571_v38, 0.0  ;;  %v9439_v22 = vpop.f32.mrb[112].mxu1 }
 0x5e1   : > { %v9440_v11 = vpop.f32.mrb[113].mxu1 }
 0x5e2   : > { %v9441_v51 = vadd.f32 %v9440_v11, %v9439_v22  ;;  %v9442_v24 = vpop.f32.mrb[114].mxu1  ;;  %v7625_v42 = vpack.c.bf16 %v7613_v26, %v7612_v43 }
 0x5e3   : > { %v9443_v44 = vpop.f32.mrb[115].mxu1 }
 0x5e4   : > { %v7576_v19 = vadd.f32 %v9441_v51, %v13157_v15  ;;  %v9444_v40 = vadd.f32 %v9443_v44, %v9442_v24  ;;  %9556 = vmatmul.mubr.bf16.gmra.mrb[132].mxu1 %v7625_v42 }
 0x5e6   : > { %v7579_v29 = vadd.f32 %v9444_v40, %v13157_v15  ;;  %v7614_v47 = vmax.f32 %v7576_v19, 0.0 }
 0x5e8   : > { %v7615_v34 = vmax.f32 %v7579_v29, 0.0  ;;  %v9445_v41 = vpop.f32.mrb[116].mxu1 }
 0x5e9   : > { %v9446_v62 = vpop.f32.mrb[117].mxu1 }
 0x5ea   : > { %v9447_v7 = vadd.f32 %v9446_v62, %v9445_v41  ;;  %v9448_v57 = vpop.f32.mrb[118].mxu1  ;;  %v7626_v28 = vpack.c.bf16 %v7615_v34, %v7614_v47 }
 0x5eb   : > { %v9449_v54 = vpop.f32.mrb[119].mxu1 }
 0x5ec   : > { %v7584_v48 = vadd.f32 %v9447_v7, %v13157_v15  ;;  %v9450_v63 = vadd.f32 %v9449_v54, %v9448_v57  ;;  %9559 = vmatprep.mubr.bf16.mxu1 %v7626_v28  ;;  %v10938_v57 = vld [vmem:[%s13455_s11] sm:$0xff]   ;;  %v10939_v28 = vld [vmem:[%s13455_s11 + $0x8] sm:$0xff]  }
 0x5ed   : > { %9567 = vmatprep.subr.bf16.mxu1 %v10938_v57 }
 0x5ee   : > { %v7587_v35 = vadd.f32 %v9450_v63, %v13157_v15  ;;  %v7616_v36 = vmax.f32 %v7584_v48, 0.0  ;;  %9568 = vmatpush3.bf16.msra.mxu1 %v10938_v57 }
 0x5ef   : > { %9569 = vmatprep.subr.bf16.mxu1 %v10939_v28 }
 0x5f0   : > { %v7617_v45 = vmax.f32 %v7587_v35, 0.0  ;;  %v9451_v52 = vpop.f32.mrb[120].mxu1 }
 0x5f1   : > { %v9452_v23 = vpop.f32.mrb[121].mxu1 }
 0x5f2   : > { %v9453_v9 = vadd.f32 %v9452_v23, %v9451_v52  ;;  %v9454_v61 = vpop.f32.mrb[122].mxu1  ;;  %v7627_v1 = vpack.c.bf16 %v7617_v45, %v7616_v36  ;;  %9570 = vmatpush3.bf16.msra.mxu1 %v10939_v28 }
 0x5f3   : > { %v9455_v32 = vpop.f32.mrb[123].mxu1 }
 0x5f4   : > { %v7592_v53 = vadd.f32 %v9453_v9, %v13157_v15  ;;  %v9456_v58 = vadd.f32 %v9455_v32, %v9454_v61  ;;  %9560 = vmatmul.mubr.bf16.gmra.mrb[136].mxu1 %v7627_v1 }
 0x5f6   : > { %v7595_v14 = vadd.f32 %v9456_v58, %v13157_v15  ;;  %v7618_v30 = vmax.f32 %v7592_v53, 0.0 }
 0x5f8   : > { %v7619_v4 = vmax.f32 %v7595_v14, 0.0  ;;  %v9457_v8 = vpop.f32.mrb[124].mxu1 }
 0x5f9   : > { %v9458_v18 = vpop.f32.mrb[125].mxu1 }
 0x5fa   : > { %v9459_v20 = vadd.f32 %v9458_v18, %v9457_v8  ;;  %v9460_v13 = vpop.f32.mrb[126].mxu1  ;;  %v7628_v0 = vpack.c.bf16 %v7619_v4, %v7618_v30 }
 0x5fb   : > { %v9461_v46 = vpop.f32.mrb[127].mxu1 }
 0x5fc   : > { %v7600_v37 = vadd.f32 %v9459_v20, %v13157_v15  ;;  %v9462_v10 = vadd.f32 %v9461_v46, %v9460_v13  ;;  %9563 = vmatprep.mubr.bf16.mxu1 %v7628_v0 }
 0x5fe   : > { %v7603_v2 = vadd.f32 %v9462_v10, %v13157_v15  ;;  %v7620_v3 = vmax.f32 %v7600_v37, 0.0 }
 0x600   : > { %v7621_v50 = vmax.f32 %v7603_v2, 0.0 }
 0x602   : > { %v7629_v55 = vpack.c.bf16 %v7621_v50, %v7620_v3 }
 0x604   : > { %9564 = vmatmul.mubr.bf16.gmra.mrb[140].mxu1 %v7629_v55 }
 0x6a7   : > { %v9553_v31 = vpop.f32.mrb[128].mxu1 }
 0x6a8   : > { %v7744_v17 = vadd.f32 %v9553_v31, %v9353_v56  ;;  %v7735_v6 = vpop.f32.mrb[129].mxu1 }
 0x6a9   : > { %v7736_v5 = vadd.f32 %v9353_v56, %v7735_v6  ;;  %v9554_v33 = vpop.f32.mrb[130].mxu1 }
 0x6aa   : > { %7802 = vadd.xlane.f32.xlu1 %v7744_v17  ;;  %v7738_v39 = vpop.f32.mrb[131].mxu1  ;;  %v7747_v16 = vadd.f32 %v9554_v33, %v9353_v56 }
 0x6ab   : > { %7798 = vadd.xlane.f32.xlu0 %v7736_v5  ;;  %v7739_v60 = vadd.f32 %v9353_v56, %v7738_v39  ;;  %v10942_v39 = vld [vmem:[%s13455_s11 + $0x20] sm:$0xff]  }
 0x6ae   : > { %7804 = vadd.xlane.f32.xlu1 %v7747_v16 }
 0x6af   : > { %7800 = vadd.xlane.f32.xlu0 %v7739_v60 }
 0x6b7   : > { %v9557_v15 = vpop.f32.mrb[132].mxu1 }
 0x6b8   : > { %v7751_v27 = vpop.f32.mrb[133].mxu1  ;;  %v13183_v21 = vadd.f32 %v9557_v15, %v9353_v56 }
 0x6b9   : > { %v13178_v12 = vadd.f32 %v9353_v56, %v7751_v27  ;;  %v9558_v49 = vpop.f32.mrb[134].mxu1 }
 0x6ba   : > { %v7754_v59 = vpop.f32.mrb[135].mxu1  ;;  %v13186_v38 = vadd.f32 %v9558_v49, %v9353_v56  ;;  %v10943_v49 = vld [vmem:[%s13455_s11 + $0x28] sm:$0xff]  }
 0x6bb   : > { %v13180_v25 = vadd.f32 %v9353_v56, %v7754_v59  ;;  %7806 = vadd.xlane.f32.xlu0 %v13178_v12 }
 0x6bd   : > { %7808 = vadd.xlane.f32.xlu1 %v13180_v25 }
 0x6bf   : > { %7810 = vadd.xlane.f32.xlu0 %v13183_v21 }
 0x6c1   : > { %7812 = vadd.xlane.f32.xlu1 %v13186_v38 }
 0x6c7   : > { %v9561_v43 = vpop.f32.mrb[136].mxu1 }
 0x6c8   : > { %v7767_v26 = vpop.f32.mrb[137].mxu1  ;;  %v13195_v42 = vadd.f32 %v9561_v43, %v9353_v56 }
 0x6c9   : > { %v13190_v22 = vadd.f32 %v9353_v56, %v7767_v26  ;;  %v9562_v11 = vpop.f32.mrb[138].mxu1 }
 0x6ca   : > { %v7770_v51 = vpop.f32.mrb[139].mxu1  ;;  %v13198_v44 = vadd.f32 %v9562_v11, %v9353_v56  ;;  %v10944_v11 = vld [vmem:[%s13455_s11 + $0x30] sm:$0xff]  }
 0x6cb   : > { %v13192_v24 = vadd.f32 %v9353_v56, %v7770_v51  ;;  %7814 = vadd.xlane.f32.xlu0 %v13190_v22 }
 0x6cd   : > { %7816 = vadd.xlane.f32.xlu1 %v13192_v24 }
 0x6cf   : > { %7818 = vadd.xlane.f32.xlu0 %v13195_v42 }
 0x6d1   : > { %7820 = vadd.xlane.f32.xlu1 %v13198_v44 }
 0x6d7   : > { %v9565_v19 = vpop.f32.mrb[140].mxu1 }
 0x6d8   : > { %v7783_v40 = vpop.f32.mrb[141].mxu1  ;;  %v13207_v62 = vadd.f32 %v9565_v19, %v9353_v56  ;;  %v10945_v19 = vld [vmem:[%s13455_s11 + $0x38] sm:$0xff]  }
 0x6d9   : > { %v13202_v29 = vadd.f32 %v9353_v56, %v7783_v40  ;;  %v9566_v47 = vpop.f32.mrb[142].mxu1 }
 0x6da   : > { %v7786_v34 = vpop.f32.mrb[143].mxu1  ;;  %v13210_v7 = vadd.f32 %v9566_v47, %v9353_v56 }
 0x6db   : > { %v13204_v41 = vadd.f32 %v9353_v56, %v7786_v34  ;;  %7822 = vadd.xlane.f32.xlu0 %v13202_v29  ;;  %v10940_v56 = vld [vmem:[%s13455_s11 + $0x10] sm:$0xff]  }
 0x6dc   : > { %9571 = vmatprep.subr.bf16.mxu1 %v10940_v56 }
 0x6dd   : > { %7824 = vadd.xlane.f32.xlu1 %v13204_v41  ;;  %9572 = vmatpush3.bf16.msra.mxu1 %v10940_v56 }
 0x6df   : > { %7826 = vadd.xlane.f32.xlu0 %v13207_v62 }
 0x6e1   : > { %7828 = vadd.xlane.f32.xlu1 %v13210_v7 }
 0x737   : > { %v7803_v54 = vpop.xlane.xlu1 %7802 }
 0x738   : > { %v7799_v48 = vpop.xlane.xlu0 %7798  ;;  %v7833_v63 = vmul.f32 0.0078125, %v7803_v54 }
 0x739   : > { %v7831_v35 = vmul.f32 0.0078125, %v7799_v48 }
 0x73a   : > { %v13222_v23 = vsub.f32 %v7744_v17, %v7833_v63 }
 0x73b   : > { %v13220_v36 = vsub.f32 %v7736_v5, %v7831_v35  ;;  %v7805_v45 = vpop.xlane.xlu1 %7804  ;;  %v10941_v5 = vld [vmem:[%s13455_s11 + $0x18] sm:$0xff]  }
 0x73c   : > { %v7801_v52 = vpop.xlane.xlu0 %7800  ;;  %v7834_v9 = vmul.f32 0.0078125, %v7805_v45  ;;  %v7865_v58 = vmul.f32 %v13222_v23, %v13222_v23  ;;  %9573 = vmatprep.subr.bf16.mxu1 %v10941_v5 }
 0x73d   : > { %v7832_v61 = vmul.f32 0.0078125, %v7801_v52  ;;  %v7863_v1 = vmul.f32 %v13220_v36, %v13220_v36  ;;  %9574 = vmatpush3.bf16.msra.mxu1 %v10941_v5 }
 0x73e   : > { %v13228_v53 = vsub.f32 %v7747_v16, %v7834_v9  ;;  %9575 = vmatprep.subr.bf16.mxu1 %v10942_v39 }
 0x73f   : > { %v13226_v32 = vsub.f32 %v7739_v60, %v7832_v61  ;;  %7879 = vadd.xlane.f32.xlu0 %v7863_v1  ;;  %v10947_v1 = vld [vmem:[%s13457_s13 + $0x8] sm:$0xff]  }
 0x740   : > { %v7866_v30 = vmul.f32 %v13228_v53, %v13228_v53 }
 0x741   : > { %v7864_v14 = vmul.f32 %v13226_v32, %v13226_v32  ;;  %9576 = vmatpush3.bf16.msra.mxu1 %v10942_v39 }
 0x742   : > { %9577 = vmatprep.subr.bf16.mxu1 %v10943_v49 }
 0x743   : > { %7883 = vadd.xlane.f32.xlu0 %v7865_v58  ;;  %7881 = vadd.xlane.f32.xlu1 %v7864_v14  ;;  %v10949_v58 = vld [vmem:[%s13457_s13 + $0x18] sm:$0xff]   ;;  %v10950_v14 = vld [vmem:[%s13457_s13 + $0x20] sm:$0xff]  }
 0x745   : > { %9578 = vmatpush3.bf16.msra.mxu1 %v10943_v49 }
 0x746   : > { %9579 = vmatprep.subr.bf16.mxu1 %v10944_v11 }
 0x747   : > { %7885 = vadd.xlane.f32.xlu1 %v7866_v30  ;;  %v10951_v30 = vld [vmem:[%s13457_s13 + $0x28] sm:$0xff]  }
 0x748   : > { %v7807_v4 = vpop.xlane.xlu0 %7806 }
 0x749   : > { %v7835_v8 = vmul.f32 0.0078125, %v7807_v4  ;;  %9580 = vmatpush3.bf16.msra.mxu1 %v10944_v11 }
 0x74a   : > { %v7809_v18 = vpop.xlane.xlu1 %7808  ;;  %9581 = vmatprep.subr.bf16.mxu1 %v10945_v19 }
 0x74b   : > { %v13237_v20 = vsub.f32 %v13178_v12, %v7835_v8  ;;  %v7836_v13 = vmul.f32 0.0078125, %v7809_v18 }
 0x74c   : > { %v7811_v0 = vpop.xlane.xlu0 %7810 }
 0x74d   : > { %v13240_v46 = vsub.f32 %v13180_v25, %v7836_v13  ;;  %v7837_v37 = vmul.f32 0.0078125, %v7811_v0  ;;  %v7867_v10 = vmul.f32 %v13237_v20, %v13237_v20  ;;  %9582 = vmatpush3.bf16.msra.mxu1 %v10945_v19 }
 0x74e   : > { %v7813_v2 = vpop.xlane.xlu1 %7812 }
 0x74f   : > { %v13245_v3 = vsub.f32 %v13183_v21, %v7837_v37  ;;  %v7838_v50 = vmul.f32 0.0078125, %v7813_v2  ;;  %7887 = vadd.xlane.f32.xlu0 %v7867_v10  ;;  %v7868_v55 = vmul.f32 %v13240_v46, %v13240_v46 }
 0x751   : > { %v13253_v31 = vsub.f32 %v13186_v38, %v7838_v50  ;;  %7889 = vadd.xlane.f32.xlu1 %v7868_v55  ;;  %v7869_v17 = vmul.f32 %v13245_v3, %v13245_v3 }
 0x753   : > { %7891 = vadd.xlane.f32.xlu0 %v7869_v17  ;;  %v7870_v6 = vmul.f32 %v13253_v31, %v13253_v31 }
 0x755   : > { %7893 = vadd.xlane.f32.xlu1 %v7870_v6 }
 0x758   : > { %v7815_v33 = vpop.xlane.xlu0 %7814 }
 0x759   : > { %v7839_v16 = vmul.f32 0.0078125, %v7815_v33 }
 0x75a   : > { %v7817_v60 = vpop.xlane.xlu1 %7816 }
 0x75b   : > { %v13266_v15 = vsub.f32 %v13190_v22, %v7839_v16  ;;  %v7840_v27 = vmul.f32 0.0078125, %v7817_v60 }
 0x75c   : > { %v7819_v12 = vpop.xlane.xlu0 %7818 }
 0x75d   : > { %v13272_v59 = vsub.f32 %v13192_v24, %v7840_v27  ;;  %v7841_v25 = vmul.f32 0.0078125, %v7819_v12  ;;  %v7871_v21 = vmul.f32 %v13266_v15, %v13266_v15 }
 0x75e   : > { %v7821_v38 = vpop.xlane.xlu1 %7820 }
 0x75f   : > { %v13277_v43 = vsub.f32 %v13195_v42, %v7841_v25  ;;  %v7842_v26 = vmul.f32 0.0078125, %v7821_v38  ;;  %7895 = vadd.xlane.f32.xlu0 %v7871_v21  ;;  %v7872_v22 = vmul.f32 %v13272_v59, %v13272_v59 }
 0x761   : > { %v13285_v51 = vsub.f32 %v13198_v44, %v7842_v26  ;;  %7897 = vadd.xlane.f32.xlu1 %v7872_v22  ;;  %v7873_v24 = vmul.f32 %v13277_v43, %v13277_v43 }
 0x763   : > { %7899 = vadd.xlane.f32.xlu0 %v7873_v24  ;;  %v7874_v42 = vmul.f32 %v13285_v51, %v13285_v51 }
 0x765   : > { %7901 = vadd.xlane.f32.xlu1 %v7874_v42 }
 0x768   : > { %v7823_v40 = vpop.xlane.xlu0 %7822 }
 0x769   : > { %v7843_v44 = vmul.f32 0.0078125, %v7823_v40 }
 0x76a   : > { %v7825_v47 = vpop.xlane.xlu1 %7824 }
 0x76b   : > { %v13295_v34 = vsub.f32 %v13202_v29, %v7843_v44  ;;  %v7844_v57 = vmul.f32 0.0078125, %v7825_v47 }
 0x76c   : > { %v7827_v28 = vpop.xlane.xlu0 %7826 }
 0x76d   : > { %v13298_v54 = vsub.f32 %v13204_v41, %v7844_v57  ;;  %v7845_v48 = vmul.f32 0.0078125, %v7827_v28  ;;  %v7875_v63 = vmul.f32 %v13295_v34, %v13295_v34 }
 0x76e   : > { %v7829_v35 = vpop.xlane.xlu1 %7828 }
 0x76f   : > { %v13303_v45 = vsub.f32 %v13207_v62, %v7845_v48  ;;  %v7846_v52 = vmul.f32 0.0078125, %v7829_v35  ;;  %7903 = vadd.xlane.f32.xlu0 %v7875_v63  ;;  %v7876_v9 = vmul.f32 %v13298_v54, %v13298_v54  ;;  %v10946_v62 = vld [vmem:[%s13457_s13] sm:$0xff]  }
 0x770   : > { %9599 = vmatprep.subr.bf16.mxu0 %v10946_v62 }
 0x771   : > { %v13308_v29 = vsub.f32 %v13210_v7, %v7846_v52  ;;  %7905 = vadd.xlane.f32.xlu1 %v7876_v9  ;;  %v7877_v41 = vmul.f32 %v13303_v45, %v13303_v45  ;;  %9600 = vmatpush3.bf16.msra.mxu0 %v10946_v62  ;;  %v10948_v7 = vld [vmem:[%s13457_s13 + $0x10] sm:$0xff]  }
 0x772   : > { %9601 = vmatprep.subr.bf16.mxu0 %v10947_v1 }
 0x773   : > { %7907 = vadd.xlane.f32.xlu0 %v7877_v41  ;;  %v7878_v61 = vmul.f32 %v13308_v29, %v13308_v29 }
 0x775   : > { %7909 = vadd.xlane.f32.xlu1 %v7878_v61  ;;  %9602 = vmatpush3.bf16.msra.mxu0 %v10947_v1 }
 0x776   : > { %9603 = vmatprep.subr.bf16.mxu0 %v10948_v7 }
 0x779   : > { %9604 = vmatpush3.bf16.msra.mxu0 %v10948_v7 }
 0x77a   : > { %9605 = vmatprep.subr.bf16.mxu0 %v10949_v58 }
 0x77d   : > { %9606 = vmatpush3.bf16.msra.mxu0 %v10949_v58 }
 0x77e   : > { %9607 = vmatprep.subr.bf16.mxu0 %v10950_v14 }
 0x781   : > { %9608 = vmatpush3.bf16.msra.mxu0 %v10950_v14 }
 0x782   : > { %9609 = vmatprep.subr.bf16.mxu0 %v10951_v30 }
 0x785   : > { %9610 = vmatpush3.bf16.msra.mxu0 %v10951_v30 }
 0x7cc   : > { %v7880_v4 = vpop.xlane.xlu0 %7879 }
 0x7cd   : > { %v7911_v8 = vmul.f32 0.0078125, %v7880_v4 }
 0x7cf   : > { %v7927_v18 = vadd.f32 1e-05, %v7911_v8 }
 0x7d0   : > { %v7882_v13 = vpop.xlane.xlu1 %7881  ;;  %v7884_v0 = vpop.xlane.xlu0 %7883 }
 0x7d1   : > { %v7912_v37 = vmul.f32 0.0078125, %v7882_v13  ;;  %v7913_v10 = vmul.f32 0.0078125, %v7884_v0  ;;  %10954 = vrsqrt.f32 %v7927_v18 }
 0x7d3   : > { %v7928_v2 = vadd.f32 1e-05, %v7912_v37  ;;  %v7929_v50 = vadd.f32 1e-05, %v7913_v10 }
 0x7d4   : > { %v7886_v55 = vpop.xlane.xlu1 %7885 }
 0x7d5   : > { %10956 = vrsqrt.f32 %v7928_v2  ;;  %v7914_v56 = vmul.f32 0.0078125, %v7886_v55 }
 0x7d6   : > { %10958 = vrsqrt.f32 %v7929_v50 }
 0x7d7   : > { %v7930_v17 = vadd.f32 1e-05, %v7914_v56 }
 0x7d9   : > { %10960 = vrsqrt.f32 %v7930_v17 }
 0x7db   : > { %v10955_v5 = vpop.eup %10954 }
 0x7dc   : > { %v7888_v6 = vpop.xlane.xlu0 %7887  ;;  %v7959_v49 = vmul.f32 %v10955_v5, %v13220_v36 }
 0x7dd   : > { %v7915_v33 = vmul.f32 0.0078125, %v7888_v6 }
 0x7de   : > { %v7890_v39 = vpop.xlane.xlu1 %7889 }
 0x7df   : > { %v10957_v16 = vpop.eup %10956  ;;  %v7931_v60 = vadd.f32 1e-05, %v7915_v33  ;;  %v7916_v27 = vmul.f32 0.0078125, %v7890_v39 }
 0x7e0   : > { %v7892_v12 = vpop.xlane.xlu0 %7891  ;;  %v7960_v25 = vmul.f32 %v10957_v16, %v13226_v32  ;;  %v10959_v21 = vpop.eup %10958 }
 0x7e1   : > { %10962 = vrsqrt.f32 %v7931_v60  ;;  %v7932_v38 = vadd.f32 1e-05, %v7916_v27  ;;  %v7917_v26 = vmul.f32 0.0078125, %v7892_v12  ;;  %v7961_v40 = vmul.f32 %v10959_v21, %v13222_v23 }
 0x7e2   : > { %v7894_v22 = vpop.xlane.xlu1 %7893  ;;  %v7975_v11 = vpack.c.bf16 %v7960_v25, %v7959_v49 }
 0x7e3   : > { %v10961_v24 = vpop.eup %10960  ;;  %10964 = vrsqrt.f32 %v7932_v38  ;;  %v7933_v42 = vadd.f32 1e-05, %v7917_v26  ;;  %v7918_v19 = vmul.f32 0.0078125, %v7894_v22 }
 0x7e4   : > { %v7962_v44 = vmul.f32 %v10961_v24, %v13228_v53  ;;  %9583 = vmatprep.mubr.bf16.mxu1 %v7975_v11 }
 0x7e5   : > { %10966 = vrsqrt.f32 %v7933_v42  ;;  %v7934_v47 = vadd.f32 1e-05, %v7918_v19  ;;  %v10952_v42 = vld [vmem:[%s13457_s13 + $0x30] sm:$0xff]  }
 0x7e6   : > { %v7976_v36 = vpack.c.bf16 %v7962_v44, %v7961_v40  ;;  %9611 = vmatprep.subr.bf16.mxu0 %v10952_v42  ;;  %v8362_v40 = vld [vmem:[%s13459_s15 + $0x18] sm:$0xff] }
 0x7e7   : > { %10968 = vrsqrt.f32 %v7934_v47  ;;  %9612 = vmatpush3.bf16.msra.mxu0 %v10952_v42  ;;  %v9362_v47 = vld [vmem:[%s13456_s12] ss:$0 sm:$0xff] }
 0x7e8   : > { %9584 = vmatmul.mubr.bf16.vlgmr.msra.gmra.mrb[144].mxu1 %v7976_v36 }
 0x7eb   : > { %v10963_v32 = vpop.eup %10962 }
 0x7ec   : > { %v7896_v57 = vpop.xlane.xlu0 %7895  ;;  %v7963_v35 = vmul.f32 %v10963_v32, %v13237_v20 }
 0x7ed   : > { %v10965_v28 = vpop.eup %10964  ;;  %v7919_v48 = vmul.f32 0.0078125, %v7896_v57 }
 0x7ee   : > { %v7898_v63 = vpop.xlane.xlu1 %7897  ;;  %v7964_v52 = vmul.f32 %v10965_v28, %v13240_v46 }
 0x7ef   : > { %v10967_v9 = vpop.eup %10966  ;;  %v7935_v41 = vadd.f32 1e-05, %v7919_v48  ;;  %v7920_v23 = vmul.f32 0.0078125, %v7898_v63 }
 0x7f0   : > { %v7900_v61 = vpop.xlane.xlu0 %7899  ;;  %v7977_v53 = vpack.c.bf16 %v7964_v52, %v7963_v35  ;;  %v7965_v14 = vmul.f32 %v10967_v9, %v13245_v3 }
 0x7f1   : > { %v10969_v62 = vpop.eup %10968  ;;  %10970 = vrsqrt.f32 %v7935_v41  ;;  %v7936_v1 = vadd.f32 1e-05, %v7920_v23  ;;  %v7921_v7 = vmul.f32 0.0078125, %v7900_v61 }
 0x7f2   : > { %v7902_v58 = vpop.xlane.xlu1 %7901  ;;  %9587 = vmatprep.mubr.bf16.mxu1 %v7977_v53  ;;  %v7966_v30 = vmul.f32 %v10969_v62, %v13253_v31 }
 0x7f3   : > { %10972 = vrsqrt.f32 %v7936_v1  ;;  %v7937_v4 = vadd.f32 1e-05, %v7921_v7  ;;  %v7922_v20 = vmul.f32 0.0078125, %v7902_v58 }
 0x7f4   : > { %v7978_v8 = vpack.c.bf16 %v7966_v30, %v7965_v14 }
 0x7f5   : > { %10974 = vrsqrt.f32 %v7937_v4  ;;  %v7938_v46 = vadd.f32 1e-05, %v7922_v20 }
 0x7f6   : > { %9588 = vmatmul.mubr.bf16.gmra.mrb[148].mxu1 %v7978_v8 }
 0x7f7   : > { %10976 = vrsqrt.f32 %v7938_v46 }
 0x7fb   : > { %v10971_v18 = vpop.eup %10970 }
 0x7fc   : > { %v7904_v13 = vpop.xlane.xlu0 %7903  ;;  %v7967_v2 = vmul.f32 %v10971_v18, %v13266_v15 }
 0x7fd   : > { %v10973_v0 = vpop.eup %10972  ;;  %v7923_v37 = vmul.f32 0.0078125, %v7904_v13 }
 0x7fe   : > { %v7906_v10 = vpop.xlane.xlu1 %7905  ;;  %v7968_v50 = vmul.f32 %v10973_v0, %v13272_v59 }
 0x7ff   : > { %v10975_v3 = vpop.eup %10974  ;;  %v7939_v55 = vadd.f32 1e-05, %v7923_v37  ;;  %v7924_v31 = vmul.f32 0.0078125, %v7906_v10 }
 0x800   : > { %v7908_v56 = vpop.xlane.xlu0 %7907  ;;  %v7979_v17 = vpack.c.bf16 %v7968_v50, %v7967_v2  ;;  %v7969_v16 = vmul.f32 %v10975_v3, %v13277_v43 }
 0x801   : > { %v10977_v6 = vpop.eup %10976  ;;  %10978 = vrsqrt.f32 %v7939_v55  ;;  %v7940_v5 = vadd.f32 1e-05, %v7924_v31  ;;  %v7925_v33 = vmul.f32 0.0078125, %v7908_v56 }
 0x802   : > { %v7910_v39 = vpop.xlane.xlu1 %7909  ;;  %9591 = vmatprep.mubr.bf16.mxu1 %v7979_v17  ;;  %v7970_v60 = vmul.f32 %v10977_v6, %v13285_v51 }
 0x803   : > { %10980 = vrsqrt.f32 %v7940_v5  ;;  %v7941_v27 = vadd.f32 1e-05, %v7925_v33  ;;  %v7926_v15 = vmul.f32 0.0078125, %v7910_v39 }
 0x804   : > { %v7980_v12 = vpack.c.bf16 %v7970_v60, %v7969_v16 }
 0x805   : > { %10982 = vrsqrt.f32 %v7941_v27  ;;  %v7942_v59 = vadd.f32 1e-05, %v7926_v15 }
 0x806   : > { %9592 = vmatmul.mubr.bf16.gmra.mrb[152].mxu1 %v7980_v12 }
 0x807   : > { %10984 = vrsqrt.f32 %v7942_v59 }
 0x80b   : > { %v10979_v49 = vpop.eup %10978 }
 0x80c   : > { %v7971_v21 = vmul.f32 %v10979_v49, %v13295_v34  ;;  %v10953_v34 = vld [vmem:[%s13457_s13 + $0x38] sm:$0xff]  }
 0x80d   : > { %v10981_v25 = vpop.eup %10980  ;;  %9613 = vmatprep.subr.bf16.mxu0 %v10953_v34 }
 0x80e   : > { %v7972_v38 = vmul.f32 %v10981_v25, %v13298_v54  ;;  %9614 = vmatpush3.bf16.msra.mxu0 %v10953_v34  ;;  %v8359_v54 = vld [vmem:[%s13459_s15] sm:$0xff] }
 0x80f   : > { %v10983_v26 = vpop.eup %10982  ;;  %v8363_v34 = vld [vmem:[%s13459_s15 + $0x20] sm:$0xff] }
 0x810   : > { %v7981_v22 = vpack.c.bf16 %v7972_v38, %v7971_v21  ;;  %v7973_v43 = vmul.f32 %v10983_v26, %v13303_v45  ;;  %v8360_v45 = vld [vmem:[%s13459_s15 + $0x8] sm:$0xff] }
 0x811   : > { %v10985_v11 = vpop.eup %10984  ;;  %v9671_v19 = vpack.c.bf16 %v8360_v45, %v8359_v54  ;;  %v8364_v54 = vld [vmem:[%s13459_s15 + $0x28] sm:$0xff] }
 0x812   : > { %9595 = vmatprep.mubr.bf16.mxu1 %v7981_v22  ;;  %v7974_v51 = vmul.f32 %v10985_v11, %v13308_v29  ;;  %v8361_v29 = vld [vmem:[%s13459_s15 + $0x10] sm:$0xff]  ;;  %v9679_v45 = vpack.c.bf16 %v8364_v54, %v8363_v34 }
 0x813   : > { %v9675_v44 = vpack.c.bf16 %v8362_v40, %v8361_v29  ;;  %9672 = vmatprep.subr.bf16.mxu1 %v9671_v19  ;;  %v8365_v29 = vld [vmem:[%s13459_s15 + $0x30] sm:$0xff] }
 0x814   : > { %v7982_v24 = vpack.c.bf16 %v7974_v51, %v7973_v43  ;;  %9674 = vmatpush3.bf16.msra.mxu1 %v9671_v19  ;;  %v8366_v19 = vld [vmem:[%s13459_s15 + $0x38] sm:$0xff] }
 0x815   : > { %9676 = vmatprep.subr.bf16.mxu1 %v9675_v44  ;;  %v9683_v40 = vpack.c.bf16 %v8366_v19, %v8365_v29 }
 0x816   : > { %9596 = vmatmul.mubr.bf16.gmra.mrb[156].mxu1 %v7982_v24 }
 0x818   : > { %9678 = vmatpush3.bf16.msra.mxu1 %v9675_v44  ;;  %v9371_v44 = vld [vmem:[%s13458_s14] ss:$0 sm:$0xff] }
 0x819   : > { %9680 = vmatprep.subr.bf16.mxu1 %v9679_v45 }
 0x81c   : > { %9682 = vmatpush3.bf16.msra.mxu1 %v9679_v45 }
 0x81d   : > { %9684 = vmatprep.subr.bf16.mxu1 %v9683_v40 }
 0x820   : > { %9686 = vmatpush3.bf16.msra.mxu1 %v9683_v40 }
 0x8bb   : > { %v9585_v36 = vpop.f32.mrb[144].mxu1 }
 0x8bc   : > { %v8097_v32 = vadd.f32 %v9585_v36, %v9362_v47  ;;  %v8088_v57 = vpop.f32.mrb[145].mxu1 }
 0x8bd   : > { %v8089_v28 = vadd.f32 %v9362_v47, %v8088_v57  ;;  %v9586_v48 = vpop.f32.mrb[146].mxu1 }
 0x8be   : > { %v8100_v63 = vadd.f32 %v9586_v48, %v9362_v47  ;;  %v8091_v35 = vpop.f32.mrb[147].mxu1  ;;  %v8153_v9 = vmax.f32 %v8097_v32, 0.0 }
 0x8bf   : > { %v8092_v52 = vadd.f32 %v9362_v47, %v8091_v35  ;;  %v8151_v23 = vmax.f32 %v8089_v28, 0.0 }
 0x8c0   : > { %v8154_v41 = vmax.f32 %v8100_v63, 0.0 }
 0x8c1   : > { %v8152_v61 = vmax.f32 %v8092_v52, 0.0 }
 0x8c2   : > { %v8168_v53 = vpack.c.bf16 %v8154_v41, %v8153_v9 }
 0x8c3   : > { %v8167_v62 = vpack.c.bf16 %v8152_v61, %v8151_v23 }
 0x8c5   : > { %9615 = vmatprep.mubr.bf16.mxu0 %v8167_v62 }
 0x8c6   : > { %9616 = vmatmul.mubr.bf16.vlgmr.msra.gmra.mrb[128].mxu0 %v8168_v53 }
 0x8c9   : > { %v9589_v1 = vpop.f32.mrb[148].mxu1 }
 0x8ca   : > { %v8113_v7 = vadd.f32 %v9589_v1, %v9362_v47  ;;  %v8104_v58 = vpop.f32.mrb[149].mxu1 }
 0x8cb   : > { %v8105_v14 = vadd.f32 %v9362_v47, %v8104_v58  ;;  %v9590_v30 = vpop.f32.mrb[150].mxu1 }
 0x8cc   : > { %v8116_v4 = vadd.f32 %v9590_v30, %v9362_v47  ;;  %v8107_v20 = vpop.f32.mrb[151].mxu1  ;;  %v8157_v46 = vmax.f32 %v8113_v7, 0.0 }
 0x8cd   : > { %v8108_v8 = vadd.f32 %v9362_v47, %v8107_v20  ;;  %v8155_v13 = vmax.f32 %v8105_v14, 0.0 }
 0x8ce   : > { %v8158_v18 = vmax.f32 %v8116_v4, 0.0 }
 0x8cf   : > { %v8156_v0 = vmax.f32 %v8108_v8, 0.0 }
 0x8d0   : > { %v8170_v37 = vpack.c.bf16 %v8158_v18, %v8157_v46 }
 0x8d1   : > { %v8169_v10 = vpack.c.bf16 %v8156_v0, %v8155_v13 }
 0x8d3   : > { %9619 = vmatprep.mubr.bf16.mxu0 %v8169_v10 }
 0x8d4   : > { %9620 = vmatmul.mubr.bf16.gmra.mrb[132].mxu0 %v8170_v37 }
 0x8d9   : > { %v9593_v2 = vpop.f32.mrb[152].mxu1 }
 0x8da   : > { %v8129_v50 = vadd.f32 %v9593_v2, %v9362_v47  ;;  %v8120_v3 = vpop.f32.mrb[153].mxu1 }
 0x8db   : > { %v8121_v55 = vadd.f32 %v9362_v47, %v8120_v3  ;;  %v9594_v31 = vpop.f32.mrb[154].mxu1 }
 0x8dc   : > { %v8132_v56 = vadd.f32 %v9594_v31, %v9362_v47  ;;  %v8123_v17 = vpop.f32.mrb[155].mxu1  ;;  %v8161_v5 = vmax.f32 %v8129_v50, 0.0 }
 0x8dd   : > { %v8124_v6 = vadd.f32 %v9362_v47, %v8123_v17  ;;  %v8159_v39 = vmax.f32 %v8121_v55, 0.0 }
 0x8de   : > { %v8162_v33 = vmax.f32 %v8132_v56, 0.0 }
 0x8df   : > { %v8160_v16 = vmax.f32 %v8124_v6, 0.0 }
 0x8e0   : > { %v8172_v60 = vpack.c.bf16 %v8162_v33, %v8161_v5 }
 0x8e1   : > { %v8171_v27 = vpack.c.bf16 %v8160_v16, %v8159_v39 }
 0x8e3   : > { %9623 = vmatprep.mubr.bf16.mxu0 %v8171_v27 }
 0x8e4   : > { %9624 = vmatmul.mubr.bf16.gmra.mrb[136].mxu0 %v8172_v60 }
 0x8e9   : > { %v9597_v15 = vpop.f32.mrb[156].mxu1 }
 0x8ea   : > { %v8145_v12 = vadd.f32 %v9597_v15, %v9362_v47  ;;  %v8136_v59 = vpop.f32.mrb[157].mxu1 }
 0x8eb   : > { %v8137_v49 = vadd.f32 %v9362_v47, %v8136_v59  ;;  %v9598_v25 = vpop.f32.mrb[158].mxu1 }
 0x8ec   : > { %v8148_v21 = vadd.f32 %v9598_v25, %v9362_v47  ;;  %v8139_v38 = vpop.f32.mrb[159].mxu1  ;;  %v8165_v22 = vmax.f32 %v8145_v12, 0.0 }
 0x8ed   : > { %v8140_v26 = vadd.f32 %v9362_v47, %v8139_v38  ;;  %v8163_v43 = vmax.f32 %v8137_v49, 0.0 }
 0x8ee   : > { %v8166_v11 = vmax.f32 %v8148_v21, 0.0  ;;  %v9380_v21 = vld [vmem:[%s13479_s23] ss:$0 sm:$0xff] }
 0x8ef   : > { %v8164_v51 = vmax.f32 %v8140_v26, 0.0 }
 0x8f0   : > { %v8174_v24 = vpack.c.bf16 %v8166_v11, %v8165_v22 }
 0x8f1   : > { %v8173_v42 = vpack.c.bf16 %v8164_v51, %v8163_v43 }
 0x8f3   : > { %9627 = vmatprep.mubr.bf16.mxu0 %v8173_v42 }
 0x8f4   : > { %9628 = vmatmul.mubr.bf16.gmra.mrb[140].mxu0 %v8174_v24 }
 0x999   : > { %v9617_v47 = vpop.f32.mrb[128].mxu0 }
 0x99a   : > { %v8280_v36 = vpop.f32.mrb[129].mxu0  ;;  %v8289_v28 = vadd.f32 %v9617_v47, %v9371_v44 }
 0x99b   : > { %v8281_v32 = vadd.f32 %v9371_v44, %v8280_v36  ;;  %v9618_v57 = vpop.f32.mrb[130].mxu0 }
 0x99c   : > { %v8283_v48 = vpop.f32.mrb[131].mxu0  ;;  %v8292_v52 = vadd.f32 %v9618_v57, %v9371_v44  ;;  %v8345_v41 = vmax.f32 %v8289_v28, 0.0 }
 0x99d   : > { %v8343_v63 = vmax.f32 %v8281_v32, 0.0  ;;  %v8284_v35 = vadd.f32 %v9371_v44, %v8283_v48 }
 0x99e   : > { %v8346_v23 = vmax.f32 %v8292_v52, 0.0 }
 0x99f   : > { %v8344_v9 = vmax.f32 %v8284_v35, 0.0  ;;  %9647 = vmatprep.mubr.msk.f32.mxu1 %vm8374_vm2, %v8343_v63 }
 0x9a1   : > { %9648 = vmatmul.mubr.msk.f32.vlgmr.msra.gmra.mrb[160].mxu1 %vm8374_vm2, %v8344_v9 }
 0x9a2   : > { %9650 = vmatprep.mubr.msk.f32.mxu1 %vm8374_vm2, %v8345_v41 }
 0x9a5   : > { %9651 = vmatmul.mubr.msk.f32.gmra.mrb[162].mxu1 %vm8374_vm2, %v8346_v23 }
 0x9a7   : > { %v9621_v61 = vpop.f32.mrb[132].mxu0 }
 0x9a8   : > { %v8296_v53 = vpop.f32.mrb[133].mxu0  ;;  %v8305_v7 = vadd.f32 %v9621_v61, %v9371_v44 }
 0x9a9   : > { %v8297_v62 = vadd.f32 %v9371_v44, %v8296_v53  ;;  %v9622_v1 = vpop.f32.mrb[134].mxu0 }
 0x9aa   : > { %v8299_v58 = vpop.f32.mrb[135].mxu0  ;;  %v8308_v4 = vadd.f32 %v9622_v1, %v9371_v44  ;;  %v8349_v8 = vmax.f32 %v8305_v7, 0.0 }
 0x9ab   : > { %v8347_v14 = vmax.f32 %v8297_v62, 0.0  ;;  %v8300_v30 = vadd.f32 %v9371_v44, %v8299_v58 }
 0x9ac   : > { %v8350_v46 = vmax.f32 %v8308_v4, 0.0 }
 0x9ad   : > { %v8348_v20 = vmax.f32 %v8300_v30, 0.0  ;;  %9653 = vmatprep.mubr.msk.f32.mxu1 %vm8374_vm2, %v8347_v14 }
 0x9af   : > { %9654 = vmatmul.mubr.msk.f32.gmra.mrb[164].mxu1 %vm8374_vm2, %v8348_v20 }
 0x9b0   : > { %9656 = vmatprep.mubr.msk.f32.mxu1 %vm8374_vm2, %v8349_v8 }
 0x9b3   : > { %9657 = vmatmul.mubr.msk.f32.gmra.mrb[166].mxu1 %vm8374_vm2, %v8350_v46 }
 0x9b7   : > { %v9625_v18 = vpop.f32.mrb[136].mxu0 }
 0x9b8   : > { %v8312_v13 = vpop.f32.mrb[137].mxu0  ;;  %v8321_v10 = vadd.f32 %v9625_v18, %v9371_v44 }
 0x9b9   : > { %v8313_v0 = vadd.f32 %v9371_v44, %v8312_v13  ;;  %v9626_v37 = vpop.f32.mrb[138].mxu0 }
 0x9ba   : > { %v8315_v2 = vpop.f32.mrb[139].mxu0  ;;  %v8324_v55 = vadd.f32 %v9626_v37, %v9371_v44  ;;  %v8353_v56 = vmax.f32 %v8321_v10, 0.0 }
 0x9bb   : > { %v8351_v50 = vmax.f32 %v8313_v0, 0.0  ;;  %v8316_v3 = vadd.f32 %v9371_v44, %v8315_v2 }
 0x9bc   : > { %v8354_v17 = vmax.f32 %v8324_v55, 0.0 }
 0x9bd   : > { %v8352_v31 = vmax.f32 %v8316_v3, 0.0  ;;  %9659 = vmatprep.mubr.msk.f32.mxu1 %vm8374_vm2, %v8351_v50 }
 0x9bf   : > { %9660 = vmatmul.mubr.msk.f32.gmra.mrb[168].mxu1 %vm8374_vm2, %v8352_v31 }
 0x9c0   : > { %9662 = vmatprep.mubr.msk.f32.mxu1 %vm8374_vm2, %v8353_v56 }
 0x9c3   : > { %9663 = vmatmul.mubr.msk.f32.gmra.mrb[170].mxu1 %vm8374_vm2, %v8354_v17 }
 0x9c7   : > { %v9629_v6 = vpop.f32.mrb[140].mxu0 }
 0x9c8   : > { %v8328_v5 = vpop.f32.mrb[141].mxu0  ;;  %v8337_v16 = vadd.f32 %v9629_v6, %v9371_v44 }
 0x9c9   : > { %v8329_v33 = vadd.f32 %v9371_v44, %v8328_v5  ;;  %v9630_v39 = vpop.f32.mrb[142].mxu0 }
 0x9ca   : > { %v8331_v60 = vpop.f32.mrb[143].mxu0  ;;  %v8340_v12 = vadd.f32 %v9630_v39, %v9371_v44  ;;  %v8357_v49 = vmax.f32 %v8337_v16, 0.0 }
 0x9cb   : > { %v8355_v27 = vmax.f32 %v8329_v33, 0.0  ;;  %v8332_v15 = vadd.f32 %v9371_v44, %v8331_v60 }
 0x9cc   : > { %v8358_v25 = vmax.f32 %v8340_v12, 0.0 }
 0x9cd   : > { %v8356_v59 = vmax.f32 %v8332_v15, 0.0  ;;  %9665 = vmatprep.mubr.msk.f32.mxu1 %vm8374_vm2, %v8355_v27 }
 0x9cf   : > { %9666 = vmatmul.mubr.msk.f32.gmra.mrb[172].mxu1 %vm8374_vm2, %v8356_v59 }
 0x9d0   : > { %9668 = vmatprep.mubr.msk.f32.mxu1 %vm8374_vm2, %v8357_v49 }
 0x9d3   : > { %9669 = vmatmul.mubr.msk.f32.gmra.mrb[174].mxu1 %vm8374_vm2, %v8358_v25 }
 0xa74   : > { %v9649_v38 = vpop.f32.mrb[160].mxu1 }
 0xa75   : > { %v8495_v26 = vadd.f32 %v9649_v38, %v9380_v21  ;;  %v8489_v22 = vpop.f32.mrb[161].mxu1 }
 0xa76   : > { %v8490_v11 = vadd.f32 %v9380_v21, %v8489_v22 }
 0xa77   : > { %8570 = vst.msk [vmem:[%s13407_s16 + $0x8] sm:$0xff] %vm8568_vm3, %v8495_v26 }
 0xa78   : > { %8569 = vst.msk [vmem:[%s13407_s16] sm:$0xff] %vm8568_vm3, %v8490_v11  ;;  %v9652_v43 = vpop.f32.mrb[162].mxu1 }
 0xa79   : > { %v8505_v51 = vadd.f32 %v9652_v43, %v9380_v21  ;;  %v8499_v24 = vpop.f32.mrb[163].mxu1 }
 0xa7a   : > { %v8500_v42 = vadd.f32 %v9380_v21, %v8499_v24 }
 0xa7b   : > { %8572 = vst.msk [vmem:[%s13407_s16 + $0x18] sm:$0xff] %vm8568_vm3, %v8505_v51 }
 0xa7c   : > { %8571 = vst.msk [vmem:[%s13407_s16 + $0x10] sm:$0xff] %vm8568_vm3, %v8500_v42 }
 0xa82   : > { %v9655_v34 = vpop.f32.mrb[164].mxu1 }
 0xa83   : > { %v8515_v54 = vadd.f32 %v9655_v34, %v9380_v21  ;;  %v8509_v45 = vpop.f32.mrb[165].mxu1 }
 0xa84   : > { %v8510_v29 = vadd.f32 %v9380_v21, %v8509_v45 }
 0xa85   : > { %8574 = vst.msk [vmem:[%s13407_s16 + $0x28] sm:$0xff] %vm8568_vm3, %v8515_v54 }
 0xa86   : > { %8573 = vst.msk [vmem:[%s13407_s16 + $0x20] sm:$0xff] %vm8568_vm3, %v8510_v29  ;;  %v9658_v19 = vpop.f32.mrb[166].mxu1 }
 0xa87   : > { %v8525_v40 = vadd.f32 %v9658_v19, %v9380_v21  ;;  %v8519_v44 = vpop.f32.mrb[167].mxu1 }
 0xa88   : > { %v8520_v47 = vadd.f32 %v9380_v21, %v8519_v44 }
 0xa89   : > { %8576 = vst.msk [vmem:[%s13407_s16 + $0x38] sm:$0xff] %vm8568_vm3, %v8525_v40 }
 0xa8a   : > { %8575 = vst.msk [vmem:[%s13407_s16 + $0x30] sm:$0xff] %vm8568_vm3, %v8520_v47 }
 0xa92   : > { %v9661_v36 = vpop.f32.mrb[168].mxu1 }
 0xa93   : > { %v8535_v32 = vadd.f32 %v9661_v36, %v9380_v21  ;;  %v8529_v57 = vpop.f32.mrb[169].mxu1 }
 0xa94   : > { %v8530_v28 = vadd.f32 %v9380_v21, %v8529_v57 }
 0xa95   : > { %8578 = vst.msk [vmem:[%s13407_s16 + $0x48] sm:$0xff] %vm8568_vm3, %v8535_v32 }
 0xa96   : > { %8577 = vst.msk [vmem:[%s13407_s16 + $0x40] sm:$0xff] %vm8568_vm3, %v8530_v28  ;;  %v9664_v48 = vpop.f32.mrb[170].mxu1 }
 0xa97   : > { %v8545_v63 = vadd.f32 %v9664_v48, %v9380_v21  ;;  %v8539_v35 = vpop.f32.mrb[171].mxu1 }
 0xa98   : > { %v8540_v52 = vadd.f32 %v9380_v21, %v8539_v35 }
 0xa99   : > { %8580 = vst.msk [vmem:[%s13407_s16 + $0x58] sm:$0xff] %vm8568_vm3, %v8545_v63 }
 0xa9a   : > { %8579 = vst.msk [vmem:[%s13407_s16 + $0x50] sm:$0xff] %vm8568_vm3, %v8540_v52 }
 0xaa2   : > { %v9667_v9 = vpop.f32.mrb[172].mxu1 }
 0xaa3   : > { %v8555_v41 = vadd.f32 %v9667_v9, %v9380_v21  ;;  %v8549_v23 = vpop.f32.mrb[173].mxu1 }
 0xaa4   : > { %v8550_v61 = vadd.f32 %v9380_v21, %v8549_v23 }
 0xaa5   : > { %8582 = vst.msk [vmem:[%s13407_s16 + $0x68] sm:$0xff] %vm8568_vm3, %v8555_v41 }
 0xaa6   : > { %8581 = vst.msk [vmem:[%s13407_s16 + $0x60] sm:$0xff] %vm8568_vm3, %v8550_v61  ;;  %v9670_v53 = vpop.f32.mrb[174].mxu1 }
 0xaa7   : > { %v8565_v62 = vadd.f32 %v9670_v53, %v9380_v21  ;;  %v8559_v1 = vpop.f32.mrb[175].mxu1 }
 0xaa8   : > { %v8560_v7 = vadd.f32 %v9380_v21, %v8559_v1 }
 0xaa9   : > { %8584 = vst.msk [vmem:[%s13407_s16 + $0x78] sm:$0xff] %vm8568_vm3, %v8565_v62 }
 0xaaa   : > { %8583 = vst.msk [vmem:[%s13407_s16 + $0x70] sm:$0xff] %vm8568_vm3, %v8560_v7 }
 0xaab PF: > { %s29_s24 = sadd.s32 1, %s11057_s24  }
 0xaac   : > { %p26_p2 = scmp.ge.s32.totalorder %s29_s24, 4  }
 0xaae   :  { %28 = sbr.rel (!%p26_p2) target bundleno = 7 (0x7), region = 127 }
 0xab5   :  { %8607 = vsyncpa [#allocation3], 1 }
 0xab6   :  { %8609 = vsyncpa [#allocation3 + $0x1], 1 }
 0xab7   :  { %8610 = vsyncpa [#allocation5], 1 }

</bundles_post_ra>
